<compile_context>
chip_gen: v7x
topology: tpu7x:2x2x1
jax: 0.10.0
libtpu: 0.0.40
codegen_flags: <defaults>
</compile_context>

<pallas_src>
import math

import jax
import jax.numpy as jnp
from jax.experimental import pallas as pl
from jax.experimental.pallas import tpu as pltpu

# ---------------- small deterministic config ----------------
B = 2          # batch
C = 4          # num_channels
IMG = 16       # image_size
P = 4          # patch_size
NP = (IMG // P) ** 2      # num_patches = seq_len = 16
D = 32         # hidden_size
I = 64         # intermediate_size
H = 4          # num_attention_heads
HD = D // H    # head_dim = 8
LAYERS = 2     # num_hidden_layers
EPS = 1e-12    # layer_norm_eps
SCALE = HD ** -0.5
K = C * P * P  # flattened patch dim = 64
M = B * NP     # batch folded into matmul M dim = 32
VPAD = 128     # lane width of the packed per-layer bias/LN slab


# ---------------- shared math helpers (usable inside kernels) ----------------
def _mm(eq, a, b):
    """Matmul with bf16 inputs and f32 accumulation (single-pass MXU)."""
    return jnp.einsum(eq, a.astype(jnp.bfloat16), b.astype(jnp.bfloat16),
                      preferred_element_type=jnp.float32)


def _layer_norm(x, w, b, eps=EPS):
    m = jnp.mean(x, axis=-1, keepdims=True)
    v = jnp.mean((x - m) ** 2, axis=-1, keepdims=True)
    return (x - m) * jax.lax.rsqrt(v + eps) * w + b


def _gelu_tanh(x):
    c = math.sqrt(2.0 / math.pi)
    return 0.5 * x * (1.0 + jnp.tanh(c * (x + 0.044715 * x ** 3)))


# ---------------- fused Pallas kernel (whole forward pass) ----------------
def siglip_fused_kernel(patches_ref,            # (M, K)
                        ew_ref, eb_ref, pos_ref,  # (K, D), (1, D), (NP, D)
                        qkvw_ref,               # (LAYERS, D, 3D)
                        ow_ref,                 # (LAYERS, D, D)
                        f1w_ref,                # (LAYERS, D, I)
                        f2w_ref,                # (LAYERS, I, D)
                        vec_ref,                # (LAYERS, 8, VPAD) packed bias/LN
                        pln_ref,                # (2, D) post-LN weight, bias
                        o_ref):                 # (M, D)
    # ---- patch embedding: Conv2d(stride=kernel) lowered to matmul + pos add ----
    emb = _mm("mk,kd->md", patches_ref[...], ew_ref[...]) + eb_ref[...]   # (M, D)
    emb = emb.reshape(B, NP, D) + pos_ref[...]     # broadcast positions over batch
    h = emb.reshape(M, D)

    # ---- encoder layers (statically unrolled; LAYERS=2, all weights in VMEM) ----
    for l in range(LAYERS):
        vec = vec_ref[l]                           # (8, VPAD)
        ln1w, ln1b = vec[0:1, :D], vec[1:2, :D]
        qkvb       = vec[2:3, :3 * D]
        ob         = vec[3:4, :D]
        ln2w, ln2b = vec[4:5, :D], vec[5:6, :D]
        f1b        = vec[6:7, :I]
        f2b        = vec[7:8, :D]
        ow_l = ow_ref[l]                           # (D, D)

        # --- self attention ---
        x = _layer_norm(h, ln1w, ln1b)
        qkv = _mm("md,de->me", x, qkvw_ref[l]) + qkvb        # fused QKV, (M, 3D)
        qkv3 = qkv.reshape(B, NP, 3 * D)

        attn = jnp.zeros((M, D), jnp.float32)
        for hd_i in range(H):                      # static unrolled head loop (H=4)
            o0 = hd_i * HD
            qh = qkv3[:, :, o0:o0 + HD]                       # (B, NP, HD)
            kh = qkv3[:, :, D + o0:D + o0 + HD]
            vh = qkv3[:, :, 2 * D + o0:2 * D + o0 + HD]
            s = _mm("bqd,bkd->bqk", qh, kh) * SCALE           # (B, NP, NP) f32
            # softmax: scores are small & f32 -> skip max-subtraction; EUP recip.
            e = jnp.exp(s)
            p = e * pl.reciprocal(jnp.sum(e, axis=-1, keepdims=True), approx=True)
            o = _mm("bqk,bkd->bqd", p, vh)                    # (B, NP, HD)
            # fold the head-concat into the output projection (accumulate per head)
            attn = attn + _mm("mk,kd->md", o.reshape(M, HD), ow_l[o0:o0 + HD, :])
        attn = attn + ob
        h1 = attn + h

        # --- MLP with the module's residual wiring: h = MLP(h1) + LN2(h1) ---
        res2 = _layer_norm(h1, ln2w, ln2b)
        mlp = _gelu_tanh(_mm("md,di->mi", h1, f1w_ref[l]) + f1b)
        mlp = _mm("mi,id->md", mlp, f2w_ref[l]) + f2b
        h = mlp + res2

    # ---- final post layer norm ----
    pln = pln_ref[...]
    o_ref[...] = _layer_norm(h, pln[0:1, :], pln[1:2, :])


# ---------------- pallas_call wrapper ----------------
def _full_spec(shape):
    nd = len(shape)
    return pl.BlockSpec(tuple(shape), lambda i, nd=nd: (0,) * nd)


def _fused_forward(patches, pk):
    args = (patches, pk["ew"], pk["eb"], pk["pos"], pk["qkvw"], pk["ow"],
            pk["f1w"], pk["f2w"], pk["vec"], pk["pln"])
    return pl.pallas_call(
        siglip_fused_kernel,
        out_shape=jax.ShapeDtypeStruct((M, D), jnp.float32),
        grid=(1,),
        in_specs=[_full_spec(a.shape) for a in args],
        out_specs=_full_spec((M, D)),
        compiler_params=pltpu.CompilerParams(dimension_semantics=("arbitrary",)),
    )(*args)


# ---------------- glue (plain JAX) ----------------
def patchify(x):
    # (B, C, H, W) -> (B, NP, C*P*P); patch flattened in (C, ph, pw) order,
    # patches enumerated row-major over spatial, matching Conv2d(stride=kernel).
    b, c, h, w = x.shape
    x = x.reshape(b, c, h // P, P, w // P, P)
    x = x.transpose(0, 2, 4, 1, 3, 5)
    return x.reshape(b, (h // P) * (w // P), c * P * P)


@jax.jit
def siglip_visual_transformer(packed, pixel_values):
    patches = patchify(pixel_values).reshape(M, K)
    out = _fused_forward(patches, packed)
    return out.reshape(B, NP, D)


# ---------------- deterministic parameter init + packing ----------------
def init_params(key):
    keys = iter(jax.random.split(key, 128))

    def nrm(shape, scale=0.1):
        return scale * jax.random.normal(next(keys), shape, jnp.float32)

    params = {
        "embed": {"w": nrm((K, D)), "b": nrm((1, D)), "pos": nrm((NP, D))},
        "layers": [],
        "post_lnw": jnp.ones((1, D), jnp.float32),
        "post_lnb": jnp.zeros((1, D), jnp.float32),
    }
    for _ in range(LAYERS):
        params["layers"].append({
            "ln1w": jnp.ones((1, D), jnp.float32), "ln1b": jnp.zeros((1, D), jnp.float32),
            "qw": nrm((D, D)), "qb": nrm((1, D)),
            "kw": nrm((D, D)), "kb": nrm((1, D)),
            "vw": nrm((D, D)), "vb": nrm((1, D)),
            "ow": nrm((D, D)), "ob": nrm((1, D)),
            "ln2w": jnp.ones((1, D), jnp.float32), "ln2b": jnp.zeros((1, D), jnp.float32),
            "f1w": nrm((D, I)), "f1b": nrm((1, I)),
            "f2w": nrm((I, D)), "f2b": nrm((1, D)),
        })
    return params


def pack_params(params):
    """Pack logical params into the stacked / slab layout the kernel consumes."""
    def row(v):
        v = v.reshape(-1)
        return jnp.pad(v, (0, VPAD - v.shape[0]))

    qkvw, ow, f1w, f2w, vec = [], [], [], [], []
    for p in params["layers"]:
        qkvw.append(jnp.concatenate([p["qw"], p["kw"], p["vw"]], axis=1))  # (D, 3D)
        ow.append(p["ow"])
        f1w.append(p["f1w"])
        f2w.append(p["f2w"])
        qkvb = jnp.concatenate([p["qb"], p["kb"], p["vb"]], axis=1)        # (1, 3D)
        vec.append(jnp.stack([row(p["ln1w"]), row(p["ln1b"]), row(qkvb),
                              row(p["ob"]), row(p["ln2w"]), row(p["ln2b"]),
                              row(p["f1b"]), row(p["f2b"])]))              # (8, VPAD)
    return {
        "ew": params["embed"]["w"],
        "eb": params["embed"]["b"],
        "pos": params["embed"]["pos"],
        "qkvw": jnp.stack(qkvw),       # (LAYERS, D, 3D)
        "ow": jnp.stack(ow),           # (LAYERS, D, D)
        "f1w": jnp.stack(f1w),         # (LAYERS, D, I)
        "f2w": jnp.stack(f2w),         # (LAYERS, I, D)
        "vec": jnp.stack(vec),         # (LAYERS, 8, VPAD)
        "pln": jnp.concatenate([params["post_lnw"], params["post_lnb"]], axis=0),
    }


# ---------------- pure-JAX reference for correctness ----------------
# Uses the same bf16-input / f32-accumulation matmul convention as the kernel,
# but the faithful module structure (separate q/k/v linears, standard softmax).
def reference(params, pixel_values):
    patches = patchify(pixel_values)                                    # (B, NP, K)
    h = _mm("bnk,kd->bnd", patches, params["embed"]["w"]) \
        + params["embed"]["b"] + params["embed"]["pos"]
    for p in params["layers"]:
        x = _layer_norm(h, p["ln1w"], p["ln1b"])
        q = _mm("bnd,de->bne", x, p["qw"]) + p["qb"]
        k = _mm("bnd,de->bne", x, p["kw"]) + p["kb"]
        v = _mm("bnd,de->bne", x, p["vw"]) + p["vb"]
        split = lambda t: t.reshape(B, NP, H, HD).transpose(0, 2, 1, 3)
        q, k, v = split(q), split(k), split(v)
        s = _mm("bhqd,bhkd->bhqk", q, k) * SCALE
        a = jax.nn.softmax(s, axis=-1)
        o = _mm("bhqk,bhkd->bhqd", a, v)
        o = o.transpose(0, 2, 1, 3).reshape(B, NP, D)
        attn = _mm("bnd,de->bne", o, p["ow"]) + p["ob"]
        h1 = attn + h
        res2 = _layer_norm(h1, p["ln2w"], p["ln2b"])
        mlp = _gelu_tanh(_mm("bnd,di->bni", h1, p["f1w"]) + p["f1b"])
        mlp = _mm("bni,id->bnd", mlp, p["f2w"]) + p["f2b"]
        h = mlp + res2
    return _layer_norm(h, params["post_lnw"], params["post_lnb"])


if __name__ == "__main__":
    key = jax.random.PRNGKey(0)
    pkey, xkey = jax.random.split(key)
    params = init_params(pkey)
    packed = pack_params(params)
    pixel_values = jax.random.normal(xkey, (B, C, IMG, IMG), jnp.float32)

    out = siglip_visual_transformer(packed, pixel_values)
    out = jax.block_until_ready(out)

    assert out.shape == (B, NP, D), out.shape
    ref = reference(params, pixel_values)
    max_err = float(jnp.max(jnp.abs(out - ref)))
    assert jnp.allclose(out, ref, atol=1e-2, rtol=1e-2), max_err

    print("KERNEL_OK")
</pallas_src>

<mosaic_0001>
module attributes {stable_mosaic.version = 11 : i64} {
  func.func @siglip_fused_kernel(%arg0: i32, %arg1: memref<32x64xf32, #tpu.memory_space<vmem>>, %arg2: memref<64x32xf32, #tpu.memory_space<vmem>>, %arg3: memref<1x32xf32, #tpu.memory_space<vmem>>, %arg4: memref<16x32xf32, #tpu.memory_space<vmem>>, %arg5: memref<2x32x96xf32, #tpu.memory_space<vmem>>, %arg6: memref<2x32x32xf32, #tpu.memory_space<vmem>>, %arg7: memref<2x32x64xf32, #tpu.memory_space<vmem>>, %arg8: memref<2x64x32xf32, #tpu.memory_space<vmem>>, %arg9: memref<2x8x128xf32, #tpu.memory_space<vmem>>, %arg10: memref<2x32xf32, #tpu.memory_space<vmem>>, %arg11: memref<32x32xf32, #tpu.memory_space<vmem>>) attributes {dimension_semantics = [#tpu.dimension_semantics<arbitrary>], iteration_bounds = array<i64: 1>, scalar_prefetch = 0 : i64, scratch_operands = 0 : i64, tpu.core_type = #tpu.core_type<tc>, window_params = [{pipeline_mode = #tpu.pipeline_mode<synchronous>, transform_indices = @transform_0, window_bounds = array<i64: 32, 64>}, {pipeline_mode = #tpu.pipeline_mode<synchronous>, transform_indices = @transform_1, window_bounds = array<i64: 64, 32>}, {pipeline_mode = #tpu.pipeline_mode<synchronous>, transform_indices = @transform_2, window_bounds = array<i64: 1, 32>}, {pipeline_mode = #tpu.pipeline_mode<synchronous>, transform_indices = @transform_3, window_bounds = array<i64: 16, 32>}, {pipeline_mode = #tpu.pipeline_mode<synchronous>, transform_indices = @transform_4, window_bounds = array<i64: 2, 32, 96>}, {pipeline_mode = #tpu.pipeline_mode<synchronous>, transform_indices = @transform_5, window_bounds = array<i64: 2, 32, 32>}, {pipeline_mode = #tpu.pipeline_mode<synchronous>, transform_indices = @transform_6, window_bounds = array<i64: 2, 32, 64>}, {pipeline_mode = #tpu.pipeline_mode<synchronous>, transform_indices = @transform_7, window_bounds = array<i64: 2, 64, 32>}, {pipeline_mode = #tpu.pipeline_mode<synchronous>, transform_indices = @transform_8, window_bounds = array<i64: 2, 8, 128>}, {pipeline_mode = #tpu.pipeline_mode<synchronous>, transform_indices = @transform_9, window_bounds = array<i64: 2, 32>}, {pipeline_mode = #tpu.pipeline_mode<synchronous>, transform_indices = @transform_10, window_bounds = array<i64: 32, 32>}]} {
    %c0 = arith.constant 0 : index
    %c0_0 = arith.constant 0 : index
    %0 = vector.load %arg1[%c0, %c0_0] : memref<32x64xf32, #tpu.memory_space<vmem>>, vector<32x64xf32>
    %c0_1 = arith.constant 0 : index
    %c0_2 = arith.constant 0 : index
    %1 = vector.load %arg2[%c0_1, %c0_2] : memref<64x32xf32, #tpu.memory_space<vmem>>, vector<64x32xf32>
    %2 = arith.truncf %0 : vector<32x64xf32> to vector<32x64xbf16>
    %3 = arith.truncf %1 : vector<64x32xf32> to vector<64x32xbf16>
    "tpu.trace_start"() <{level = 10 : i32, message = "mk,kd->md"}> : () -> ()
    %cst = arith.constant dense<0.000000e+00> : vector<32x32xf32>
    %4 = tpu.matmul %2, %3, %cst {dimension_numbers = #tpu.dot_dimension_numbers<[1], [0], [0], [1], [0, 0, 1, 1], [], []>} : vector<32x64xbf16>, vector<64x32xbf16>, vector<32x32xf32> -> vector<32x32xf32>
    "tpu.trace_stop"() : () -> ()
    %c0_3 = arith.constant 0 : index
    %c0_4 = arith.constant 0 : index
    %5 = vector.load %arg3[%c0_3, %c0_4] : memref<1x32xf32, #tpu.memory_space<vmem>>, vector<1x32xf32>
    %6 = vector.broadcast %5 : vector<1x32xf32> to vector<32x32xf32>
    %7 = arith.addf %4, %6 : vector<32x32xf32>
    %8 = vector.shape_cast %7 : vector<32x32xf32> to vector<2x16x32xf32>
    %c0_5 = arith.constant 0 : index
    %c0_6 = arith.constant 0 : index
    %9 = vector.load %arg4[%c0_5, %c0_6] : memref<16x32xf32, #tpu.memory_space<vmem>>, vector<16x32xf32>
    %10 = vector.shape_cast %9 : vector<16x32xf32> to vector<1x16x32xf32>
    %11 = vector.broadcast %10 : vector<1x16x32xf32> to vector<2x16x32xf32>
    %12 = arith.addf %8, %11 : vector<2x16x32xf32>
    %13 = vector.shape_cast %12 : vector<2x16x32xf32> to vector<32x32xf32>
    %c0_7 = arith.constant 0 : index
    %c0_8 = arith.constant 0 : index
    %c0_9 = arith.constant 0 : index
    %14 = vector.load %arg9[%c0_7, %c0_8, %c0_9] : memref<2x8x128xf32, #tpu.memory_space<vmem>>, vector<1x8x128xf32>
    %15 = vector.shape_cast %14 : vector<1x8x128xf32> to vector<8x128xf32>
    %16 = vector.extract_strided_slice %15 {offsets = [0, 0], sizes = [1, 32], strides = [1, 1]} : vector<8x128xf32> to vector<1x32xf32>
    %17 = vector.extract_strided_slice %15 {offsets = [1, 0], sizes = [1, 32], strides = [1, 1]} : vector<8x128xf32> to vector<1x32xf32>
    %18 = vector.extract_strided_slice %15 {offsets = [2, 0], sizes = [1, 96], strides = [1, 1]} : vector<8x128xf32> to vector<1x96xf32>
    %19 = vector.extract_strided_slice %15 {offsets = [3, 0], sizes = [1, 32], strides = [1, 1]} : vector<8x128xf32> to vector<1x32xf32>
    %20 = vector.extract_strided_slice %15 {offsets = [4, 0], sizes = [1, 32], strides = [1, 1]} : vector<8x128xf32> to vector<1x32xf32>
    %21 = vector.extract_strided_slice %15 {offsets = [5, 0], sizes = [1, 32], strides = [1, 1]} : vector<8x128xf32> to vector<1x32xf32>
    %22 = vector.extract_strided_slice %15 {offsets = [6, 0], sizes = [1, 64], strides = [1, 1]} : vector<8x128xf32> to vector<1x64xf32>
    %23 = vector.extract_strided_slice %15 {offsets = [7, 0], sizes = [1, 32], strides = [1, 1]} : vector<8x128xf32> to vector<1x32xf32>
    %c0_10 = arith.constant 0 : index
    %c0_11 = arith.constant 0 : index
    %c0_12 = arith.constant 0 : index
    %24 = vector.load %arg6[%c0_10, %c0_11, %c0_12] : memref<2x32x32xf32, #tpu.memory_space<vmem>>, vector<1x32x32xf32>
    %25 = vector.shape_cast %24 : vector<1x32x32xf32> to vector<32x32xf32>
    %cst_13 = arith.constant dense<0.000000e+00> : vector<32xf32>
    %26 = vector.multi_reduction <add>, %13, %cst_13 [1] : vector<32x32xf32> to vector<32xf32>
    %27 = vector.shape_cast %26 : vector<32xf32> to vector<32x1xf32>
    %cst_14 = arith.constant 3.200000e+01 : f32
    %28 = vector.broadcast %cst_14 : f32 to vector<32x1xf32>
    %29 = arith.divf %27, %28 : vector<32x1xf32>
    %30 = vector.broadcast %29 : vector<32x1xf32> to vector<32x32xf32>
    %31 = arith.subf %13, %30 : vector<32x32xf32>
    %32 = arith.mulf %31, %31 : vector<32x32xf32>
    %cst_15 = arith.constant dense<0.000000e+00> : vector<32xf32>
    %33 = vector.multi_reduction <add>, %32, %cst_15 [1] : vector<32x32xf32> to vector<32xf32>
    %34 = vector.shape_cast %33 : vector<32xf32> to vector<32x1xf32>
    %cst_16 = arith.constant 3.200000e+01 : f32
    %35 = vector.broadcast %cst_16 : f32 to vector<32x1xf32>
    %36 = arith.divf %34, %35 : vector<32x1xf32>
    %37 = vector.broadcast %29 : vector<32x1xf32> to vector<32x32xf32>
    %38 = arith.subf %13, %37 : vector<32x32xf32>
    %cst_17 = arith.constant 9.99999996E-13 : f32
    %39 = vector.broadcast %cst_17 : f32 to vector<32x1xf32>
    %40 = arith.addf %36, %39 : vector<32x1xf32>
    %41 = math.rsqrt %40 : vector<32x1xf32>
    %42 = vector.broadcast %41 : vector<32x1xf32> to vector<32x32xf32>
    %43 = arith.mulf %38, %42 : vector<32x32xf32>
    %44 = vector.broadcast %16 : vector<1x32xf32> to vector<32x32xf32>
    %45 = arith.mulf %43, %44 : vector<32x32xf32>
    %46 = vector.broadcast %17 : vector<1x32xf32> to vector<32x32xf32>
    %47 = arith.addf %45, %46 : vector<32x32xf32>
    %c0_18 = arith.constant 0 : index
    %c0_19 = arith.constant 0 : index
    %c0_20 = arith.constant 0 : index
    %48 = vector.load %arg5[%c0_18, %c0_19, %c0_20] : memref<2x32x96xf32, #tpu.memory_space<vmem>>, vector<1x32x96xf32>
    %49 = vector.shape_cast %48 : vector<1x32x96xf32> to vector<32x96xf32>
    %50 = arith.truncf %47 : vector<32x32xf32> to vector<32x32xbf16>
    %51 = arith.truncf %49 : vector<32x96xf32> to vector<32x96xbf16>
    "tpu.trace_start"() <{level = 10 : i32, message = "md,de->me"}> : () -> ()
    %cst_21 = arith.constant dense<0.000000e+00> : vector<32x96xf32>
    %52 = tpu.matmul %50, %51, %cst_21 {dimension_numbers = #tpu.dot_dimension_numbers<[1], [0], [0], [1], [0, 0, 1, 1], [], []>} : vector<32x32xbf16>, vector<32x96xbf16>, vector<32x96xf32> -> vector<32x96xf32>
    "tpu.trace_stop"() : () -> ()
    %53 = vector.broadcast %18 : vector<1x96xf32> to vector<32x96xf32>
    %54 = arith.addf %52, %53 : vector<32x96xf32>
    %55 = vector.shape_cast %54 : vector<32x96xf32> to vector<2x16x96xf32>
    %cst_22 = arith.constant 0.000000e+00 : f32
    %56 = vector.broadcast %cst_22 : f32 to vector<32x32xf32>
    %57 = vector.extract_strided_slice %55 {offsets = [0, 0, 0], sizes = [2, 16, 8], strides = [1, 1, 1]} : vector<2x16x96xf32> to vector<2x16x8xf32>
    %58 = vector.extract_strided_slice %55 {offsets = [0, 0, 32], sizes = [2, 16, 8], strides = [1, 1, 1]} : vector<2x16x96xf32> to vector<2x16x8xf32>
    %59 = vector.extract_strided_slice %55 {offsets = [0, 0, 64], sizes = [2, 16, 8], strides = [1, 1, 1]} : vector<2x16x96xf32> to vector<2x16x8xf32>
    %60 = arith.truncf %57 : vector<2x16x8xf32> to vector<2x16x8xbf16>
    %61 = arith.truncf %58 : vector<2x16x8xf32> to vector<2x16x8xbf16>
    "tpu.trace_start"() <{level = 10 : i32, message = "bqd,bkd->bqk"}> : () -> ()
    %cst_23 = arith.constant dense<0.000000e+00> : vector<2x16x16xf32>
    %62 = tpu.matmul %60, %61, %cst_23 {dimension_numbers = #tpu.dot_dimension_numbers<[2], [2], [1], [1], [0, 0, 0, 1, 1, 1], [0], [0]>} : vector<2x16x8xbf16>, vector<2x16x8xbf16>, vector<2x16x16xf32> -> vector<2x16x16xf32>
    "tpu.trace_stop"() : () -> ()
    %cst_24 = arith.constant 0.353553385 : f32
    %63 = vector.broadcast %cst_24 : f32 to vector<2x16x16xf32>
    %64 = arith.mulf %62, %63 : vector<2x16x16xf32>
    %65 = math.exp %64 : vector<2x16x16xf32>
    %cst_25 = arith.constant dense<0.000000e+00> : vector<2x16xf32>
    %66 = vector.multi_reduction <add>, %65, %cst_25 [2] : vector<2x16x16xf32> to vector<2x16xf32>
    %67 = vector.shape_cast %66 : vector<2x16xf32> to vector<2x16x1xf32>
    %68 = tpu.reciprocal %67 {approx = true} : vector<2x16x1xf32> -> vector<2x16x1xf32>
    %69 = vector.broadcast %68 : vector<2x16x1xf32> to vector<2x16x16xf32>
    %70 = arith.mulf %65, %69 : vector<2x16x16xf32>
    %71 = arith.truncf %70 : vector<2x16x16xf32> to vector<2x16x16xbf16>
    %72 = arith.truncf %59 : vector<2x16x8xf32> to vector<2x16x8xbf16>
    "tpu.trace_start"() <{level = 10 : i32, message = "bqk,bkd->bqd"}> : () -> ()
    %cst_26 = arith.constant dense<0.000000e+00> : vector<2x16x8xf32>
    %73 = tpu.matmul %71, %72, %cst_26 {dimension_numbers = #tpu.dot_dimension_numbers<[2], [1], [1], [2], [0, 0, 0, 1, 1, 2], [0], [0]>} : vector<2x16x16xbf16>, vector<2x16x8xbf16>, vector<2x16x8xf32> -> vector<2x16x8xf32>
    "tpu.trace_stop"() : () -> ()
    %74 = vector.shape_cast %73 : vector<2x16x8xf32> to vector<32x8xf32>
    %75 = vector.extract_strided_slice %25 {offsets = [0, 0], sizes = [8, 32], strides = [1, 1]} : vector<32x32xf32> to vector<8x32xf32>
    %76 = arith.truncf %74 : vector<32x8xf32> to vector<32x8xbf16>
    %77 = arith.truncf %75 : vector<8x32xf32> to vector<8x32xbf16>
    "tpu.trace_start"() <{level = 10 : i32, message = "mk,kd->md"}> : () -> ()
    %cst_27 = arith.constant dense<0.000000e+00> : vector<32x32xf32>
    %78 = tpu.matmul %76, %77, %cst_27 {dimension_numbers = #tpu.dot_dimension_numbers<[1], [0], [0], [1], [0, 0, 1, 1], [], []>} : vector<32x8xbf16>, vector<8x32xbf16>, vector<32x32xf32> -> vector<32x32xf32>
    "tpu.trace_stop"() : () -> ()
    %79 = arith.addf %56, %78 : vector<32x32xf32>
    %80 = vector.extract_strided_slice %55 {offsets = [0, 0, 8], sizes = [2, 16, 8], strides = [1, 1, 1]} : vector<2x16x96xf32> to vector<2x16x8xf32>
    %81 = vector.extract_strided_slice %55 {offsets = [0, 0, 40], sizes = [2, 16, 8], strides = [1, 1, 1]} : vector<2x16x96xf32> to vector<2x16x8xf32>
    %82 = vector.extract_strided_slice %55 {offsets = [0, 0, 72], sizes = [2, 16, 8], strides = [1, 1, 1]} : vector<2x16x96xf32> to vector<2x16x8xf32>
    %83 = arith.truncf %80 : vector<2x16x8xf32> to vector<2x16x8xbf16>
    %84 = arith.truncf %81 : vector<2x16x8xf32> to vector<2x16x8xbf16>
    "tpu.trace_start"() <{level = 10 : i32, message = "bqd,bkd->bqk"}> : () -> ()
    %cst_28 = arith.constant dense<0.000000e+00> : vector<2x16x16xf32>
    %85 = tpu.matmul %83, %84, %cst_28 {dimension_numbers = #tpu.dot_dimension_numbers<[2], [2], [1], [1], [0, 0, 0, 1, 1, 1], [0], [0]>} : vector<2x16x8xbf16>, vector<2x16x8xbf16>, vector<2x16x16xf32> -> vector<2x16x16xf32>
    "tpu.trace_stop"() : () -> ()
    %cst_29 = arith.constant 0.353553385 : f32
    %86 = vector.broadcast %cst_29 : f32 to vector<2x16x16xf32>
    %87 = arith.mulf %85, %86 : vector<2x16x16xf32>
    %88 = math.exp %87 : vector<2x16x16xf32>
    %cst_30 = arith.constant dense<0.000000e+00> : vector<2x16xf32>
    %89 = vector.multi_reduction <add>, %88, %cst_30 [2] : vector<2x16x16xf32> to vector<2x16xf32>
    %90 = vector.shape_cast %89 : vector<2x16xf32> to vector<2x16x1xf32>
    %91 = tpu.reciprocal %90 {approx = true} : vector<2x16x1xf32> -> vector<2x16x1xf32>
    %92 = vector.broadcast %91 : vector<2x16x1xf32> to vector<2x16x16xf32>
    %93 = arith.mulf %88, %92 : vector<2x16x16xf32>
    %94 = arith.truncf %93 : vector<2x16x16xf32> to vector<2x16x16xbf16>
    %95 = arith.truncf %82 : vector<2x16x8xf32> to vector<2x16x8xbf16>
    "tpu.trace_start"() <{level = 10 : i32, message = "bqk,bkd->bqd"}> : () -> ()
    %cst_31 = arith.constant dense<0.000000e+00> : vector<2x16x8xf32>
    %96 = tpu.matmul %94, %95, %cst_31 {dimension_numbers = #tpu.dot_dimension_numbers<[2], [1], [1], [2], [0, 0, 0, 1, 1, 2], [0], [0]>} : vector<2x16x16xbf16>, vector<2x16x8xbf16>, vector<2x16x8xf32> -> vector<2x16x8xf32>
    "tpu.trace_stop"() : () -> ()
    %97 = vector.shape_cast %96 : vector<2x16x8xf32> to vector<32x8xf32>
    %98 = vector.extract_strided_slice %25 {offsets = [8, 0], sizes = [8, 32], strides = [1, 1]} : vector<32x32xf32> to vector<8x32xf32>
    %99 = arith.truncf %97 : vector<32x8xf32> to vector<32x8xbf16>
    %100 = arith.truncf %98 : vector<8x32xf32> to vector<8x32xbf16>
    "tpu.trace_start"() <{level = 10 : i32, message = "mk,kd->md"}> : () -> ()
    %cst_32 = arith.constant dense<0.000000e+00> : vector<32x32xf32>
    %101 = tpu.matmul %99, %100, %cst_32 {dimension_numbers = #tpu.dot_dimension_numbers<[1], [0], [0], [1], [0, 0, 1, 1], [], []>} : vector<32x8xbf16>, vector<8x32xbf16>, vector<32x32xf32> -> vector<32x32xf32>
    "tpu.trace_stop"() : () -> ()
    %102 = arith.addf %79, %101 : vector<32x32xf32>
    %103 = vector.extract_strided_slice %55 {offsets = [0, 0, 16], sizes = [2, 16, 8], strides = [1, 1, 1]} : vector<2x16x96xf32> to vector<2x16x8xf32>
    %104 = vector.extract_strided_slice %55 {offsets = [0, 0, 48], sizes = [2, 16, 8], strides = [1, 1, 1]} : vector<2x16x96xf32> to vector<2x16x8xf32>
    %105 = vector.extract_strided_slice %55 {offsets = [0, 0, 80], sizes = [2, 16, 8], strides = [1, 1, 1]} : vector<2x16x96xf32> to vector<2x16x8xf32>
    %106 = arith.truncf %103 : vector<2x16x8xf32> to vector<2x16x8xbf16>
    %107 = arith.truncf %104 : vector<2x16x8xf32> to vector<2x16x8xbf16>
    "tpu.trace_start"() <{level = 10 : i32, message = "bqd,bkd->bqk"}> : () -> ()
    %cst_33 = arith.constant dense<0.000000e+00> : vector<2x16x16xf32>
    %108 = tpu.matmul %106, %107, %cst_33 {dimension_numbers = #tpu.dot_dimension_numbers<[2], [2], [1], [1], [0, 0, 0, 1, 1, 1], [0], [0]>} : vector<2x16x8xbf16>, vector<2x16x8xbf16>, vector<2x16x16xf32> -> vector<2x16x16xf32>
    "tpu.trace_stop"() : () -> ()
    %cst_34 = arith.constant 0.353553385 : f32
    %109 = vector.broadcast %cst_34 : f32 to vector<2x16x16xf32>
    %110 = arith.mulf %108, %109 : vector<2x16x16xf32>
    %111 = math.exp %110 : vector<2x16x16xf32>
    %cst_35 = arith.constant dense<0.000000e+00> : vector<2x16xf32>
    %112 = vector.multi_reduction <add>, %111, %cst_35 [2] : vector<2x16x16xf32> to vector<2x16xf32>
    %113 = vector.shape_cast %112 : vector<2x16xf32> to vector<2x16x1xf32>
    %114 = tpu.reciprocal %113 {approx = true} : vector<2x16x1xf32> -> vector<2x16x1xf32>
    %115 = vector.broadcast %114 : vector<2x16x1xf32> to vector<2x16x16xf32>
    %116 = arith.mulf %111, %115 : vector<2x16x16xf32>
    %117 = arith.truncf %116 : vector<2x16x16xf32> to vector<2x16x16xbf16>
    %118 = arith.truncf %105 : vector<2x16x8xf32> to vector<2x16x8xbf16>
    "tpu.trace_start"() <{level = 10 : i32, message = "bqk,bkd->bqd"}> : () -> ()
    %cst_36 = arith.constant dense<0.000000e+00> : vector<2x16x8xf32>
    %119 = tpu.matmul %117, %118, %cst_36 {dimension_numbers = #tpu.dot_dimension_numbers<[2], [1], [1], [2], [0, 0, 0, 1, 1, 2], [0], [0]>} : vector<2x16x16xbf16>, vector<2x16x8xbf16>, vector<2x16x8xf32> -> vector<2x16x8xf32>
    "tpu.trace_stop"() : () -> ()
    %120 = vector.shape_cast %119 : vector<2x16x8xf32> to vector<32x8xf32>
    %121 = vector.extract_strided_slice %25 {offsets = [16, 0], sizes = [8, 32], strides = [1, 1]} : vector<32x32xf32> to vector<8x32xf32>
    %122 = arith.truncf %120 : vector<32x8xf32> to vector<32x8xbf16>
    %123 = arith.truncf %121 : vector<8x32xf32> to vector<8x32xbf16>
    "tpu.trace_start"() <{level = 10 : i32, message = "mk,kd->md"}> : () -> ()
    %cst_37 = arith.constant dense<0.000000e+00> : vector<32x32xf32>
    %124 = tpu.matmul %122, %123, %cst_37 {dimension_numbers = #tpu.dot_dimension_numbers<[1], [0], [0], [1], [0, 0, 1, 1], [], []>} : vector<32x8xbf16>, vector<8x32xbf16>, vector<32x32xf32> -> vector<32x32xf32>
    "tpu.trace_stop"() : () -> ()
    %125 = arith.addf %102, %124 : vector<32x32xf32>
    %126 = vector.extract_strided_slice %55 {offsets = [0, 0, 24], sizes = [2, 16, 8], strides = [1, 1, 1]} : vector<2x16x96xf32> to vector<2x16x8xf32>
    %127 = vector.extract_strided_slice %55 {offsets = [0, 0, 56], sizes = [2, 16, 8], strides = [1, 1, 1]} : vector<2x16x96xf32> to vector<2x16x8xf32>
    %128 = vector.extract_strided_slice %55 {offsets = [0, 0, 88], sizes = [2, 16, 8], strides = [1, 1, 1]} : vector<2x16x96xf32> to vector<2x16x8xf32>
    %129 = arith.truncf %126 : vector<2x16x8xf32> to vector<2x16x8xbf16>
    %130 = arith.truncf %127 : vector<2x16x8xf32> to vector<2x16x8xbf16>
    "tpu.trace_start"() <{level = 10 : i32, message = "bqd,bkd->bqk"}> : () -> ()
    %cst_38 = arith.constant dense<0.000000e+00> : vector<2x16x16xf32>
    %131 = tpu.matmul %129, %130, %cst_38 {dimension_numbers = #tpu.dot_dimension_numbers<[2], [2], [1], [1], [0, 0, 0, 1, 1, 1], [0], [0]>} : vector<2x16x8xbf16>, vector<2x16x8xbf16>, vector<2x16x16xf32> -> vector<2x16x16xf32>
    "tpu.trace_stop"() : () -> ()
    %cst_39 = arith.constant 0.353553385 : f32
    %132 = vector.broadcast %cst_39 : f32 to vector<2x16x16xf32>
    %133 = arith.mulf %131, %132 : vector<2x16x16xf32>
    %134 = math.exp %133 : vector<2x16x16xf32>
    %cst_40 = arith.constant dense<0.000000e+00> : vector<2x16xf32>
    %135 = vector.multi_reduction <add>, %134, %cst_40 [2] : vector<2x16x16xf32> to vector<2x16xf32>
    %136 = vector.shape_cast %135 : vector<2x16xf32> to vector<2x16x1xf32>
    %137 = tpu.reciprocal %136 {approx = true} : vector<2x16x1xf32> -> vector<2x16x1xf32>
    %138 = vector.broadcast %137 : vector<2x16x1xf32> to vector<2x16x16xf32>
    %139 = arith.mulf %134, %138 : vector<2x16x16xf32>
    %140 = arith.truncf %139 : vector<2x16x16xf32> to vector<2x16x16xbf16>
    %141 = arith.truncf %128 : vector<2x16x8xf32> to vector<2x16x8xbf16>
    "tpu.trace_start"() <{level = 10 : i32, message = "bqk,bkd->bqd"}> : () -> ()
    %cst_41 = arith.constant dense<0.000000e+00> : vector<2x16x8xf32>
    %142 = tpu.matmul %140, %141, %cst_41 {dimension_numbers = #tpu.dot_dimension_numbers<[2], [1], [1], [2], [0, 0, 0, 1, 1, 2], [0], [0]>} : vector<2x16x16xbf16>, vector<2x16x8xbf16>, vector<2x16x8xf32> -> vector<2x16x8xf32>
    "tpu.trace_stop"() : () -> ()
    %143 = vector.shape_cast %142 : vector<2x16x8xf32> to vector<32x8xf32>
    %144 = vector.extract_strided_slice %25 {offsets = [24, 0], sizes = [8, 32], strides = [1, 1]} : vector<32x32xf32> to vector<8x32xf32>
    %145 = arith.truncf %143 : vector<32x8xf32> to vector<32x8xbf16>
    %146 = arith.truncf %144 : vector<8x32xf32> to vector<8x32xbf16>
    "tpu.trace_start"() <{level = 10 : i32, message = "mk,kd->md"}> : () -> ()
    %cst_42 = arith.constant dense<0.000000e+00> : vector<32x32xf32>
    %147 = tpu.matmul %145, %146, %cst_42 {dimension_numbers = #tpu.dot_dimension_numbers<[1], [0], [0], [1], [0, 0, 1, 1], [], []>} : vector<32x8xbf16>, vector<8x32xbf16>, vector<32x32xf32> -> vector<32x32xf32>
    "tpu.trace_stop"() : () -> ()
    %148 = arith.addf %125, %147 : vector<32x32xf32>
    %149 = vector.broadcast %19 : vector<1x32xf32> to vector<32x32xf32>
    %150 = arith.addf %148, %149 : vector<32x32xf32>
    %151 = arith.addf %150, %13 : vector<32x32xf32>
    %cst_43 = arith.constant dense<0.000000e+00> : vector<32xf32>
    %152 = vector.multi_reduction <add>, %151, %cst_43 [1] : vector<32x32xf32> to vector<32xf32>
    %153 = vector.shape_cast %152 : vector<32xf32> to vector<32x1xf32>
    %cst_44 = arith.constant 3.200000e+01 : f32
    %154 = vector.broadcast %cst_44 : f32 to vector<32x1xf32>
    %155 = arith.divf %153, %154 : vector<32x1xf32>
    %156 = vector.broadcast %155 : vector<32x1xf32> to vector<32x32xf32>
    %157 = arith.subf %151, %156 : vector<32x32xf32>
    %158 = arith.mulf %157, %157 : vector<32x32xf32>
    %cst_45 = arith.constant dense<0.000000e+00> : vector<32xf32>
    %159 = vector.multi_reduction <add>, %158, %cst_45 [1] : vector<32x32xf32> to vector<32xf32>
    %160 = vector.shape_cast %159 : vector<32xf32> to vector<32x1xf32>
    %cst_46 = arith.constant 3.200000e+01 : f32
    %161 = vector.broadcast %cst_46 : f32 to vector<32x1xf32>
    %162 = arith.divf %160, %161 : vector<32x1xf32>
    %163 = vector.broadcast %155 : vector<32x1xf32> to vector<32x32xf32>
    %164 = arith.subf %151, %163 : vector<32x32xf32>
    %cst_47 = arith.constant 9.99999996E-13 : f32
    %165 = vector.broadcast %cst_47 : f32 to vector<32x1xf32>
    %166 = arith.addf %162, %165 : vector<32x1xf32>
    %167 = math.rsqrt %166 : vector<32x1xf32>
    %168 = vector.broadcast %167 : vector<32x1xf32> to vector<32x32xf32>
    %169 = arith.mulf %164, %168 : vector<32x32xf32>
    %170 = vector.broadcast %20 : vector<1x32xf32> to vector<32x32xf32>
    %171 = arith.mulf %169, %170 : vector<32x32xf32>
    %172 = vector.broadcast %21 : vector<1x32xf32> to vector<32x32xf32>
    %173 = arith.addf %171, %172 : vector<32x32xf32>
    %c0_48 = arith.constant 0 : index
    %c0_49 = arith.constant 0 : index
    %c0_50 = arith.constant 0 : index
    %174 = vector.load %arg7[%c0_48, %c0_49, %c0_50] : memref<2x32x64xf32, #tpu.memory_space<vmem>>, vector<1x32x64xf32>
    %175 = vector.shape_cast %174 : vector<1x32x64xf32> to vector<32x64xf32>
    %176 = arith.truncf %151 : vector<32x32xf32> to vector<32x32xbf16>
    %177 = arith.truncf %175 : vector<32x64xf32> to vector<32x64xbf16>
    "tpu.trace_start"() <{level = 10 : i32, message = "md,di->mi"}> : () -> ()
    %cst_51 = arith.constant dense<0.000000e+00> : vector<32x64xf32>
    %178 = tpu.matmul %176, %177, %cst_51 {dimension_numbers = #tpu.dot_dimension_numbers<[1], [0], [0], [1], [0, 0, 1, 1], [], []>} : vector<32x32xbf16>, vector<32x64xbf16>, vector<32x64xf32> -> vector<32x64xf32>
    "tpu.trace_stop"() : () -> ()
    %179 = vector.broadcast %22 : vector<1x64xf32> to vector<32x64xf32>
    %180 = arith.addf %178, %179 : vector<32x64xf32>
    %cst_52 = arith.constant 5.000000e-01 : f32
    %181 = vector.broadcast %cst_52 : f32 to vector<32x64xf32>
    %182 = arith.mulf %181, %180 : vector<32x64xf32>
    %183 = arith.mulf %180, %180 : vector<32x64xf32>
    %184 = arith.mulf %180, %183 : vector<32x64xf32>
    %cst_53 = arith.constant 4.471500e-02 : f32
    %185 = vector.broadcast %cst_53 : f32 to vector<32x64xf32>
    %186 = arith.mulf %185, %184 : vector<32x64xf32>
    %187 = arith.addf %180, %186 : vector<32x64xf32>
    %cst_54 = arith.constant 0.797884583 : f32
    %188 = vector.broadcast %cst_54 : f32 to vector<32x64xf32>
    %189 = arith.mulf %188, %187 : vector<32x64xf32>
    %190 = math.tanh %189 : vector<32x64xf32>
    %cst_55 = arith.constant 1.000000e+00 : f32
    %191 = vector.broadcast %cst_55 : f32 to vector<32x64xf32>
    %192 = arith.addf %191, %190 : vector<32x64xf32>
    %193 = arith.mulf %182, %192 : vector<32x64xf32>
    %c0_56 = arith.constant 0 : index
    %c0_57 = arith.constant 0 : index
    %c0_58 = arith.constant 0 : index
    %194 = vector.load %arg8[%c0_56, %c0_57, %c0_58] : memref<2x64x32xf32, #tpu.memory_space<vmem>>, vector<1x64x32xf32>
    %195 = vector.shape_cast %194 : vector<1x64x32xf32> to vector<64x32xf32>
    %196 = arith.truncf %193 : vector<32x64xf32> to vector<32x64xbf16>
    %197 = arith.truncf %195 : vector<64x32xf32> to vector<64x32xbf16>
    "tpu.trace_start"() <{level = 10 : i32, message = "mi,id->md"}> : () -> ()
    %cst_59 = arith.constant dense<0.000000e+00> : vector<32x32xf32>
    %198 = tpu.matmul %196, %197, %cst_59 {dimension_numbers = #tpu.dot_dimension_numbers<[1], [0], [0], [1], [0, 0, 1, 1], [], []>} : vector<32x64xbf16>, vector<64x32xbf16>, vector<32x32xf32> -> vector<32x32xf32>
    "tpu.trace_stop"() : () -> ()
    %199 = vector.broadcast %23 : vector<1x32xf32> to vector<32x32xf32>
    %200 = arith.addf %198, %199 : vector<32x32xf32>
    %201 = arith.addf %200, %173 : vector<32x32xf32>
    %c1 = arith.constant 1 : index
    %c0_60 = arith.constant 0 : index
    %c0_61 = arith.constant 0 : index
    %202 = vector.load %arg9[%c1, %c0_60, %c0_61] : memref<2x8x128xf32, #tpu.memory_space<vmem>>, vector<1x8x128xf32>
    %203 = vector.shape_cast %202 : vector<1x8x128xf32> to vector<8x128xf32>
    %204 = vector.extract_strided_slice %203 {offsets = [0, 0], sizes = [1, 32], strides = [1, 1]} : vector<8x128xf32> to vector<1x32xf32>
    %205 = vector.extract_strided_slice %203 {offsets = [1, 0], sizes = [1, 32], strides = [1, 1]} : vector<8x128xf32> to vector<1x32xf32>
    %206 = vector.extract_strided_slice %203 {offsets = [2, 0], sizes = [1, 96], strides = [1, 1]} : vector<8x128xf32> to vector<1x96xf32>
    %207 = vector.extract_strided_slice %203 {offsets = [3, 0], sizes = [1, 32], strides = [1, 1]} : vector<8x128xf32> to vector<1x32xf32>
    %208 = vector.extract_strided_slice %203 {offsets = [4, 0], sizes = [1, 32], strides = [1, 1]} : vector<8x128xf32> to vector<1x32xf32>
    %209 = vector.extract_strided_slice %203 {offsets = [5, 0], sizes = [1, 32], strides = [1, 1]} : vector<8x128xf32> to vector<1x32xf32>
    %210 = vector.extract_strided_slice %203 {offsets = [6, 0], sizes = [1, 64], strides = [1, 1]} : vector<8x128xf32> to vector<1x64xf32>
    %211 = vector.extract_strided_slice %203 {offsets = [7, 0], sizes = [1, 32], strides = [1, 1]} : vector<8x128xf32> to vector<1x32xf32>
    %c1_62 = arith.constant 1 : index
    %c0_63 = arith.constant 0 : index
    %c0_64 = arith.constant 0 : index
    %212 = vector.load %arg6[%c1_62, %c0_63, %c0_64] : memref<2x32x32xf32, #tpu.memory_space<vmem>>, vector<1x32x32xf32>
    %213 = vector.shape_cast %212 : vector<1x32x32xf32> to vector<32x32xf32>
    %cst_65 = arith.constant dense<0.000000e+00> : vector<32xf32>
    %214 = vector.multi_reduction <add>, %201, %cst_65 [1] : vector<32x32xf32> to vector<32xf32>
    %215 = vector.shape_cast %214 : vector<32xf32> to vector<32x1xf32>
    %cst_66 = arith.constant 3.200000e+01 : f32
    %216 = vector.broadcast %cst_66 : f32 to vector<32x1xf32>
    %217 = arith.divf %215, %216 : vector<32x1xf32>
    %218 = vector.broadcast %217 : vector<32x1xf32> to vector<32x32xf32>
    %219 = arith.subf %201, %218 : vector<32x32xf32>
    %220 = arith.mulf %219, %219 : vector<32x32xf32>
    %cst_67 = arith.constant dense<0.000000e+00> : vector<32xf32>
    %221 = vector.multi_reduction <add>, %220, %cst_67 [1] : vector<32x32xf32> to vector<32xf32>
    %222 = vector.shape_cast %221 : vector<32xf32> to vector<32x1xf32>
    %cst_68 = arith.constant 3.200000e+01 : f32
    %223 = vector.broadcast %cst_68 : f32 to vector<32x1xf32>
    %224 = arith.divf %222, %223 : vector<32x1xf32>
    %225 = vector.broadcast %217 : vector<32x1xf32> to vector<32x32xf32>
    %226 = arith.subf %201, %225 : vector<32x32xf32>
    %cst_69 = arith.constant 9.99999996E-13 : f32
    %227 = vector.broadcast %cst_69 : f32 to vector<32x1xf32>
    %228 = arith.addf %224, %227 : vector<32x1xf32>
    %229 = math.rsqrt %228 : vector<32x1xf32>
    %230 = vector.broadcast %229 : vector<32x1xf32> to vector<32x32xf32>
    %231 = arith.mulf %226, %230 : vector<32x32xf32>
    %232 = vector.broadcast %204 : vector<1x32xf32> to vector<32x32xf32>
    %233 = arith.mulf %231, %232 : vector<32x32xf32>
    %234 = vector.broadcast %205 : vector<1x32xf32> to vector<32x32xf32>
    %235 = arith.addf %233, %234 : vector<32x32xf32>
    %c1_70 = arith.constant 1 : index
    %c0_71 = arith.constant 0 : index
    %c0_72 = arith.constant 0 : index
    %236 = vector.load %arg5[%c1_70, %c0_71, %c0_72] : memref<2x32x96xf32, #tpu.memory_space<vmem>>, vector<1x32x96xf32>
    %237 = vector.shape_cast %236 : vector<1x32x96xf32> to vector<32x96xf32>
    %238 = arith.truncf %235 : vector<32x32xf32> to vector<32x32xbf16>
    %239 = arith.truncf %237 : vector<32x96xf32> to vector<32x96xbf16>
    "tpu.trace_start"() <{level = 10 : i32, message = "md,de->me"}> : () -> ()
    %cst_73 = arith.constant dense<0.000000e+00> : vector<32x96xf32>
    %240 = tpu.matmul %238, %239, %cst_73 {dimension_numbers = #tpu.dot_dimension_numbers<[1], [0], [0], [1], [0, 0, 1, 1], [], []>} : vector<32x32xbf16>, vector<32x96xbf16>, vector<32x96xf32> -> vector<32x96xf32>
    "tpu.trace_stop"() : () -> ()
    %241 = vector.broadcast %206 : vector<1x96xf32> to vector<32x96xf32>
    %242 = arith.addf %240, %241 : vector<32x96xf32>
    %243 = vector.shape_cast %242 : vector<32x96xf32> to vector<2x16x96xf32>
    %cst_74 = arith.constant 0.000000e+00 : f32
    %244 = vector.broadcast %cst_74 : f32 to vector<32x32xf32>
    %245 = vector.extract_strided_slice %243 {offsets = [0, 0, 0], sizes = [2, 16, 8], strides = [1, 1, 1]} : vector<2x16x96xf32> to vector<2x16x8xf32>
    %246 = vector.extract_strided_slice %243 {offsets = [0, 0, 32], sizes = [2, 16, 8], strides = [1, 1, 1]} : vector<2x16x96xf32> to vector<2x16x8xf32>
    %247 = vector.extract_strided_slice %243 {offsets = [0, 0, 64], sizes = [2, 16, 8], strides = [1, 1, 1]} : vector<2x16x96xf32> to vector<2x16x8xf32>
    %248 = arith.truncf %245 : vector<2x16x8xf32> to vector<2x16x8xbf16>
    %249 = arith.truncf %246 : vector<2x16x8xf32> to vector<2x16x8xbf16>
    "tpu.trace_start"() <{level = 10 : i32, message = "bqd,bkd->bqk"}> : () -> ()
    %cst_75 = arith.constant dense<0.000000e+00> : vector<2x16x16xf32>
    %250 = tpu.matmul %248, %249, %cst_75 {dimension_numbers = #tpu.dot_dimension_numbers<[2], [2], [1], [1], [0, 0, 0, 1, 1, 1], [0], [0]>} : vector<2x16x8xbf16>, vector<2x16x8xbf16>, vector<2x16x16xf32> -> vector<2x16x16xf32>
    "tpu.trace_stop"() : () -> ()
    %cst_76 = arith.constant 0.353553385 : f32
    %251 = vector.broadcast %cst_76 : f32 to vector<2x16x16xf32>
    %252 = arith.mulf %250, %251 : vector<2x16x16xf32>
    %253 = math.exp %252 : vector<2x16x16xf32>
    %cst_77 = arith.constant dense<0.000000e+00> : vector<2x16xf32>
    %254 = vector.multi_reduction <add>, %253, %cst_77 [2] : vector<2x16x16xf32> to vector<2x16xf32>
    %255 = vector.shape_cast %254 : vector<2x16xf32> to vector<2x16x1xf32>
    %256 = tpu.reciprocal %255 {approx = true} : vector<2x16x1xf32> -> vector<2x16x1xf32>
    %257 = vector.broadcast %256 : vector<2x16x1xf32> to vector<2x16x16xf32>
    %258 = arith.mulf %253, %257 : vector<2x16x16xf32>
    %259 = arith.truncf %258 : vector<2x16x16xf32> to vector<2x16x16xbf16>
    %260 = arith.truncf %247 : vector<2x16x8xf32> to vector<2x16x8xbf16>
    "tpu.trace_start"() <{level = 10 : i32, message = "bqk,bkd->bqd"}> : () -> ()
    %cst_78 = arith.constant dense<0.000000e+00> : vector<2x16x8xf32>
    %261 = tpu.matmul %259, %260, %cst_78 {dimension_numbers = #tpu.dot_dimension_numbers<[2], [1], [1], [2], [0, 0, 0, 1, 1, 2], [0], [0]>} : vector<2x16x16xbf16>, vector<2x16x8xbf16>, vector<2x16x8xf32> -> vector<2x16x8xf32>
    "tpu.trace_stop"() : () -> ()
    %262 = vector.shape_cast %261 : vector<2x16x8xf32> to vector<32x8xf32>
    %263 = vector.extract_strided_slice %213 {offsets = [0, 0], sizes = [8, 32], strides = [1, 1]} : vector<32x32xf32> to vector<8x32xf32>
    %264 = arith.truncf %262 : vector<32x8xf32> to vector<32x8xbf16>
    %265 = arith.truncf %263 : vector<8x32xf32> to vector<8x32xbf16>
    "tpu.trace_start"() <{level = 10 : i32, message = "mk,kd->md"}> : () -> ()
    %cst_79 = arith.constant dense<0.000000e+00> : vector<32x32xf32>
    %266 = tpu.matmul %264, %265, %cst_79 {dimension_numbers = #tpu.dot_dimension_numbers<[1], [0], [0], [1], [0, 0, 1, 1], [], []>} : vector<32x8xbf16>, vector<8x32xbf16>, vector<32x32xf32> -> vector<32x32xf32>
    "tpu.trace_stop"() : () -> ()
    %267 = arith.addf %244, %266 : vector<32x32xf32>
    %268 = vector.extract_strided_slice %243 {offsets = [0, 0, 8], sizes = [2, 16, 8], strides = [1, 1, 1]} : vector<2x16x96xf32> to vector<2x16x8xf32>
    %269 = vector.extract_strided_slice %243 {offsets = [0, 0, 40], sizes = [2, 16, 8], strides = [1, 1, 1]} : vector<2x16x96xf32> to vector<2x16x8xf32>
    %270 = vector.extract_strided_slice %243 {offsets = [0, 0, 72], sizes = [2, 16, 8], strides = [1, 1, 1]} : vector<2x16x96xf32> to vector<2x16x8xf32>
    %271 = arith.truncf %268 : vector<2x16x8xf32> to vector<2x16x8xbf16>
    %272 = arith.truncf %269 : vector<2x16x8xf32> to vector<2x16x8xbf16>
    "tpu.trace_start"() <{level = 10 : i32, message = "bqd,bkd->bqk"}> : () -> ()
    %cst_80 = arith.constant dense<0.000000e+00> : vector<2x16x16xf32>
    %273 = tpu.matmul %271, %272, %cst_80 {dimension_numbers = #tpu.dot_dimension_numbers<[2], [2], [1], [1], [0, 0, 0, 1, 1, 1], [0], [0]>} : vector<2x16x8xbf16>, vector<2x16x8xbf16>, vector<2x16x16xf32> -> vector<2x16x16xf32>
    "tpu.trace_stop"() : () -> ()
    %cst_81 = arith.constant 0.353553385 : f32
    %274 = vector.broadcast %cst_81 : f32 to vector<2x16x16xf32>
    %275 = arith.mulf %273, %274 : vector<2x16x16xf32>
    %276 = math.exp %275 : vector<2x16x16xf32>
    %cst_82 = arith.constant dense<0.000000e+00> : vector<2x16xf32>
    %277 = vector.multi_reduction <add>, %276, %cst_82 [2] : vector<2x16x16xf32> to vector<2x16xf32>
    %278 = vector.shape_cast %277 : vector<2x16xf32> to vector<2x16x1xf32>
    %279 = tpu.reciprocal %278 {approx = true} : vector<2x16x1xf32> -> vector<2x16x1xf32>
    %280 = vector.broadcast %279 : vector<2x16x1xf32> to vector<2x16x16xf32>
    %281 = arith.mulf %276, %280 : vector<2x16x16xf32>
    %282 = arith.truncf %281 : vector<2x16x16xf32> to vector<2x16x16xbf16>
    %283 = arith.truncf %270 : vector<2x16x8xf32> to vector<2x16x8xbf16>
    "tpu.trace_start"() <{level = 10 : i32, message = "bqk,bkd->bqd"}> : () -> ()
    %cst_83 = arith.constant dense<0.000000e+00> : vector<2x16x8xf32>
    %284 = tpu.matmul %282, %283, %cst_83 {dimension_numbers = #tpu.dot_dimension_numbers<[2], [1], [1], [2], [0, 0, 0, 1, 1, 2], [0], [0]>} : vector<2x16x16xbf16>, vector<2x16x8xbf16>, vector<2x16x8xf32> -> vector<2x16x8xf32>
    "tpu.trace_stop"() : () -> ()
    %285 = vector.shape_cast %284 : vector<2x16x8xf32> to vector<32x8xf32>
    %286 = vector.extract_strided_slice %213 {offsets = [8, 0], sizes = [8, 32], strides = [1, 1]} : vector<32x32xf32> to vector<8x32xf32>
    %287 = arith.truncf %285 : vector<32x8xf32> to vector<32x8xbf16>
    %288 = arith.truncf %286 : vector<8x32xf32> to vector<8x32xbf16>
    "tpu.trace_start"() <{level = 10 : i32, message = "mk,kd->md"}> : () -> ()
    %cst_84 = arith.constant dense<0.000000e+00> : vector<32x32xf32>
    %289 = tpu.matmul %287, %288, %cst_84 {dimension_numbers = #tpu.dot_dimension_numbers<[1], [0], [0], [1], [0, 0, 1, 1], [], []>} : vector<32x8xbf16>, vector<8x32xbf16>, vector<32x32xf32> -> vector<32x32xf32>
    "tpu.trace_stop"() : () -> ()
    %290 = arith.addf %267, %289 : vector<32x32xf32>
    %291 = vector.extract_strided_slice %243 {offsets = [0, 0, 16], sizes = [2, 16, 8], strides = [1, 1, 1]} : vector<2x16x96xf32> to vector<2x16x8xf32>
    %292 = vector.extract_strided_slice %243 {offsets = [0, 0, 48], sizes = [2, 16, 8], strides = [1, 1, 1]} : vector<2x16x96xf32> to vector<2x16x8xf32>
    %293 = vector.extract_strided_slice %243 {offsets = [0, 0, 80], sizes = [2, 16, 8], strides = [1, 1, 1]} : vector<2x16x96xf32> to vector<2x16x8xf32>
    %294 = arith.truncf %291 : vector<2x16x8xf32> to vector<2x16x8xbf16>
    %295 = arith.truncf %292 : vector<2x16x8xf32> to vector<2x16x8xbf16>
    "tpu.trace_start"() <{level = 10 : i32, message = "bqd,bkd->bqk"}> : () -> ()
    %cst_85 = arith.constant dense<0.000000e+00> : vector<2x16x16xf32>
    %296 = tpu.matmul %294, %295, %cst_85 {dimension_numbers = #tpu.dot_dimension_numbers<[2], [2], [1], [1], [0, 0, 0, 1, 1, 1], [0], [0]>} : vector<2x16x8xbf16>, vector<2x16x8xbf16>, vector<2x16x16xf32> -> vector<2x16x16xf32>
    "tpu.trace_stop"() : () -> ()
    %cst_86 = arith.constant 0.353553385 : f32
    %297 = vector.broadcast %cst_86 : f32 to vector<2x16x16xf32>
    %298 = arith.mulf %296, %297 : vector<2x16x16xf32>
    %299 = math.exp %298 : vector<2x16x16xf32>
    %cst_87 = arith.constant dense<0.000000e+00> : vector<2x16xf32>
    %300 = vector.multi_reduction <add>, %299, %cst_87 [2] : vector<2x16x16xf32> to vector<2x16xf32>
    %301 = vector.shape_cast %300 : vector<2x16xf32> to vector<2x16x1xf32>
    %302 = tpu.reciprocal %301 {approx = true} : vector<2x16x1xf32> -> vector<2x16x1xf32>
    %303 = vector.broadcast %302 : vector<2x16x1xf32> to vector<2x16x16xf32>
    %304 = arith.mulf %299, %303 : vector<2x16x16xf32>
    %305 = arith.truncf %304 : vector<2x16x16xf32> to vector<2x16x16xbf16>
    %306 = arith.truncf %293 : vector<2x16x8xf32> to vector<2x16x8xbf16>
    "tpu.trace_start"() <{level = 10 : i32, message = "bqk,bkd->bqd"}> : () -> ()
    %cst_88 = arith.constant dense<0.000000e+00> : vector<2x16x8xf32>
    %307 = tpu.matmul %305, %306, %cst_88 {dimension_numbers = #tpu.dot_dimension_numbers<[2], [1], [1], [2], [0, 0, 0, 1, 1, 2], [0], [0]>} : vector<2x16x16xbf16>, vector<2x16x8xbf16>, vector<2x16x8xf32> -> vector<2x16x8xf32>
    "tpu.trace_stop"() : () -> ()
    %308 = vector.shape_cast %307 : vector<2x16x8xf32> to vector<32x8xf32>
    %309 = vector.extract_strided_slice %213 {offsets = [16, 0], sizes = [8, 32], strides = [1, 1]} : vector<32x32xf32> to vector<8x32xf32>
    %310 = arith.truncf %308 : vector<32x8xf32> to vector<32x8xbf16>
    %311 = arith.truncf %309 : vector<8x32xf32> to vector<8x32xbf16>
    "tpu.trace_start"() <{level = 10 : i32, message = "mk,kd->md"}> : () -> ()
    %cst_89 = arith.constant dense<0.000000e+00> : vector<32x32xf32>
    %312 = tpu.matmul %310, %311, %cst_89 {dimension_numbers = #tpu.dot_dimension_numbers<[1], [0], [0], [1], [0, 0, 1, 1], [], []>} : vector<32x8xbf16>, vector<8x32xbf16>, vector<32x32xf32> -> vector<32x32xf32>
    "tpu.trace_stop"() : () -> ()
    %313 = arith.addf %290, %312 : vector<32x32xf32>
    %314 = vector.extract_strided_slice %243 {offsets = [0, 0, 24], sizes = [2, 16, 8], strides = [1, 1, 1]} : vector<2x16x96xf32> to vector<2x16x8xf32>
    %315 = vector.extract_strided_slice %243 {offsets = [0, 0, 56], sizes = [2, 16, 8], strides = [1, 1, 1]} : vector<2x16x96xf32> to vector<2x16x8xf32>
    %316 = vector.extract_strided_slice %243 {offsets = [0, 0, 88], sizes = [2, 16, 8], strides = [1, 1, 1]} : vector<2x16x96xf32> to vector<2x16x8xf32>
    %317 = arith.truncf %314 : vector<2x16x8xf32> to vector<2x16x8xbf16>
    %318 = arith.truncf %315 : vector<2x16x8xf32> to vector<2x16x8xbf16>
    "tpu.trace_start"() <{level = 10 : i32, message = "bqd,bkd->bqk"}> : () -> ()
    %cst_90 = arith.constant dense<0.000000e+00> : vector<2x16x16xf32>
    %319 = tpu.matmul %317, %318, %cst_90 {dimension_numbers = #tpu.dot_dimension_numbers<[2], [2], [1], [1], [0, 0, 0, 1, 1, 1], [0], [0]>} : vector<2x16x8xbf16>, vector<2x16x8xbf16>, vector<2x16x16xf32> -> vector<2x16x16xf32>
    "tpu.trace_stop"() : () -> ()
    %cst_91 = arith.constant 0.353553385 : f32
    %320 = vector.broadcast %cst_91 : f32 to vector<2x16x16xf32>
    %321 = arith.mulf %319, %320 : vector<2x16x16xf32>
    %322 = math.exp %321 : vector<2x16x16xf32>
    %cst_92 = arith.constant dense<0.000000e+00> : vector<2x16xf32>
    %323 = vector.multi_reduction <add>, %322, %cst_92 [2] : vector<2x16x16xf32> to vector<2x16xf32>
    %324 = vector.shape_cast %323 : vector<2x16xf32> to vector<2x16x1xf32>
    %325 = tpu.reciprocal %324 {approx = true} : vector<2x16x1xf32> -> vector<2x16x1xf32>
    %326 = vector.broadcast %325 : vector<2x16x1xf32> to vector<2x16x16xf32>
    %327 = arith.mulf %322, %326 : vector<2x16x16xf32>
    %328 = arith.truncf %327 : vector<2x16x16xf32> to vector<2x16x16xbf16>
    %329 = arith.truncf %316 : vector<2x16x8xf32> to vector<2x16x8xbf16>
    "tpu.trace_start"() <{level = 10 : i32, message = "bqk,bkd->bqd"}> : () -> ()
    %cst_93 = arith.constant dense<0.000000e+00> : vector<2x16x8xf32>
    %330 = tpu.matmul %328, %329, %cst_93 {dimension_numbers = #tpu.dot_dimension_numbers<[2], [1], [1], [2], [0, 0, 0, 1, 1, 2], [0], [0]>} : vector<2x16x16xbf16>, vector<2x16x8xbf16>, vector<2x16x8xf32> -> vector<2x16x8xf32>
    "tpu.trace_stop"() : () -> ()
    %331 = vector.shape_cast %330 : vector<2x16x8xf32> to vector<32x8xf32>
    %332 = vector.extract_strided_slice %213 {offsets = [24, 0], sizes = [8, 32], strides = [1, 1]} : vector<32x32xf32> to vector<8x32xf32>
    %333 = arith.truncf %331 : vector<32x8xf32> to vector<32x8xbf16>
    %334 = arith.truncf %332 : vector<8x32xf32> to vector<8x32xbf16>
    "tpu.trace_start"() <{level = 10 : i32, message = "mk,kd->md"}> : () -> ()
    %cst_94 = arith.constant dense<0.000000e+00> : vector<32x32xf32>
    %335 = tpu.matmul %333, %334, %cst_94 {dimension_numbers = #tpu.dot_dimension_numbers<[1], [0], [0], [1], [0, 0, 1, 1], [], []>} : vector<32x8xbf16>, vector<8x32xbf16>, vector<32x32xf32> -> vector<32x32xf32>
    "tpu.trace_stop"() : () -> ()
    %336 = arith.addf %313, %335 : vector<32x32xf32>
    %337 = vector.broadcast %207 : vector<1x32xf32> to vector<32x32xf32>
    %338 = arith.addf %336, %337 : vector<32x32xf32>
    %339 = arith.addf %338, %201 : vector<32x32xf32>
    %cst_95 = arith.constant dense<0.000000e+00> : vector<32xf32>
    %340 = vector.multi_reduction <add>, %339, %cst_95 [1] : vector<32x32xf32> to vector<32xf32>
    %341 = vector.shape_cast %340 : vector<32xf32> to vector<32x1xf32>
    %cst_96 = arith.constant 3.200000e+01 : f32
    %342 = vector.broadcast %cst_96 : f32 to vector<32x1xf32>
    %343 = arith.divf %341, %342 : vector<32x1xf32>
    %344 = vector.broadcast %343 : vector<32x1xf32> to vector<32x32xf32>
    %345 = arith.subf %339, %344 : vector<32x32xf32>
    %346 = arith.mulf %345, %345 : vector<32x32xf32>
    %cst_97 = arith.constant dense<0.000000e+00> : vector<32xf32>
    %347 = vector.multi_reduction <add>, %346, %cst_97 [1] : vector<32x32xf32> to vector<32xf32>
    %348 = vector.shape_cast %347 : vector<32xf32> to vector<32x1xf32>
    %cst_98 = arith.constant 3.200000e+01 : f32
    %349 = vector.broadcast %cst_98 : f32 to vector<32x1xf32>
    %350 = arith.divf %348, %349 : vector<32x1xf32>
    %351 = vector.broadcast %343 : vector<32x1xf32> to vector<32x32xf32>
    %352 = arith.subf %339, %351 : vector<32x32xf32>
    %cst_99 = arith.constant 9.99999996E-13 : f32
    %353 = vector.broadcast %cst_99 : f32 to vector<32x1xf32>
    %354 = arith.addf %350, %353 : vector<32x1xf32>
    %355 = math.rsqrt %354 : vector<32x1xf32>
    %356 = vector.broadcast %355 : vector<32x1xf32> to vector<32x32xf32>
    %357 = arith.mulf %352, %356 : vector<32x32xf32>
    %358 = vector.broadcast %208 : vector<1x32xf32> to vector<32x32xf32>
    %359 = arith.mulf %357, %358 : vector<32x32xf32>
    %360 = vector.broadcast %209 : vector<1x32xf32> to vector<32x32xf32>
    %361 = arith.addf %359, %360 : vector<32x32xf32>
    %c1_100 = arith.constant 1 : index
    %c0_101 = arith.constant 0 : index
    %c0_102 = arith.constant 0 : index
    %362 = vector.load %arg7[%c1_100, %c0_101, %c0_102] : memref<2x32x64xf32, #tpu.memory_space<vmem>>, vector<1x32x64xf32>
    %363 = vector.shape_cast %362 : vector<1x32x64xf32> to vector<32x64xf32>
    %364 = arith.truncf %339 : vector<32x32xf32> to vector<32x32xbf16>
    %365 = arith.truncf %363 : vector<32x64xf32> to vector<32x64xbf16>
    "tpu.trace_start"() <{level = 10 : i32, message = "md,di->mi"}> : () -> ()
    %cst_103 = arith.constant dense<0.000000e+00> : vector<32x64xf32>
    %366 = tpu.matmul %364, %365, %cst_103 {dimension_numbers = #tpu.dot_dimension_numbers<[1], [0], [0], [1], [0, 0, 1, 1], [], []>} : vector<32x32xbf16>, vector<32x64xbf16>, vector<32x64xf32> -> vector<32x64xf32>
    "tpu.trace_stop"() : () -> ()
    %367 = vector.broadcast %210 : vector<1x64xf32> to vector<32x64xf32>
    %368 = arith.addf %366, %367 : vector<32x64xf32>
    %cst_104 = arith.constant 5.000000e-01 : f32
    %369 = vector.broadcast %cst_104 : f32 to vector<32x64xf32>
    %370 = arith.mulf %369, %368 : vector<32x64xf32>
    %371 = arith.mulf %368, %368 : vector<32x64xf32>
    %372 = arith.mulf %368, %371 : vector<32x64xf32>
    %cst_105 = arith.constant 4.471500e-02 : f32
    %373 = vector.broadcast %cst_105 : f32 to vector<32x64xf32>
    %374 = arith.mulf %373, %372 : vector<32x64xf32>
    %375 = arith.addf %368, %374 : vector<32x64xf32>
    %cst_106 = arith.constant 0.797884583 : f32
    %376 = vector.broadcast %cst_106 : f32 to vector<32x64xf32>
    %377 = arith.mulf %376, %375 : vector<32x64xf32>
    %378 = math.tanh %377 : vector<32x64xf32>
    %cst_107 = arith.constant 1.000000e+00 : f32
    %379 = vector.broadcast %cst_107 : f32 to vector<32x64xf32>
    %380 = arith.addf %379, %378 : vector<32x64xf32>
    %381 = arith.mulf %370, %380 : vector<32x64xf32>
    %c1_108 = arith.constant 1 : index
    %c0_109 = arith.constant 0 : index
    %c0_110 = arith.constant 0 : index
    %382 = vector.load %arg8[%c1_108, %c0_109, %c0_110] : memref<2x64x32xf32, #tpu.memory_space<vmem>>, vector<1x64x32xf32>
    %383 = vector.shape_cast %382 : vector<1x64x32xf32> to vector<64x32xf32>
    %384 = arith.truncf %381 : vector<32x64xf32> to vector<32x64xbf16>
    %385 = arith.truncf %383 : vector<64x32xf32> to vector<64x32xbf16>
    "tpu.trace_start"() <{level = 10 : i32, message = "mi,id->md"}> : () -> ()
    %cst_111 = arith.constant dense<0.000000e+00> : vector<32x32xf32>
    %386 = tpu.matmul %384, %385, %cst_111 {dimension_numbers = #tpu.dot_dimension_numbers<[1], [0], [0], [1], [0, 0, 1, 1], [], []>} : vector<32x64xbf16>, vector<64x32xbf16>, vector<32x32xf32> -> vector<32x32xf32>
    "tpu.trace_stop"() : () -> ()
    %387 = vector.broadcast %211 : vector<1x32xf32> to vector<32x32xf32>
    %388 = arith.addf %386, %387 : vector<32x32xf32>
    %389 = arith.addf %388, %361 : vector<32x32xf32>
    %c0_112 = arith.constant 0 : index
    %c0_113 = arith.constant 0 : index
    %390 = vector.load %arg10[%c0_112, %c0_113] : memref<2x32xf32, #tpu.memory_space<vmem>>, vector<2x32xf32>
    %391 = vector.extract_strided_slice %390 {offsets = [0, 0], sizes = [1, 32], strides = [1, 1]} : vector<2x32xf32> to vector<1x32xf32>
    %392 = vector.extract_strided_slice %390 {offsets = [1, 0], sizes = [1, 32], strides = [1, 1]} : vector<2x32xf32> to vector<1x32xf32>
    %cst_114 = arith.constant dense<0.000000e+00> : vector<32xf32>
    %393 = vector.multi_reduction <add>, %389, %cst_114 [1] : vector<32x32xf32> to vector<32xf32>
    %394 = vector.shape_cast %393 : vector<32xf32> to vector<32x1xf32>
    %cst_115 = arith.constant 3.200000e+01 : f32
    %395 = vector.broadcast %cst_115 : f32 to vector<32x1xf32>
    %396 = arith.divf %394, %395 : vector<32x1xf32>
    %397 = vector.broadcast %396 : vector<32x1xf32> to vector<32x32xf32>
    %398 = arith.subf %389, %397 : vector<32x32xf32>
    %399 = arith.mulf %398, %398 : vector<32x32xf32>
    %cst_116 = arith.constant dense<0.000000e+00> : vector<32xf32>
    %400 = vector.multi_reduction <add>, %399, %cst_116 [1] : vector<32x32xf32> to vector<32xf32>
    %401 = vector.shape_cast %400 : vector<32xf32> to vector<32x1xf32>
    %cst_117 = arith.constant 3.200000e+01 : f32
    %402 = vector.broadcast %cst_117 : f32 to vector<32x1xf32>
    %403 = arith.divf %401, %402 : vector<32x1xf32>
    %404 = vector.broadcast %396 : vector<32x1xf32> to vector<32x32xf32>
    %405 = arith.subf %389, %404 : vector<32x32xf32>
    %cst_118 = arith.constant 9.99999996E-13 : f32
    %406 = vector.broadcast %cst_118 : f32 to vector<32x1xf32>
    %407 = arith.addf %403, %406 : vector<32x1xf32>
    %408 = math.rsqrt %407 : vector<32x1xf32>
    %409 = vector.broadcast %408 : vector<32x1xf32> to vector<32x32xf32>
    %410 = arith.mulf %405, %409 : vector<32x32xf32>
    %411 = vector.broadcast %391 : vector<1x32xf32> to vector<32x32xf32>
    %412 = arith.mulf %410, %411 : vector<32x32xf32>
    %413 = vector.broadcast %392 : vector<1x32xf32> to vector<32x32xf32>
    %414 = arith.addf %412, %413 : vector<32x32xf32>
    %c0_119 = arith.constant 0 : index
    %c0_120 = arith.constant 0 : index
    %415 = vector.load %arg11[%c0_119, %c0_120] : memref<32x32xf32, #tpu.memory_space<vmem>>, vector<32x32xf32>
    tpu.vector_store %arg11[%c0_119, %c0_120], %414 {strides = array<i32>} : memref<32x32xf32, #tpu.memory_space<vmem>>, vector<32x32xf32>,
    return
  }
  func.func @transform_0(%arg0: i32) -> (i32, i32) {
    %c0_i32 = arith.constant 0 : i32
    %c0_i32_0 = arith.constant 0 : i32
    %c0_i32_1 = arith.constant 0 : i32
    return %c0_i32, %c0_i32_0 : i32, i32
  }
  func.func @transform_1(%arg0: i32) -> (i32, i32) {
    %c0_i32 = arith.constant 0 : i32
    %c0_i32_0 = arith.constant 0 : i32
    %c0_i32_1 = arith.constant 0 : i32
    return %c0_i32, %c0_i32_0 : i32, i32
  }
  func.func @transform_2(%arg0: i32) -> (i32, i32) {
    %c0_i32 = arith.constant 0 : i32
    %c0_i32_0 = arith.constant 0 : i32
    %c0_i32_1 = arith.constant 0 : i32
    return %c0_i32, %c0_i32_0 : i32, i32
  }
  func.func @transform_3(%arg0: i32) -> (i32, i32) {
    %c0_i32 = arith.constant 0 : i32
    %c0_i32_0 = arith.constant 0 : i32
    %c0_i32_1 = arith.constant 0 : i32
    return %c0_i32, %c0_i32_0 : i32, i32
  }
  func.func @transform_4(%arg0: i32) -> (i32, i32, i32) {
    %c0_i32 = arith.constant 0 : i32
    %c0_i32_0 = arith.constant 0 : i32
    %c0_i32_1 = arith.constant 0 : i32
    %c0_i32_2 = arith.constant 0 : i32
    return %c0_i32, %c0_i32_0, %c0_i32_1 : i32, i32, i32
  }
  func.func @transform_5(%arg0: i32) -> (i32, i32, i32) {
    %c0_i32 = arith.constant 0 : i32
    %c0_i32_0 = arith.constant 0 : i32
    %c0_i32_1 = arith.constant 0 : i32
    %c0_i32_2 = arith.constant 0 : i32
    return %c0_i32, %c0_i32_0, %c0_i32_1 : i32, i32, i32
  }
  func.func @transform_6(%arg0: i32) -> (i32, i32, i32) {
    %c0_i32 = arith.constant 0 : i32
    %c0_i32_0 = arith.constant 0 : i32
    %c0_i32_1 = arith.constant 0 : i32
    %c0_i32_2 = arith.constant 0 : i32
    return %c0_i32, %c0_i32_0, %c0_i32_1 : i32, i32, i32
  }
  func.func @transform_7(%arg0: i32) -> (i32, i32, i32) {
    %c0_i32 = arith.constant 0 : i32
    %c0_i32_0 = arith.constant 0 : i32
    %c0_i32_1 = arith.constant 0 : i32
    %c0_i32_2 = arith.constant 0 : i32
    return %c0_i32, %c0_i32_0, %c0_i32_1 : i32, i32, i32
  }
  func.func @transform_8(%arg0: i32) -> (i32, i32, i32) {
    %c0_i32 = arith.constant 0 : i32
    %c0_i32_0 = arith.constant 0 : i32
    %c0_i32_1 = arith.constant 0 : i32
    %c0_i32_2 = arith.constant 0 : i32
    return %c0_i32, %c0_i32_0, %c0_i32_1 : i32, i32, i32
  }
  func.func @transform_9(%arg0: i32) -> (i32, i32) {
    %c0_i32 = arith.constant 0 : i32
    %c0_i32_0 = arith.constant 0 : i32
    %c0_i32_1 = arith.constant 0 : i32
    return %c0_i32, %c0_i32_0 : i32, i32
  }
  func.func @transform_10(%arg0: i32) -> (i32, i32) {
    %c0_i32 = arith.constant 0 : i32
    %c0_i32_0 = arith.constant 0 : i32
    %c0_i32_1 = arith.constant 0 : i32
    return %c0_i32, %c0_i32_0 : i32, i32
  }
}

</mosaic_0001>

<bundles_post_ra>
// kernel: siglip_visual_transformer.1
= control target key start
LH: loop header
LB: loop body
LE: loop exit
PB: predicated region body
PF: predicated region fallthrough
CT: control target
= control target key end

     0   :  { %vm62_vm0 = vcmask 523264   ;;  %s4947_s0 = inlined_call_operand.vmem [shape: f32[32,64], index: 0, kind: input, shape index: {}]   ;;  %s4948_s1 = inlined_call_operand.vmem [shape: f32[64,32], index: 1, kind: input, shape index: {}]   ;;  %s4949_s2 = inlined_call_operand.vmem [shape: f32[1,32], index: 2, kind: input, shape index: {}]   ;;  %s4950_s3 = inlined_call_operand.vmem [shape: f32[16,32], index: 3, kind: input, shape index: {}]   ;;  %s4951_s4 = inlined_call_operand.vmem [shape: f32[2,32,96], index: 4, kind: input, shape index: {}]   ;;  %s4952_s5 = inlined_call_operand.vmem [shape: f32[2,32,32], index: 5, kind: input, shape index: {}]   ;;  %s4953_s6 = inlined_call_operand.vmem [shape: f32[2,32,64], index: 6, kind: input, shape index: {}]   ;;  %s4954_s7 = inlined_call_operand.vmem [shape: f32[2,64,32], index: 7, kind: input, shape index: {}]   ;;  %s4955_s8 = inlined_call_operand.vmem [shape: f32[2,8,128], index: 8, kind: input, shape index: {}]   ;;  %s4956_s9 = inlined_call_operand.vmem [shape: f32[2,32], index: 9, kind: input, shape index: {}]   ;;  %s4957_s10 = inlined_call_operand.hbm [shape: f32[32,32], index: 10, kind: output, shape index: {}]  }
   0x1   :  { %v41_v0 = vld [vmem:[%s4948_s1] sm:$0xff]  ;;  %v42_v1 = vld [vmem:[%s4948_s1 + $0x8] sm:$0xff]  ;;  %v43_v2 = vld [vmem:[%s4948_s1 + $0x10] sm:$0xff] }
   0x2   :  { %v51_v3 = vpack.c.bf16 %v42_v1, %v41_v0  ;;  %v44_v4 = vld [vmem:[%s4948_s1 + $0x18] sm:$0xff]  ;;  %v45_v6 = vld [vmem:[%s4948_s1 + $0x20] sm:$0xff]  ;;  %v46_v7 = vld [vmem:[%s4948_s1 + $0x28] sm:$0xff] }
   0x3   :  { %v52_v5 = vpack.c.bf16 %v44_v4, %v43_v2  ;;  %v37_v8 = vld [vmem:[%s4947_s0] sm:$0xff]  ;;  %v38_v9 = vld [vmem:[%s4947_s0 + $0x8] sm:$0xff] }
   0x4   :  { %3573 = vmatprep.subr.bf16.mxu0 %v51_v3  ;;  %v49_v10 = vpack.c.bf16 %v38_v9, %v37_v8 }
   0x5   :  { %3574 = vmatpush3.bf16.msra.mxu0 %v51_v3 }
   0x6   :  { %15 = vsyncpa [#allocation3], 0  ;;  %3575 = vmatprep.subr.bf16.mxu0 %v52_v5  ;;  %v53_v11 = vpack.c.bf16 %v46_v7, %v45_v6  ;;  %v47_v12 = vld [vmem:[%s4948_s1 + $0x30] sm:$0xff]  ;;  %v48_v13 = vld [vmem:[%s4948_s1 + $0x38] sm:$0xff]  ;;  %3581 = vmatprep.mubr.msk.bf16.mxu0 %vm62_vm0, %v49_v10  ;;  %vm129_vm1 = vcmask 261120   ;;  %v183_v4 = vlaneseq  ;;  %vm4140_vm2 = vmmov 0  }
   0x7   :  { %v54_v14 = vpack.c.bf16 %v48_v13, %v47_v12  ;;  %v39_v15 = vld [vmem:[%s4947_s0 + $0x10] sm:$0xff]  ;;  %v40_v16 = vld [vmem:[%s4947_s0 + $0x18] sm:$0xff]  ;;  %v3367_v18 = vld [vmem:[%s4949_s2] ss:$0 sm:$0xff]  ;;  %s4141_s29 = smov 96   ;;  %vm271_vm3 = vcmask 64512  }
   0x8   :  { %v50_v17 = vpack.c.bf16 %v40_v16, %v39_v15  ;;  %v118_v20 = vld [vmem:[%s4950_s3] sm:$0xff]  ;;  %v119_v25 = vld [vmem:[%s4950_s3 + $0x8] sm:$0xff]  ;;  %v201_v59 = vld [vmem:[%s4951_s4 + $0x10] sm:$0xff]  ;;  %v4293_v10 = vshrl.u32 %v183_v4, 7  ;;  %vm381_vm4 = vcmask 130048   ;;  %s4142_s30 = smov 88  }
   0x9   :  { %3576 = vmatpush3.bf16.msra.mxu0 %v52_v5  ;;  %v199_v57 = vld [vmem:[%s4951_s4] sm:$0xff]  ;;  %v200_v58 = vld [vmem:[%s4951_s4 + $0x8] sm:$0xff]  ;;  %v202_v61 = vld [vmem:[%s4951_s4 + $0x18] sm:$0xff]  ;;  %s4143_s11 = smov 120   ;;  %s4144_s12 = smov 64   ;;  %vm740_vm5 = vcmask 1043456  }
   0xa   :  { %3577 = vmatprep.subr.bf16.mxu0 %v53_v11  ;;  %v205_v60 = vpack.c.bf16 %v200_v58, %v199_v57  ;;  %v206_v62 = vpack.c.bf16 %v202_v61, %v201_v59  ;;  %v4296_v13 = vsub.s32 0, %v4293_v10  ;;  %s4145_s13 = smov 80   ;;  %s4146_s14 = smov 56  }
   0xb   :  { %s4147_s15 = smov 112   ;;  %s4148_s16 = smov 48  }
   0xc   :  { %3585 = vmatprep.subr.bf16.mxu1 %v205_v60  ;;  %s4149_s1 = smov 72   ;;  %s4150_s17 = smov 104  }
   0xd   :  { %3578 = vmatpush3.bf16.msra.mxu0 %v53_v11  ;;  %3586 = vmatpush3.bf16.msra.mxu1 %v205_v60  ;;  %s4151_s21 = smov 40  }
   0xe   :  { %3579 = vmatprep.subr.bf16.mxu0 %v54_v14  ;;  %3587 = vmatprep.subr.bf16.mxu1 %v206_v62 }
  0x11   :  { %3580 = vmatpush3.bf16.msra.mxu0 %v54_v14  ;;  %3588 = vmatpush3.bf16.msra.mxu1 %v206_v62  ;;  %v4301_v14 = vld [vmem:[%s4955_s8] sm:$0xff] }
  0x14   :  { %3582 = vmatmul.mubr.msk.bf16.vlgmr.msra.gmra.mrb[0].mxu0 %vm62_vm0, %v50_v17  ;;  %v186_v17 = vrot.slane %v4301_v14, %v4296_v13 }
  0xe7   :  { %v3583_v19 = vpop.f32.mrb[0].mxu0 }
  0xe8   :  { %v112_v21 = vadd.f32 %v3583_v19, %v3367_v18  ;;  %v103_v22 = vpop.f32.mrb[1].mxu0 }
  0xe9   :  { %v104_v23 = vadd.f32 %v3367_v18, %v103_v22  ;;  %v3584_v24 = vpop.f32.mrb[2].mxu0 }
  0xea   :  { %v4257_v26 = vadd.f32 %v118_v20, %v112_v21  ;;  %v115_v27 = vadd.f32 %v3584_v24, %v3367_v18  ;;  %v106_v28 = vpop.f32.mrb[3].mxu0 }
  0xeb   :  { %v4259_v29 = vadd.f32 %v118_v20, %v104_v23  ;;  %v107_v30 = vadd.f32 %v3367_v18, %v106_v28  ;;  %v4306_v18 = vsub.s32 1, %v4293_v10 }
  0xec   :  { %v4261_v31 = vadd.f32 %v119_v25, %v115_v27  ;;  %v136_v32 = vsel %vm129_vm1, %v4257_v26, 0.0 }
  0xed   :  { %v4265_v33 = vadd.f32 %v119_v25, %v107_v30  ;;  %137 = vadd.xlane.f32.xlu1 %v136_v32  ;;  %v130_v34 = vsel %vm129_vm1, %v4259_v29, 0.0  ;;  %v194_v23 = vrot.slane %v4301_v14, %v4306_v18 }
  0xee   :  { %131 = vadd.xlane.f32.xlu0 %v130_v34  ;;  %v139_v35 = vsel %vm129_vm1, %v4261_v31, 0.0 }
  0xef   :  { %v133_v36 = vsel %vm129_vm1, %v4265_v33, 0.0 }
  0xf1   :  { %140 = vadd.xlane.f32.xlu1 %v139_v35 }
  0xf2   :  { %134 = vadd.xlane.f32.xlu0 %v133_v36 }
 0x17a   :  { %v138_v37 = vpop.xlane.xlu1 %137 }
 0x17b   :  { %v145_v38 = vmul.f32 0.03125, %v138_v37  ;;  %v132_v39 = vpop.xlane.xlu0 %131 }
 0x17c   :  { %v143_v40 = vmul.f32 0.03125, %v132_v39 }
 0x17d   :  { %v149_v41 = vsub.f32 %v4257_v26, %v145_v38 }
 0x17e   :  { %v147_v42 = vsub.f32 %v4259_v29, %v143_v40  ;;  %v141_v43 = vpop.xlane.xlu1 %140  ;;  %v209_v40 = vsub.s32 2, %v4293_v10 }
 0x17f   :  { %v146_v44 = vmul.f32 0.03125, %v141_v43  ;;  %v135_v45 = vpop.xlane.xlu0 %134  ;;  %v153_v51 = vmul.f32 %v149_v41, %v149_v41 }
 0x180   :  { %v144_v46 = vmul.f32 0.03125, %v135_v45  ;;  %v151_v47 = vmul.f32 %v147_v42, %v147_v42 }
 0x181   :  { %v150_v48 = vsub.f32 %v4261_v31, %v146_v44  ;;  %v161_v53 = vsel %vm129_vm1, %v153_v51, 0.0 }
 0x182   :  { %v148_v49 = vsub.f32 %v4265_v33, %v144_v46  ;;  %v155_v50 = vsel %vm129_vm1, %v151_v47, 0.0 }
 0x183   :  { %156 = vadd.xlane.f32.xlu0 %v155_v50  ;;  %v154_v55 = vmul.f32 %v150_v48, %v150_v48 }
 0x184   :  { %v152_v52 = vmul.f32 %v148_v49, %v148_v49 }
 0x185   :  { %v164_v56 = vsel %vm129_vm1, %v154_v55, 0.0 }
 0x186   :  { %v158_v54 = vsel %vm129_vm1, %v152_v52, 0.0 }
 0x187   :  { %162 = vadd.xlane.f32.xlu0 %v161_v53  ;;  %159 = vadd.xlane.f32.xlu1 %v158_v54 }
 0x18b   :  { %165 = vadd.xlane.f32.xlu1 %v164_v56 }
 0x210   :  { %v157_v63 = vpop.xlane.xlu0 %156 }
 0x211   :  { %v167_v0 = vmul.f32 0.03125, %v157_v63 }
 0x213   :  { %v171_v1 = vadd.f32 1e-12, %v167_v0 }
 0x214   :  { %v160_v2 = vpop.xlane.xlu1 %159  ;;  %v163_v3 = vpop.xlane.xlu0 %162 }
 0x215   :  { %3929 = vrsqrt.f32 %v171_v1  ;;  %v168_v5 = vmul.f32 0.03125, %v160_v2  ;;  %v169_v6 = vmul.f32 0.03125, %v163_v3 }
 0x217   :  { %v172_v7 = vadd.f32 1e-12, %v168_v5  ;;  %v173_v8 = vadd.f32 1e-12, %v169_v6 }
 0x218   :  { %v166_v9 = vpop.xlane.xlu1 %165 }
 0x219   :  { %3931 = vrsqrt.f32 %v172_v7  ;;  %v170_v11 = vmul.f32 0.03125, %v166_v9 }
 0x21a   :  { %3933 = vrsqrt.f32 %v173_v8 }
 0x21b   :  { %v174_v12 = vadd.f32 1e-12, %v170_v11 }
 0x21d   :  { %3935 = vrsqrt.f32 %v174_v12 }
 0x21f   :  { %v3930_v15 = vpop.eup %3929 }
 0x220   :  { %v179_v16 = vmul.f32 %v3930_v15, %v147_v42  ;;  %v4139_v42 = vmov 0.0  }
 0x221   :  { %3593 = vmatprep.subr.bf16.mxu1 %v4139_v42  ;;  %3611 = vmatprep.subr.bf16.mxu0 %v4139_v42 }
 0x222   :  { %v187_v22 = vmul.f32 %v186_v17, %v179_v16  ;;  %3613 = vmatprep.mubr.msk.bf16.mxu0 %vm4140_vm2, %v4139_v42 }
 0x223   :  { %v3932_v19 = vpop.eup %3931 }
 0x224   :  { %v3934_v20 = vpop.eup %3933  ;;  %v180_v21 = vmul.f32 %v3932_v19, %v148_v49  ;;  %v195_v28 = vadd.f32 %v194_v23, %v187_v22 }
 0x225   :  { %v181_v24 = vmul.f32 %v3934_v20, %v149_v41  ;;  %v210_v41 = vrot.slane %v4301_v14, %v209_v40 }
 0x226   :  { %v188_v25 = vmul.f32 %v186_v17, %v180_v21 }
 0x227   :  { %v3936_v27 = vpop.eup %3935  ;;  %v189_v34 = vmul.f32 %v186_v17, %v181_v24 }
 0x228   :  { %v196_v30 = vadd.f32 %v194_v23, %v188_v25  ;;  %v182_v32 = vmul.f32 %v3936_v27, %v150_v48 }
 0x229   :  { %v197_v37 = vadd.f32 %v194_v23, %v189_v34 }
 0x22a   :  { %v203_v35 = vpack.c.bf16 %v196_v30, %v195_v28  ;;  %v190_v36 = vmul.f32 %v186_v17, %v182_v32 }
 0x22c   :  { %3589 = vmatprep.mubr.msk.bf16.mxu1 %vm129_vm1, %v203_v35  ;;  %v198_v38 = vadd.f32 %v194_v23, %v190_v36 }
 0x22e   :  { %v204_v39 = vpack.c.bf16 %v198_v38, %v197_v37 }
 0x230   :  { %3590 = vmatmul.mubr.msk.bf16.vlgmr.msra.gmra.mrb[0].mxu1 %vm129_vm1, %v204_v39 }
 0x231   :  { %3595 = vmatprep.mubr.msk.bf16.mxu1 %vm4140_vm2, %v4139_v42 }
 0x303   :  { %v3591_v43 = vpop.f32.mrb[0].mxu1 }
 0x304   :  { %v251_v44 = vpop.f32.mrb[1].mxu1  ;;  %v260_v46 = vadd.f32 %v3591_v43, %v210_v41 }
 0x305   :  { %v3592_v45 = vpop.f32.mrb[2].mxu1  ;;  %v252_v49 = vadd.f32 %v251_v44, %v210_v41 }
 0x306   :  { %v263_v47 = vadd.f32 %v3592_v45, %v210_v41  ;;  %v254_v48 = vpop.f32.mrb[3].mxu1 }
 0x307   :  { %v255_v50 = vadd.f32 %v254_v48, %v210_v41 }
 0x308   :  { %v4322_v51 = vpack.c.bf16 %v263_v47, %v260_v46 }
 0x309   :  { %v4324_v52 = vpack.c.bf16 %v255_v50, %v252_v49 }
 0x30a   :  { %320 = vrot.lane.b32.xlu1 %v4322_v51, %s4141_s29 }
 0x30b   :  { %269 = vrot.lane.b32.xlu0 %v4324_v52, %s4141_s29 }
 0x37c   :  { %v321_v55 = vpop.permute.xlu1 %320 }
 0x37d   :  { %v270_v53 = vpop.permute.xlu0 %269  ;;  %v326_v56 = vsel %vm271_vm3, %v321_v55, 0 }
 0x37e   :  { %v276_v54 = vsel %vm271_vm3, %v270_v53, 0 }
 0x37f   :  { %3594 = vmatpush3.bf16.xpose.msra.mxu1 %v276_v54 }
 0x380   :  { %3599 = vmatprep.subr.bf16.mxu1 %v4139_v42 }
 0x386   :  { %3596 = vmatmul.mubr.msk.bf16.vlgmr.msra.gmra.mrb[4].mxu1 %vm271_vm3, %v4324_v52 }
 0x387   :  { %3600 = vmatpush3.bf16.xpose.msra.mxu1 %v326_v56  ;;  %3601 = vmatprep.mubr.msk.bf16.mxu1 %vm4140_vm2, %v4139_v42 }
 0x388   :  { %3605 = vmatprep.subr.bf16.mxu1 %v4139_v42 }
 0x38e   :  { %3602 = vmatmul.mubr.msk.bf16.vlgmr.msra.gmra.mrb[8].mxu1 %vm271_vm3, %v4322_v51 }
 0x38f   :  { %3607 = vmatprep.mubr.msk.bf16.mxu1 %vm4140_vm2, %v4139_v42 }
 0x459   :  { %v312_v57 = vpop.f32.mrb[4].mxu1 }
 0x45a   :  { %v3597_v58 = vpop.f32.mrb[5].mxu1  ;;  %v369_v11 = vmul.f32 0.35355338, %v312_v57 }
 0x45b   :  { %v315_v59 = vpop.f32.mrb[6].mxu1 }
 0x45c   :  { %v3598_v60 = vpop.f32.mrb[7].mxu1  ;;  %v370_v9 = vmul.f32 0.35355338, %v315_v59  ;;  %v373_v15 = vmul.f32 1.442695, %v369_v11 }
 0x45e   :  { %v375_v12 = vmul.f32 1.442695, %v370_v9 }
 0x461   :  { %v362_v61 = vpop.f32.mrb[8].mxu1 }
 0x462   :  { %v371_v62 = vmul.f32 0.35355338, %v362_v61  ;;  %v3603_v63 = vpop.f32.mrb[9].mxu1 }
 0x463   :  { %v365_v0 = vpop.f32.mrb[10].mxu1 }
 0x464   :  { %v377_v1 = vmul.f32 1.442695, %v371_v62  ;;  %v372_v2 = vmul.f32 0.35355338, %v365_v0  ;;  %v3604_v3 = vpop.f32.mrb[11].mxu1 }
 0x466   :  { %3937 = vpow2.f32 %v377_v1  ;;  %v379_v4 = vmul.f32 1.442695, %v372_v2 }
 0x468   :  { %3939 = vpow2.f32 %v379_v4 }
 0x469   :  { %3941 = vpow2.f32 %v375_v12 }
 0x46a   :  { %3943 = vpow2.f32 %v373_v15 }
 0x470   :  { %v3938_v5 = vpop.eup %3937 }
 0x471   :  { %v388_v6 = vsel %vm381_vm4, %v3938_v5, 0.0 }
 0x472   :  { %v3940_v7 = vpop.eup %3939  ;;  %389 = vadd.xlane.f32.xlu1 %v388_v6 }
 0x473   :  { %v391_v8 = vsel %vm381_vm4, %v3940_v7, 0.0  ;;  %v3942_v16 = vpop.eup %3941 }
 0x474   :  { %392 = vadd.xlane.f32.xlu0 %v391_v8  ;;  %v3944_v17 = vpop.eup %3943  ;;  %v385_v19 = vsel %vm381_vm4, %v3942_v16, 0.0 }
 0x475   :  { %v382_v20 = vsel %vm381_vm4, %v3944_v17, 0.0 }
 0x483   :  { %554 = vrot.lane.b32.xlu1 %v4322_v51, %s4142_s30 }
 0x487   :  { %552 = vrot.lane.b32.xlu1 %v4322_v51, %s4143_s11 }
 0x48a   :  { %451 = vrot.lane.b32.xlu0 %v4322_v51, %s4144_s12 }
 0x4a9   :  { %386 = vadd.xlane.f32.xlu0 %v385_v19 }
 0x4ab   :  { %383 = vadd.xlane.f32.xlu1 %v382_v20 }
 0x4bc   :  { %503 = vrot.lane.b32.xlu1 %v4324_v52, %s4142_s30 }
 0x4bf   :  { %404 = vrot.lane.b32.xlu0 %v4324_v52, %s4144_s12 }
 0x4c0   :  { %501 = vrot.lane.b32.xlu1 %v4324_v52, %s4143_s11 }
 0x4ff   :  { %v390_v21 = vpop.xlane.xlu1 %389 }
 0x500   :  { %3945 = vrcp.f32 %v390_v21 }
 0x501   :  { %v393_v22 = vpop.xlane.xlu0 %392 }
 0x502   :  { %3947 = vrcp.f32 %v393_v22 }
 0x503   :  { %v555_v30 = vpop.permute.xlu1 %554 }
 0x504   :  { %v560_v34 = vsel %vm271_vm3, %v555_v30, 0 }
 0x505   :  { %v452_v23 = vpop.permute.xlu0 %451 }
 0x506   :  { %3612 = vmatpush3.bf16.msra.mxu0 %v452_v23 }
 0x507   :  { %3623 = vmatprep.subr.bf16.mxu0 %v4139_v42  ;;  %v553_v35 = vpop.permute.xlu1 %552 }
 0x50a   :  { %v3946_v24 = vpop.eup %3945 }
 0x50b   :  { %v400_v27 = vmul.f32 %v3946_v24, %v3938_v5 }
 0x50c   :  { %v3948_v25 = vpop.eup %3947 }
 0x50d   :  { %v401_v28 = vmul.f32 %v3948_v25, %v3940_v7 }
 0x50f   :  { %v403_v32 = vpack.c.bf16 %v401_v28, %v400_v27 }
 0x511   :  { %3614 = vmatmul.mubr.msk.bf16.vlgmr.msra.gmra.mrb[4].mxu0 %vm381_vm4, %v403_v32 }
 0x512   :  { %3624 = vmatpush3.bf16.xpose.msra.mxu0 %v560_v34  ;;  %3625 = vmatprep.mubr.msk.bf16.mxu0 %vm4140_vm2, %v4139_v42 }
 0x513   :  { %3635 = vmatprep.subr.bf16.mxu0 %v4139_v42 }
 0x519   :  { %3626 = vmatmul.mubr.msk.bf16.vlgmr.msra.gmra.mrb[8].mxu0 %vm271_vm3, %v553_v35 }
 0x51a   :  { %3637 = vmatprep.mubr.msk.bf16.mxu0 %vm4140_vm2, %v4139_v42 }
 0x536   :  { %v387_v36 = vpop.xlane.xlu0 %386 }
 0x537   :  { %3949 = vrcp.f32 %v387_v36 }
 0x538   :  { %v384_v37 = vpop.xlane.xlu1 %383 }
 0x539   :  { %3951 = vrcp.f32 %v384_v37 }
 0x53a   :  { %v405_v38 = vpop.permute.xlu0 %404 }
 0x53b   :  { %3606 = vmatpush3.bf16.msra.mxu1 %v405_v38 }
 0x53c   :  { %3617 = vmatprep.subr.bf16.mxu1 %v4139_v42  ;;  %v504_v45 = vpop.permute.xlu1 %503 }
 0x53d   :  { %v509_v47 = vsel %vm271_vm3, %v504_v45, 0 }
 0x540   :  { %v502_v48 = vpop.permute.xlu1 %501 }
 0x541   :  { %v3950_v39 = vpop.eup %3949 }
 0x542   :  { %v399_v43 = vmul.f32 %v3950_v39, %v3942_v16 }
 0x543   :  { %v3952_v41 = vpop.eup %3951 }
 0x544   :  { %v398_v44 = vmul.f32 %v3952_v41, %v3944_v17 }
 0x546   :  { %v402_v46 = vpack.c.bf16 %v399_v43, %v398_v44 }
 0x548   :  { %3608 = vmatmul.mubr.msk.bf16.vlgmr.msra.gmra.mrb[12].mxu1 %vm381_vm4, %v402_v46 }
 0x549   :  { %3618 = vmatpush3.bf16.xpose.msra.mxu1 %v509_v47  ;;  %3619 = vmatprep.mubr.msk.bf16.mxu1 %vm4140_vm2, %v4139_v42 }
 0x54a   :  { %3629 = vmatprep.subr.bf16.mxu1 %v4139_v42 }
 0x550   :  { %3620 = vmatmul.mubr.msk.bf16.vlgmr.msra.gmra.mrb[16].mxu1 %vm271_vm3, %v502_v48 }
 0x551   :  { %3631 = vmatprep.mubr.msk.bf16.mxu1 %vm4140_vm2, %v4139_v42 }
 0x5e4   :  { %v4376_v49 = vpop.f32.mrb[4].mxu0 }
 0x5e5   :  { %v3615_v50 = vpop.f32.mrb[5].mxu0 }
 0x5e6   :  { %v4378_v53 = vpop.f32.mrb[6].mxu0 }
 0x5e7   :  { %v499_v54 = vpack.c.bf16 %v4378_v53, %v4376_v49  ;;  %v3616_v55 = vpop.f32.mrb[7].mxu0 }
 0x5ec   :  { %v596_v56 = vpop.f32.mrb[8].mxu0 }
 0x5ed   :  { %v605_v57 = vmul.f32 0.35355338, %v596_v56  ;;  %v3627_v58 = vpop.f32.mrb[9].mxu0 }
 0x5ee   :  { %v599_v59 = vpop.f32.mrb[10].mxu0 }
 0x5ef   :  { %v611_v60 = vmul.f32 1.442695, %v605_v57  ;;  %v606_v61 = vmul.f32 0.35355338, %v599_v59  ;;  %v3628_v62 = vpop.f32.mrb[11].mxu0  ;;  %v126_v59 = vld [vmem:[%s4952_s5 + $0x8] sm:$0xff] }
 0x5f0   :  { %v125_v62 = vld [vmem:[%s4952_s5] sm:$0xff] }
 0x5f1   :  { %3953 = vpow2.f32 %v611_v60  ;;  %v613_v63 = vmul.f32 1.442695, %v606_v61  ;;  %v733_v60 = vpack.c.bf16 %v126_v59, %v126_v59 }
 0x5f3   :  { %3955 = vpow2.f32 %v613_v63  ;;  %v742_v61 = vsel %vm740_vm5, %v733_v60, 0  ;;  %v500_v63 = vpack.c.bf16 %v125_v62, %v125_v62 }
 0x5fb   :  { %v3954_v0 = vpop.eup %3953 }
 0x5fc   :  { %v621_v1 = vsel %vm381_vm4, %v3954_v0, 0.0 }
 0x5fd   :  { %v3956_v2 = vpop.eup %3955  ;;  %622 = vadd.xlane.f32.xlu0 %v621_v1 }
 0x5fe   :  { %v624_v3 = vsel %vm381_vm4, %v3956_v2, 0.0 }
 0x5ff   :  { %625 = vadd.xlane.f32.xlu1 %v624_v3 }
 0x610   :  { %853 = vrot.lane.b32.xlu1 %v4324_v52, %s4145_s13 }
 0x613   :  { %684 = vrot.lane.b32.xlu0 %v4322_v51, %s4146_s14 }
 0x614   :  { %904 = vrot.lane.b32.xlu1 %v4322_v51, %s4145_s13 }
 0x617   :  { %851 = vrot.lane.b32.xlu0 %v4324_v52, %s4147_s15 }
 0x61b   :  { %902 = vrot.lane.b32.xlu0 %v4322_v51, %s4147_s15  ;;  %v4394_v4 = vpop.f32.mrb[12].mxu1 }
 0x61c   :  { %v3609_v5 = vpop.f32.mrb[13].mxu1 }
 0x61d   :  { %v4396_v6 = vpop.f32.mrb[14].mxu1 }
 0x61e   :  { %v498_v7 = vpack.c.bf16 %v4396_v6, %v4394_v4  ;;  %v3610_v8 = vpop.f32.mrb[15].mxu1 }
 0x623   :  { %v545_v9 = vpop.f32.mrb[16].mxu1 }
 0x624   :  { %v603_v11 = vmul.f32 0.35355338, %v545_v9  ;;  %v3621_v12 = vpop.f32.mrb[17].mxu1 }
 0x625   :  { %v548_v15 = vpop.f32.mrb[18].mxu1 }
 0x626   :  { %v607_v16 = vmul.f32 1.442695, %v603_v11  ;;  %v604_v17 = vmul.f32 0.35355338, %v548_v15  ;;  %v3622_v19 = vpop.f32.mrb[19].mxu1 }
 0x628   :  { %v609_v20 = vmul.f32 1.442695, %v604_v17  ;;  %3957 = vpow2.f32 %v607_v16 }
 0x62a   :  { %3959 = vpow2.f32 %v609_v20 }
 0x632   :  { %v3958_v21 = vpop.eup %3957 }
 0x633   :  { %v615_v23 = vsel %vm381_vm4, %v3958_v21, 0.0 }
 0x634   :  { %v3960_v22 = vpop.eup %3959 }
 0x635   :  { %v618_v24 = vsel %vm381_vm4, %v3960_v22, 0.0 }
 0x638   :  { %616 = vadd.xlane.f32.xlu1 %v615_v23 }
 0x63a   :  { %619 = vadd.xlane.f32.xlu0 %v618_v24 }
 0x650   :  { %637 = vrot.lane.b32.xlu0 %v4324_v52, %s4146_s14 }
 0x654   :  { %1034 = vrot.lane.b32.xlu0 %v4322_v51, %s4148_s16 }
 0x658   :  { %1148 = vrot.lane.b32.xlu0 %v4324_v52, %s4149_s1 }
 0x65c   :  { %1199 = vrot.lane.b32.xlu0 %v4322_v51, %s4149_s1 }
 0x660   :  { %1146 = vrot.lane.b32.xlu0 %v4324_v52, %s4150_s17 }
 0x68a   :  { %v623_v25 = vpop.xlane.xlu0 %622 }
 0x68b   :  { %3961 = vrcp.f32 %v623_v25 }
 0x68c   :  { %v626_v27 = vpop.xlane.xlu1 %625 }
 0x68d   :  { %3963 = vrcp.f32 %v626_v27 }
 0x68e   :  { %v685_v28 = vpop.permute.xlu0 %684 }
 0x68f   :  { %3636 = vmatpush3.bf16.msra.mxu0 %v685_v28 }
 0x690   :  { %3653 = vmatprep.subr.bf16.mxu0 %v4139_v42  ;;  %v854_v36 = vpop.permute.xlu1 %853 }
 0x691   :  { %v859_v38 = vsel %vm271_vm3, %v854_v36, 0 }
 0x692   :  { %v852_v41 = vpop.permute.xlu0 %851 }
 0x694   :  { %v905_v39 = vpop.permute.xlu1 %904 }
 0x695   :  { %v3962_v30 = vpop.eup %3961  ;;  %v910_v43 = vsel %vm271_vm3, %v905_v39, 0 }
 0x696   :  { %v633_v34 = vmul.f32 %v3962_v30, %v3954_v0  ;;  %v903_v44 = vpop.permute.xlu0 %902 }
 0x697   :  { %v3964_v32 = vpop.eup %3963 }
 0x698   :  { %v634_v35 = vmul.f32 %v3964_v32, %v3956_v2 }
 0x69a   :  { %v636_v37 = vpack.c.bf16 %v634_v35, %v633_v34 }
 0x69c   :  { %3638 = vmatmul.mubr.msk.bf16.vlgmr.msra.gmra.mrb[12].mxu0 %vm381_vm4, %v636_v37 }
 0x69d   :  { %3654 = vmatpush3.bf16.xpose.msra.mxu0 %v859_v38  ;;  %3655 = vmatprep.mubr.msk.bf16.mxu0 %vm4140_vm2, %v4139_v42 }
 0x69e   :  { %3659 = vmatprep.subr.bf16.mxu0 %v4139_v42 }
 0x6a4   :  { %3656 = vmatmul.mubr.msk.bf16.vlgmr.msra.gmra.mrb[16].mxu0 %vm271_vm3, %v852_v41 }
 0x6a5   :  { %3660 = vmatpush3.bf16.xpose.msra.mxu0 %v910_v43  ;;  %3661 = vmatprep.mubr.msk.bf16.mxu0 %vm4140_vm2, %v4139_v42 }
 0x6a6   :  { %3671 = vmatprep.subr.bf16.mxu0 %v4139_v42 }
 0x6ac   :  { %3662 = vmatmul.mubr.msk.bf16.vlgmr.msra.gmra.mrb[20].mxu0 %vm271_vm3, %v903_v44 }
 0x6ad   :  { %3673 = vmatprep.mubr.msk.bf16.mxu0 %vm4140_vm2, %v4139_v42 }
 0x6c5   :  { %v617_v45 = vpop.xlane.xlu1 %616 }
 0x6c6   :  { %3965 = vrcp.f32 %v617_v45 }
 0x6c7   :  { %v620_v46 = vpop.xlane.xlu0 %619 }
 0x6c8   :  { %3967 = vrcp.f32 %v620_v46 }
 0x6cb   :  { %v638_v47 = vpop.permute.xlu0 %637 }
 0x6cc   :  { %3630 = vmatpush3.bf16.msra.mxu1 %v638_v47  ;;  %v800_v47 = vsel %vm740_vm5, %v500_v63, 0 }
 0x6cd   :  { %3905 = vmatprep.subr.msk.bf16.mxu1 %vm740_vm5, %v733_v60 }
 0x6cf   :  { %v1035_v48 = vpop.permute.xlu0 %1034 }
 0x6d0   :  { %v3966_v50 = vpop.eup %3965  ;;  %3672 = vmatpush3.bf16.msra.mxu0 %v1035_v48 }
 0x6d1   :  { %3683 = vmatprep.subr.bf16.mxu0 %v4139_v42  ;;  %v631_v56 = vmul.f32 %v3966_v50, %v3958_v21 }
 0x6d2   :  { %v3968_v55 = vpop.eup %3967 }
 0x6d3   :  { %v632_v57 = vmul.f32 %v3968_v55, %v3960_v22  ;;  %v1149_v59 = vpop.permute.xlu0 %1148 }
 0x6d5   :  { %v635_v58 = vpack.c.bf16 %v632_v57, %v631_v56 }
 0x6d7   :  { %3632 = vmatmul.mubr.msk.bf16.vlgmr.msra.gmra.mrb[20].mxu1 %vm381_vm4, %v635_v58 }
 0x6d8   :  { %3642 = vmatpush3.bf16.msra.mxu1 %v742_v61 }
 0x6d9   :  { %3906 = vmatprep.subr.msk.bf16.mxu1 %vm740_vm5, %v500_v63  ;;  %v1154_v63 = vsel %vm271_vm3, %v1149_v59, 0 }
 0x76f   :  { %v724_v0 = vpop.f32.mrb[12].mxu0 }
 0x770   :  { %v3639_v1 = vpop.f32.mrb[13].mxu0 }
 0x771   :  { %v727_v2 = vpop.f32.mrb[14].mxu0 }
 0x772   :  { %v732_v3 = vpack.c.bf16 %v727_v2, %v724_v0  ;;  %v3640_v5 = vpop.f32.mrb[15].mxu0  ;;  %v1200_v0 = vpop.permute.xlu0 %1199  ;;  %v127_v2 = vld [vmem:[%s4952_s5 + $0x10] sm:$0xff] }
 0x776   :  { %v1147_v1 = vpop.permute.xlu0 %1146 }
 0x777   :  { %v895_v8 = vpop.f32.mrb[16].mxu0 }
 0x778   :  { %v953_v9 = vmul.f32 0.35355338, %v895_v8  ;;  %v3657_v11 = vpop.f32.mrb[17].mxu0 }
 0x779   :  { %v898_v12 = vpop.f32.mrb[18].mxu0 }
 0x77a   :  { %v957_v15 = vmul.f32 1.442695, %v953_v9  ;;  %v954_v16 = vmul.f32 0.35355338, %v898_v12  ;;  %v3658_v17 = vpop.f32.mrb[19].mxu0 }
 0x77c   :  { %3969 = vpow2.f32 %v957_v15  ;;  %v959_v19 = vmul.f32 1.442695, %v954_v16 }
 0x77e   :  { %3971 = vpow2.f32 %v959_v19 }
 0x77f   :  { %v946_v20 = vpop.f32.mrb[20].mxu0 }
 0x780   :  { %v955_v21 = vmul.f32 0.35355338, %v946_v20  ;;  %v3663_v22 = vpop.f32.mrb[21].mxu0 }
 0x781   :  { %v949_v23 = vpop.f32.mrb[22].mxu0  ;;  %v1205_v22 = vsel %vm271_vm3, %v1200_v0, 0 }
 0x782   :  { %v961_v24 = vmul.f32 1.442695, %v955_v21  ;;  %v956_v25 = vmul.f32 0.35355338, %v949_v23  ;;  %v3664_v27 = vpop.f32.mrb[23].mxu0 }
 0x784   :  { %3973 = vpow2.f32 %v961_v24  ;;  %v963_v28 = vmul.f32 1.442695, %v956_v25 }
 0x786   :  { %v3970_v30 = vpop.eup %3969  ;;  %3975 = vpow2.f32 %v963_v28 }
 0x787   :  { %v965_v32 = vsel %vm381_vm4, %v3970_v30, 0.0 }
 0x788   :  { %v3972_v34 = vpop.eup %3971  ;;  %966 = vadd.xlane.f32.xlu1 %v965_v32 }
 0x789   :  { %v968_v35 = vsel %vm381_vm4, %v3972_v34, 0.0 }
 0x78c   :  { %969 = vadd.xlane.f32.xlu1 %v968_v35 }
 0x78e   :  { %v3974_v36 = vpop.eup %3973 }
 0x78f   :  { %v971_v37 = vsel %vm381_vm4, %v3974_v36, 0.0 }
 0x790   :  { %v3976_v38 = vpop.eup %3975  ;;  %972 = vadd.xlane.f32.xlu1 %v971_v37 }
 0x791   :  { %v974_v39 = vsel %vm381_vm4, %v3976_v38, 0.0 }
 0x794   :  { %975 = vadd.xlane.f32.xlu1 %v974_v39 }
 0x7a5   :  { %987 = vrot.lane.b32.xlu1 %v4324_v52, %s4148_s16 }
 0x7a9   :  { %1197 = vrot.lane.b32.xlu1 %v4322_v51, %s4150_s17 }
 0x7aa   :  { %v677_v41 = vpop.f32.mrb[20].mxu1 }
 0x7ab   :  { %v3633_v43 = vpop.f32.mrb[21].mxu1 }
 0x7ac   :  { %v680_v44 = vpop.f32.mrb[22].mxu1 }
 0x7ad   :  { %v731_v45 = vpack.c.bf16 %v680_v44, %v677_v41  ;;  %v3634_v46 = vpop.f32.mrb[23].mxu1 }
 0x7af   :  { %3643 = vmatprep.mubr.msk.bf16.mxu1 %vm271_vm3, %v731_v45 }
 0x7b0   :  { %3644 = vmatmul.mubr.msk.bf16.vlgmr.msra.gmra.mrb[24].mxu1 %vm271_vm3, %v732_v3  ;;  %v1083_v3 = vpack.c.bf16 %v127_v2, %v127_v2 }
 0x7b1   :  { %3649 = vmatprep.mubr.msk.bf16.mxu1 %vm271_vm3, %v498_v7  ;;  %3648 = vmatpush3.bf16.msra.mxu1 %v800_v47 }
 0x7b2   :  { %3665 = vmatprep.subr.bf16.mxu1 %v4139_v42  ;;  %v1091_v5 = vsel %vm740_vm5, %v1083_v3, 0 }
 0x7bc   :  { %3650 = vmatmul.mubr.msk.bf16.vlgmr.msra.gmra.mrb[24].mxu1 %vm271_vm3, %v499_v54 }
 0x7bd   :  { %3667 = vmatprep.mubr.msk.bf16.mxu1 %vm4140_vm2, %v4139_v42 }
 0x815   :  { %v967_v48 = vpop.xlane.xlu1 %966 }
 0x816   :  { %3977 = vrcp.f32 %v967_v48 }
 0x819   :  { %v970_v50 = vpop.xlane.xlu1 %969 }
 0x81a   :  { %3979 = vrcp.f32 %v970_v50 }
 0x81d   :  { %v973_v55 = vpop.xlane.xlu1 %972 }
 0x81e   :  { %3981 = vrcp.f32 %v973_v55 }
 0x820   :  { %v3978_v6 = vpop.eup %3977 }
 0x821   :  { %v976_v4 = vpop.xlane.xlu1 %975  ;;  %v981_v56 = vmul.f32 %v3978_v6, %v3970_v30 }
 0x822   :  { %3983 = vrcp.f32 %v976_v4 }
 0x824   :  { %v3980_v7 = vpop.eup %3979 }
 0x825   :  { %v982_v57 = vmul.f32 %v3980_v7, %v3972_v34  ;;  %v988_v58 = vpop.permute.xlu1 %987 }
 0x826   :  { %3666 = vmatpush3.bf16.msra.mxu1 %v988_v58 }
 0x827   :  { %v985_v49 = vpack.c.bf16 %v982_v57, %v981_v56  ;;  %3907 = vmatprep.subr.msk.bf16.mxu1 %vm740_vm5, %v1083_v3  ;;  %v128_v3 = vld [vmem:[%s4952_s5 + $0x18] sm:$0xff] }
 0x828   :  { %v3982_v53 = vpop.eup %3981 }
 0x829   :  { %3668 = vmatmul.mubr.msk.bf16.vlgmr.msra.gmra.mrb[28].mxu1 %vm381_vm4, %v985_v49  ;;  %v983_v60 = vmul.f32 %v3982_v53, %v3974_v36  ;;  %v1198_v34 = vpop.permute.xlu1 %1197 }
 0x82a   :  { %3678 = vmatpush3.bf16.msra.mxu1 %v1091_v5  ;;  %v1378_v5 = vpack.c.bf16 %v128_v3, %v128_v3 }
 0x82b   :  { %3689 = vmatprep.subr.bf16.mxu1 %v4139_v42 }
 0x82c   :  { %v3984_v54 = vpop.eup %3983 }
 0x82d   :  { %v984_v61 = vmul.f32 %v3984_v54, %v3976_v38 }
 0x82f   :  { %v986_v62 = vpack.c.bf16 %v984_v61, %v983_v60 }
 0x831   :  { %3674 = vmatmul.mubr.msk.bf16.vlgmr.msra.gmra.mrb[24].mxu0 %vm381_vm4, %v986_v62 }
 0x832   :  { %3684 = vmatpush3.bf16.xpose.msra.mxu0 %v1154_v63  ;;  %3685 = vmatprep.mubr.msk.bf16.mxu0 %vm4140_vm2, %v4139_v42 }
 0x833   :  { %3695 = vmatprep.subr.bf16.mxu0 %v4139_v42 }
 0x839   :  { %3686 = vmatmul.mubr.msk.bf16.vlgmr.msra.gmra.mrb[28].mxu0 %vm271_vm3, %v1147_v1 }
 0x83a   :  { %3697 = vmatprep.mubr.msk.bf16.mxu0 %vm4140_vm2, %v4139_v42 }
 0x8fc   :  { %v1027_v8 = vpop.f32.mrb[28].mxu1 }
 0x8fd   :  { %v3669_v9 = vpop.f32.mrb[29].mxu1 }
 0x8fe   :  { %v1030_v11 = vpop.f32.mrb[30].mxu1 }
 0x8ff   :  { %v1081_v12 = vpack.c.bf16 %v1030_v11, %v1027_v8  ;;  %v3670_v15 = vpop.f32.mrb[31].mxu1  ;;  %v1386_v8 = vsel %vm740_vm5, %v1378_v5, 0 }
 0x901   :  { %3679 = vmatprep.mubr.msk.bf16.mxu1 %vm271_vm3, %v1081_v12 }
 0x904   :  { %v1074_v16 = vpop.f32.mrb[24].mxu0 }
 0x905   :  { %v3675_v17 = vpop.f32.mrb[25].mxu0 }
 0x906   :  { %v1077_v19 = vpop.f32.mrb[26].mxu0 }
 0x907   :  { %v1082_v20 = vpack.c.bf16 %v1077_v19, %v1074_v16  ;;  %v3676_v21 = vpop.f32.mrb[27].mxu0 }
 0x909   :  { %3680 = vmatmul.mubr.msk.bf16.vlgmr.msra.gmra.mrb[24].mxu1 %vm271_vm3, %v1082_v20 }
 0x90a   :  { %3690 = vmatpush3.bf16.xpose.msra.mxu1 %v1205_v22  ;;  %3691 = vmatprep.mubr.msk.bf16.mxu1 %vm4140_vm2, %v4139_v42 }
 0x90b   :  { %3701 = vmatprep.subr.bf16.mxu1 %v4139_v42 }
 0x90c   :  { %v1190_v23 = vpop.f32.mrb[28].mxu0 }
 0x90d   :  { %v1248_v24 = vmul.f32 0.35355338, %v1190_v23  ;;  %v3687_v25 = vpop.f32.mrb[29].mxu0  ;;  %v1521_v23 = vld [vmem:[%s4953_s6] sm:$0xff] }
 0x90e   :  { %v1193_v27 = vpop.f32.mrb[30].mxu0 }
 0x90f   :  { %v1252_v28 = vmul.f32 1.442695, %v1248_v24  ;;  %v1249_v30 = vmul.f32 0.35355338, %v1193_v27  ;;  %v3688_v32 = vpop.f32.mrb[31].mxu0  ;;  %v1522_v24 = vld [vmem:[%s4953_s6 + $0x8] sm:$0xff] }
 0x910   :  { %v1527_v25 = vpack.c.bf16 %v1522_v24, %v1521_v23  ;;  %v1523_v27 = vld [vmem:[%s4953_s6 + $0x10] sm:$0xff]  ;;  %v1443_v32 = vsub.s32 3, %v4293_v10  ;;  %v4575_v23 = vld [vmem:[%s4955_s8] sm:$0xff] }
 0x911   :  { %3985 = vpow2.f32 %v1252_v28  ;;  %v1254_v35 = vmul.f32 1.442695, %v1249_v30  ;;  %3692 = vmatmul.mubr.msk.bf16.vlgmr.msra.gmra.mrb[32].mxu1 %vm271_vm3, %v1198_v34  ;;  %v1524_v28 = vld [vmem:[%s4953_s6 + $0x18] sm:$0xff] }
 0x912   :  { %3703 = vmatprep.mubr.msk.bf16.mxu1 %vm4140_vm2, %v4139_v42  ;;  %v1528_v30 = vpack.c.bf16 %v1524_v28, %v1523_v27  ;;  %v1444_v34 = vrot.slane %v4301_v14, %v1443_v32 }
 0x913   :  { %3987 = vpow2.f32 %v1254_v35 }
 0x91b   :  { %v3986_v36 = vpop.eup %3985 }
 0x91c   :  { %v1260_v37 = vsel %vm381_vm4, %v3986_v36, 0.0 }
 0x91d   :  { %v3988_v38 = vpop.eup %3987  ;;  %1261 = vadd.xlane.f32.xlu0 %v1260_v37 }
 0x91e   :  { %v1263_v39 = vsel %vm381_vm4, %v3988_v38, 0.0 }
 0x91f   :  { %1264 = vadd.xlane.f32.xlu1 %v1263_v39 }
 0x930   :  { %1329 = vrot.lane.b32.xlu1 %v4322_v51, %s4151_s21 }
 0x9aa   :  { %v1262_v57 = vpop.xlane.xlu0 %1261 }
 0x9ac   :  { %v1265_v41 = vpop.xlane.xlu1 %1264 }
 0x9b0   :  { %v1330_v43 = vpop.permute.xlu1 %1329 }
 0x9b1   :  { %3702 = vmatpush3.bf16.msra.mxu1 %v1330_v43 }
 0x9b2   :  { %3908 = vmatprep.subr.msk.bf16.mxu1 %vm740_vm5, %v1378_v5 }
 0x9e4   :  { %v1241_v44 = vpop.f32.mrb[32].mxu1 }
 0x9e5   :  { %v1250_v45 = vmul.f32 0.35355338, %v1241_v44  ;;  %v3693_v46 = vpop.f32.mrb[33].mxu1 }
 0x9e6   :  { %v1244_v47 = vpop.f32.mrb[34].mxu1 }
 0x9e7   :  { %v1256_v48 = vmul.f32 1.442695, %v1250_v45  ;;  %v1251_v50 = vmul.f32 0.35355338, %v1244_v47  ;;  %v3694_v55 = vpop.f32.mrb[35].mxu1 }
 0x9e9   :  { %3989 = vpow2.f32 %v1256_v48  ;;  %v1258_v4 = vmul.f32 1.442695, %v1251_v50 }
 0x9eb   :  { %3991 = vpow2.f32 %v1258_v4 }
 0x9ec   :  { %3993 = vrcp.f32 %v1265_v41 }
 0x9ed   :  { %3995 = vrcp.f32 %v1262_v57  ;;  %v1628_v57 = vld [vmem:[%s4954_s7 + $0x20] sm:$0xff] }
 0x9f3   :  { %v3990_v6 = vpop.eup %3989 }
 0x9f4   :  { %v1266_v7 = vsel %vm381_vm4, %v3990_v6, 0.0 }
 0x9f5   :  { %v3992_v56 = vpop.eup %3991  ;;  %1267 = vadd.xlane.f32.xlu0 %v1266_v7  ;;  %v1626_v7 = vld [vmem:[%s4954_s7 + $0x10] sm:$0xff] }
 0x9f6   :  { %v1269_v51 = vsel %vm381_vm4, %v3992_v56, 0.0  ;;  %v3994_v49 = vpop.eup %3993 }
 0x9f7   :  { %v3996_v54 = vpop.eup %3995  ;;  %v1277_v59 = vmul.f32 %v3994_v49, %v3988_v38 }
 0x9f8   :  { %v1276_v60 = vmul.f32 %v3996_v54, %v3986_v36  ;;  %v1631_v54 = vld [vmem:[%s4954_s7 + $0x38] sm:$0xff] }
 0x9f9   :  { %1270 = vadd.xlane.f32.xlu0 %v1269_v51 }
 0x9fa   :  { %v1280_v62 = vpack.c.bf16 %v1277_v59, %v1276_v60 }
 0xa0f   :  { %1282 = vrot.lane.b32.xlu0 %v4324_v52, %s4151_s21 }
 0xa82   :  { %v1268_v58 = vpop.xlane.xlu0 %1267 }
 0xa83   :  { %3997 = vrcp.f32 %v1268_v58  ;;  %v1629_v58 = vld [vmem:[%s4954_s7 + $0x28] sm:$0xff] }
 0xa84   :  { %v1636_v49 = vpack.c.bf16 %v1629_v58, %v1628_v57 }
 0xa86   :  { %v1271_v53 = vpop.xlane.xlu0 %1270 }
 0xa87   :  { %3999 = vrcp.f32 %v1271_v53  ;;  %v1630_v53 = vld [vmem:[%s4954_s7 + $0x30] sm:$0xff] }
 0xa88   :  { %v1637_v59 = vpack.c.bf16 %v1631_v54, %v1630_v53 }
 0xa8a   :  { %v1283_v61 = vpop.permute.xlu0 %1282 }
 0xa8b   :  { %3696 = vmatpush3.bf16.msra.mxu0 %v1283_v61 }
 0xa8c   :  { %3713 = vmatprep.subr.bf16.mxu0 %v1527_v25 }
 0xa8d   :  { %v3998_v63 = vpop.eup %3997 }
 0xa8e   :  { %3698 = vmatmul.mubr.msk.bf16.vlgmr.msra.gmra.mrb[32].mxu0 %vm381_vm4, %v1280_v62  ;;  %v1278_v1 = vmul.f32 %v3998_v63, %v3990_v6 }
 0xa8f   :  { %3714 = vmatpush3.bf16.msra.mxu0 %v1527_v25 }
 0xa90   :  { %3715 = vmatprep.subr.bf16.mxu0 %v1528_v30 }
 0xa91   :  { %v4000_v0 = vpop.eup %3999 }
 0xa92   :  { %v1279_v52 = vmul.f32 %v4000_v0, %v3992_v56  ;;  %v1627_v56 = vld [vmem:[%s4954_s7 + $0x18] sm:$0xff] }
 0xa93   :  { %3716 = vmatpush3.bf16.msra.mxu0 %v1528_v30  ;;  %v1635_v51 = vpack.c.bf16 %v1627_v56, %v1626_v7 }
 0xa94   :  { %v1281_v2 = vpack.c.bf16 %v1279_v52, %v1278_v1 }
 0xa96   :  { %3704 = vmatmul.mubr.msk.bf16.vlgmr.msra.gmra.mrb[36].mxu1 %vm381_vm4, %v1281_v2 }
 0xa97   :  { %3708 = vmatpush3.bf16.msra.mxu1 %v1386_v8 }
 0xb61   :  { %v1322_v9 = vpop.f32.mrb[32].mxu0 }
 0xb62   :  { %v3699_v11 = vpop.f32.mrb[33].mxu0 }
 0xb63   :  { %v1325_v12 = vpop.f32.mrb[34].mxu0 }
 0xb64   :  { %v1376_v15 = vpack.c.bf16 %v1325_v12, %v1322_v9  ;;  %v3700_v16 = vpop.f32.mrb[35].mxu0 }
 0xb66   :  { %3709 = vmatprep.mubr.msk.bf16.mxu1 %vm271_vm3, %v1376_v15 }
 0xb69   :  { %v1369_v17 = vpop.f32.mrb[36].mxu1 }
 0xb6a   :  { %v3705_v19 = vpop.f32.mrb[37].mxu1 }
 0xb6b   :  { %v1372_v20 = vpop.f32.mrb[38].mxu1 }
 0xb6c   :  { %v1377_v21 = vpack.c.bf16 %v1372_v20, %v1369_v17  ;;  %v3706_v22 = vpop.f32.mrb[39].mxu1 }
 0xb6d   :  { %v1531_v22 = vsub.s32 6, %v4293_v10 }
 0xb6e   :  { %3710 = vmatmul.mubr.msk.bf16.vlgmr.msra.gmra.mrb[24].mxu1 %vm271_vm3, %v1377_v21 }
 0xb6f   :  { %v1532_v24 = vrot.slane %v4575_v23, %v1531_v22 }
 0xc41   :  { %v3711_v35 = vpop.f32.mrb[24].mxu1 }
 0xc42   :  { %v1422_v36 = vpop.f32.mrb[25].mxu1  ;;  %v1447_v39 = vadd.f32 %v3711_v35, %v1444_v34 }
 0xc43   :  { %v1445_v37 = vadd.f32 %v1444_v34, %v1422_v36  ;;  %v3712_v38 = vpop.f32.mrb[26].mxu1 }
 0xc44   :  { %v1448_v41 = vadd.f32 %v3712_v38, %v1444_v34  ;;  %v1425_v43 = vpop.f32.mrb[27].mxu1  ;;  %v1451_v50 = vadd.f32 %v1447_v39, %v4257_v26  ;;  %v1624_v26 = vld [vmem:[%s4954_s7] sm:$0xff] }
 0xc45   :  { %v1449_v44 = vadd.f32 %v1445_v37, %v4259_v29  ;;  %v1446_v45 = vadd.f32 %v1444_v34, %v1425_v43 }
 0xc46   :  { %v1452_v46 = vadd.f32 %v1448_v41, %v4261_v31  ;;  %v1459_v29 = vsel %vm129_vm1, %v1451_v50, 0.0  ;;  %v1625_v31 = vld [vmem:[%s4954_s7 + $0x8] sm:$0xff] }
 0xc47   :  { %v1450_v47 = vadd.f32 %v1446_v45, %v4265_v33  ;;  %v1453_v48 = vsel %vm129_vm1, %v1449_v44, 0.0  ;;  %v1634_v33 = vpack.c.bf16 %v1625_v31, %v1624_v26 }
 0xc48   :  { %1454 = vadd.xlane.f32.xlu1 %v1453_v48  ;;  %v1526_v4 = vpack.c.bf16 %v1452_v46, %v1451_v50  ;;  %v1462_v6 = vsel %vm129_vm1, %v1452_v46, 0.0 }
 0xc49   :  { %v1525_v14 = vpack.c.bf16 %v1450_v47, %v1449_v44  ;;  %v1456_v55 = vsel %vm129_vm1, %v1450_v47, 0.0  ;;  %3721 = vmatprep.subr.bf16.mxu0 %v1634_v33 }
 0xc4a   :  { %1457 = vadd.xlane.f32.xlu0 %v1456_v55 }
 0xc4b   :  { %3717 = vmatprep.mubr.msk.bf16.mxu0 %vm129_vm1, %v1525_v14 }
 0xc4c   :  { %1463 = vadd.xlane.f32.xlu1 %v1462_v6  ;;  %3718 = vmatmul.mubr.msk.bf16.vlgmr.msra.gmra.mrb[36].mxu0 %vm129_vm1, %v1526_v4 }
 0xc4d   :  { %3722 = vmatpush3.bf16.msra.mxu0 %v1634_v33 }
 0xc4e   :  { %1460 = vadd.xlane.f32.xlu0 %v1459_v29  ;;  %3723 = vmatprep.subr.bf16.mxu0 %v1635_v51 }
 0xc51   :  { %3724 = vmatpush3.bf16.msra.mxu0 %v1635_v51 }
 0xc52   :  { %3725 = vmatprep.subr.bf16.mxu0 %v1636_v49 }
 0xc55   :  { %3726 = vmatpush3.bf16.msra.mxu0 %v1636_v49 }
 0xc56   :  { %3727 = vmatprep.subr.bf16.mxu0 %v1637_v59 }
 0xc59   :  { %3728 = vmatpush3.bf16.msra.mxu0 %v1637_v59 }
 0xc5a   :  { %3747 = vmatprep.subr.bf16.mxu0 %v4139_v42 }
 0xcd5   :  { %v1455_v60 = vpop.xlane.xlu1 %1454 }
 0xcd6   :  { %v1465_v61 = vmul.f32 0.03125, %v1455_v60 }
 0xcd7   :  { %v1458_v62 = vpop.xlane.xlu0 %1457 }
 0xcd8   :  { %v4551_v63 = vsub.f32 %v1449_v44, %v1465_v61  ;;  %v1466_v0 = vmul.f32 0.03125, %v1458_v62 }
 0xcd9   :  { %v1464_v1 = vpop.xlane.xlu1 %1463 }
 0xcda   :  { %v4553_v52 = vsub.f32 %v1450_v47, %v1466_v0  ;;  %v1468_v2 = vmul.f32 0.03125, %v1464_v1  ;;  %v1473_v3 = vmul.f32 %v4551_v63, %v4551_v63 }
 0xcdb   :  { %v1461_v5 = vpop.xlane.xlu0 %1460 }
 0xcdc   :  { %v4557_v8 = vsub.f32 %v1452_v46, %v1468_v2  ;;  %v1467_v9 = vmul.f32 0.03125, %v1461_v5  ;;  %v1477_v11 = vsel %vm129_vm1, %v1473_v3, 0.0  ;;  %v1474_v12 = vmul.f32 %v4553_v52, %v4553_v52 }
 0xcdd   :  { %1478 = vadd.xlane.f32.xlu0 %v1477_v11 }
 0xcde   :  { %v4562_v15 = vsub.f32 %v1451_v50, %v1467_v9  ;;  %v1480_v16 = vsel %vm129_vm1, %v1474_v12, 0.0  ;;  %v1476_v17 = vmul.f32 %v4557_v8, %v4557_v8 }
 0xcdf   :  { %1481 = vadd.xlane.f32.xlu1 %v1480_v16 }
 0xce0   :  { %v1475_v19 = vmul.f32 %v4562_v15, %v4562_v15  ;;  %v1486_v20 = vsel %vm129_vm1, %v1476_v17, 0.0 }
 0xce2   :  { %v1483_v21 = vsel %vm129_vm1, %v1475_v19, 0.0 }
 0xce3   :  { %1487 = vadd.xlane.f32.xlu1 %v1486_v20  ;;  %1484 = vadd.xlane.f32.xlu0 %v1483_v21 }
 0xd1f   :  { %v3719_v25 = vpop.f32.mrb[36].mxu0 }
 0xd20   :  { %v1582_v27 = vadd.f32 %v3719_v25, %v1532_v24  ;;  %v1573_v28 = vpop.f32.mrb[37].mxu0 }
 0xd21   :  { %v1574_v30 = vadd.f32 %v1573_v28, %v1532_v24  ;;  %v3720_v34 = vpop.f32.mrb[38].mxu0 }
 0xd22   :  { %v1594_v35 = vmul.f32 %v1582_v27, %v1582_v27  ;;  %v1585_v36 = vadd.f32 %v3720_v34, %v1532_v24  ;;  %v1576_v37 = vpop.f32.mrb[39].mxu0  ;;  %v1590_v59 = vmul.f32 0.5, %v1582_v27 }
 0xd23   :  { %v1592_v38 = vmul.f32 %v1574_v30, %v1574_v30  ;;  %v1577_v39 = vadd.f32 %v1576_v37, %v1532_v24  ;;  %v1588_v62 = vmul.f32 0.5, %v1574_v30 }
 0xd24   :  { %v1598_v41 = vmul.f32 %v1594_v35, %v1582_v27  ;;  %v1595_v43 = vmul.f32 %v1585_v36, %v1585_v36  ;;  %v1591_v60 = vmul.f32 0.5, %v1585_v36 }
 0xd25   :  { %v1596_v44 = vmul.f32 %v1592_v38, %v1574_v30  ;;  %v1593_v45 = vmul.f32 %v1577_v39, %v1577_v39  ;;  %v1589_v0 = vmul.f32 0.5, %v1577_v39 }
 0xd26   :  { %v1602_v46 = vmul.f32 0.044715, %v1598_v41  ;;  %v1599_v47 = vmul.f32 %v1595_v43, %v1585_v36  ;;  %v1515_v43 = vsub.s32 5, %v4293_v10 }
 0xd27   :  { %v1600_v48 = vmul.f32 0.044715, %v1596_v44  ;;  %v1597_v50 = vmul.f32 %v1593_v45, %v1577_v39  ;;  %v1640_v44 = vsub.s32 7, %v4293_v10 }
 0xd28   :  { %v1606_v14 = vadd.f32 %v1602_v46, %v1582_v27  ;;  %v1603_v55 = vmul.f32 0.044715, %v1599_v47 }
 0xd29   :  { %v1604_v4 = vadd.f32 %v1600_v48, %v1574_v30  ;;  %v1601_v6 = vmul.f32 0.044715, %v1597_v50  ;;  %v1516_v50 = vrot.slane %v4575_v23, %v1515_v43 }
 0xd2a   :  { %v1610_v29 = vmul.f32 0.7978846, %v1606_v14  ;;  %v1607_v26 = vadd.f32 %v1603_v55, %v1585_v36  ;;  %v1507_v36 = vsub.s32 4, %v4293_v10  ;;  %v1641_v14 = vrot.slane %v4575_v23, %v1640_v44 }
 0xd2b   :  { %v1608_v31 = vmul.f32 0.7978846, %v1604_v4  ;;  %v1605_v33 = vadd.f32 %v1601_v6, %v1577_v39 }
 0xd2c   :  { %4001 = vtanh.f32 %v1610_v29  ;;  %v1611_v7 = vmul.f32 0.7978846, %v1607_v26  ;;  %v1508_v41 = vrot.slane %v4575_v23, %v1507_v36 }
 0xd2d   :  { %4003 = vtanh.f32 %v1608_v31  ;;  %v1609_v56 = vmul.f32 0.7978846, %v1605_v33 }
 0xd2e   :  { %4005 = vtanh.f32 %v1611_v7 }
 0xd2f   :  { %4007 = vtanh.f32 %v1609_v56 }
 0xd36   :  { %v4002_v51 = vpop.eup %4001 }
 0xd37   :  { %v4004_v57 = vpop.eup %4003  ;;  %v1618_v58 = vadd.f32 1.0, %v4002_v51 }
 0xd38   :  { %v4006_v49 = vpop.eup %4005  ;;  %v1616_v53 = vadd.f32 1.0, %v4004_v57 }
 0xd39   :  { %v4008_v54 = vpop.eup %4007  ;;  %v1619_v61 = vadd.f32 1.0, %v4006_v49  ;;  %v1622_v2 = vmul.f32 %v1618_v58, %v1590_v59 }
 0xd3a   :  { %v1617_v1 = vadd.f32 1.0, %v4008_v54  ;;  %v1620_v5 = vmul.f32 %v1616_v53, %v1588_v62 }
 0xd3b   :  { %v1623_v3 = vmul.f32 %v1619_v61, %v1591_v60 }
 0xd3c   :  { %v1621_v9 = vmul.f32 %v1617_v1, %v1589_v0 }
 0xd3d   :  { %v1633_v11 = vpack.c.bf16 %v1623_v3, %v1622_v2 }
 0xd3e   :  { %v1632_v12 = vpack.c.bf16 %v1621_v9, %v1620_v5 }
 0xd40   :  { %3729 = vmatprep.mubr.msk.bf16.mxu0 %vm62_vm0, %v1632_v12 }
 0xd41   :  { %3730 = vmatmul.mubr.msk.bf16.vlgmr.msra.gmra.mrb[40].mxu0 %vm62_vm0, %v1633_v11 }
 0xd42   :  { %3749 = vmatprep.mubr.msk.bf16.mxu0 %vm4140_vm2, %v4139_v42 }
 0xd6a   :  { %v1479_v16 = vpop.xlane.xlu0 %1478 }
 0xd6b   :  { %v1489_v20 = vmul.f32 0.03125, %v1479_v16 }
 0xd6c   :  { %v1482_v17 = vpop.xlane.xlu1 %1481 }
 0xd6d   :  { %v1490_v21 = vmul.f32 0.03125, %v1482_v17  ;;  %v1493_v27 = vadd.f32 1e-12, %v1489_v20 }
 0xd6f   :  { %v1494_v30 = vadd.f32 1e-12, %v1490_v21  ;;  %4009 = vrsqrt.f32 %v1493_v27 }
 0xd70   :  { %v1485_v19 = vpop.xlane.xlu0 %1484  ;;  %v1488_v24 = vpop.xlane.xlu1 %1487 }
 0xd71   :  { %v1491_v25 = vmul.f32 0.03125, %v1485_v19  ;;  %v1492_v28 = vmul.f32 0.03125, %v1488_v24  ;;  %4011 = vrsqrt.f32 %v1494_v30 }
 0xd73   :  { %v1495_v34 = vadd.f32 1e-12, %v1491_v25  ;;  %v1496_v35 = vadd.f32 1e-12, %v1492_v28 }
 0xd75   :  { %4013 = vrsqrt.f32 %v1495_v34 }
 0xd76   :  { %4015 = vrsqrt.f32 %v1496_v35 }
 0xd79   :  { %v4010_v37 = vpop.eup %4009 }
 0xd7a   :  { %v1501_v45 = vmul.f32 %v4010_v37, %v4551_v63 }
 0xd7b   :  { %v4012_v38 = vpop.eup %4011 }
 0xd7c   :  { %v1502_v47 = vmul.f32 %v4012_v38, %v4553_v52  ;;  %v1509_v55 = vmul.f32 %v1508_v41, %v1501_v45  ;;  %v3405_v38 = vld [vmem:[%s4951_s4 + $0x20] sm:$0xff]  ;;  %v3407_v45 = vld [vmem:[%s4951_s4 + $0x30] sm:$0xff] }
 0xd7e   :  { %v1510_v6 = vmul.f32 %v1508_v41, %v1502_v47  ;;  %v1517_v33 = vadd.f32 %v1516_v50, %v1509_v55 }
 0xd7f   :  { %v4014_v39 = vpop.eup %4013 }
 0xd80   :  { %v4016_v46 = vpop.eup %4015  ;;  %v1503_v48 = vmul.f32 %v4014_v39, %v4562_v15  ;;  %v1518_v56 = vadd.f32 %v1516_v50, %v1510_v6  ;;  %v3406_v39 = vld [vmem:[%s4951_s4 + $0x28] sm:$0xff] }
 0xd81   :  { %v1504_v4 = vmul.f32 %v4016_v46, %v4557_v8  ;;  %v3408_v46 = vld [vmem:[%s4951_s4 + $0x38] sm:$0xff] }
 0xd82   :  { %v1511_v29 = vmul.f32 %v1508_v41, %v1503_v48  ;;  %v1784_v47 = vpack.c.bf16 %v3408_v46, %v3407_v45 }
 0xd83   :  { %v1512_v7 = vmul.f32 %v1508_v41, %v1504_v4  ;;  %v1783_v41 = vpack.c.bf16 %v3406_v39, %v3405_v38 }
 0xd84   :  { %v1519_v57 = vadd.f32 %v1516_v50, %v1511_v29 }
 0xd85   :  { %v1520_v54 = vadd.f32 %v1516_v50, %v1512_v7  ;;  %3733 = vmatprep.subr.bf16.mxu1 %v1783_v41  ;;  %v4640_v7 = vld [vmem:[%s4955_s8 + $0x8] sm:$0xff] }
 0xd86   :  { %3734 = vmatpush3.bf16.msra.mxu1 %v1783_v41 }
 0xd87   :  { %3735 = vmatprep.subr.bf16.mxu1 %v1784_v47 }
 0xd8a   :  { %3736 = vmatpush3.bf16.msra.mxu1 %v1784_v47 }
 0xd8b   :  { %3741 = vmatprep.subr.bf16.mxu1 %v4139_v42 }
 0xe14   :  { %v3731_v26 = vpop.f32.mrb[40].mxu0 }
 0xe15   :  { %v1682_v63 = vpop.f32.mrb[41].mxu0  ;;  %v1691_v31 = vadd.f32 %v3731_v26, %v1641_v14 }
 0xe16   :  { %v1683_v52 = vadd.f32 %v1682_v63, %v1641_v14  ;;  %v3732_v15 = vpop.f32.mrb[42].mxu0 }
 0xe17   :  { %v1685_v51 = vpop.f32.mrb[43].mxu0  ;;  %v1694_v49 = vadd.f32 %v3732_v15, %v1641_v14  ;;  %v4602_v23 = vadd.f32 %v1691_v31, %v1519_v57  ;;  %v1763_v15 = vrot.slane %v4640_v7, %v4296_v13 }
 0xe18   :  { %v4600_v58 = vadd.f32 %v1683_v52, %v1517_v33  ;;  %v1686_v53 = vadd.f32 %v1685_v51, %v1641_v14 }
 0xe19   :  { %v4608_v60 = vadd.f32 %v1694_v49, %v1520_v54  ;;  %v1714_v62 = vsel %vm129_vm1, %v4602_v23, 0.0  ;;  %v1771_v54 = vrot.slane %v4640_v7, %v4306_v18 }
 0xe1a   :  { %v4604_v8 = vadd.f32 %v1686_v53, %v1518_v56  ;;  %v1708_v59 = vsel %vm129_vm1, %v4600_v58, 0.0 }
 0xe1b   :  { %1709 = vadd.xlane.f32.xlu0 %v1708_v59  ;;  %v1717_v0 = vsel %vm129_vm1, %v4608_v60, 0.0 }
 0xe1c   :  { %v1711_v61 = vsel %vm129_vm1, %v4604_v8, 0.0 }
 0xe1d   :  { %1712 = vadd.xlane.f32.xlu1 %v1711_v61 }
 0xe1f   :  { %1715 = vadd.xlane.f32.xlu0 %v1714_v62 }
 0xe21   :  { %1718 = vadd.xlane.f32.xlu1 %v1717_v0 }
 0xea8   :  { %v1710_v1 = vpop.xlane.xlu0 %1709 }
 0xea9   :  { %v1720_v2 = vmul.f32 0.03125, %v1710_v1 }
 0xeaa   :  { %v1713_v3 = vpop.xlane.xlu1 %1712 }
 0xeab   :  { %v1724_v5 = vsub.f32 %v4600_v58, %v1720_v2  ;;  %v1721_v9 = vmul.f32 0.03125, %v1713_v3 }
 0xeac   :  { %v1716_v11 = vpop.xlane.xlu0 %1715 }
 0xead   :  { %v1725_v12 = vsub.f32 %v4604_v8, %v1721_v9  ;;  %v1722_v16 = vmul.f32 0.03125, %v1716_v11  ;;  %v1728_v17 = vmul.f32 %v1724_v5, %v1724_v5 }
 0xeae   :  { %v1719_v19 = vpop.xlane.xlu1 %1718 }
 0xeaf   :  { %v1726_v20 = vsub.f32 %v4602_v23, %v1722_v16  ;;  %v1723_v21 = vmul.f32 0.03125, %v1719_v19  ;;  %v1732_v24 = vsel %vm129_vm1, %v1728_v17, 0.0  ;;  %v1729_v25 = vmul.f32 %v1725_v12, %v1725_v12 }
 0xeb0   :  { %1733 = vadd.xlane.f32.xlu0 %v1732_v24 }
 0xeb1   :  { %v1727_v27 = vsub.f32 %v4608_v60, %v1723_v21  ;;  %v1735_v28 = vsel %vm129_vm1, %v1729_v25, 0.0  ;;  %v1730_v30 = vmul.f32 %v1726_v20, %v1726_v20 }
 0xeb2   :  { %1736 = vadd.xlane.f32.xlu1 %v1735_v28 }
 0xeb3   :  { %v1738_v34 = vsel %vm129_vm1, %v1730_v30, 0.0  ;;  %v1731_v35 = vmul.f32 %v1727_v27, %v1727_v27 }
 0xeb4   :  { %1739 = vadd.xlane.f32.xlu0 %v1738_v34 }
 0xeb5   :  { %v1741_v37 = vsel %vm129_vm1, %v1731_v35, 0.0 }
 0xeb6   :  { %1742 = vadd.xlane.f32.xlu1 %v1741_v37 }
 0xf3d   :  { %v1734_v48 = vpop.xlane.xlu0 %1733 }
 0xf3e   :  { %v1744_v50 = vmul.f32 0.03125, %v1734_v48 }
 0xf3f   :  { %v1737_v14 = vpop.xlane.xlu1 %1736 }
 0xf40   :  { %v1748_v55 = vadd.f32 1e-12, %v1744_v50  ;;  %v1745_v4 = vmul.f32 0.03125, %v1737_v14 }
 0xf41   :  { %v1740_v6 = vpop.xlane.xlu0 %1739 }
 0xf42   :  { %4017 = vrsqrt.f32 %v1748_v55  ;;  %v1749_v29 = vadd.f32 1e-12, %v1745_v4  ;;  %v1746_v26 = vmul.f32 0.03125, %v1740_v6 }
 0xf43   :  { %v1743_v63 = vpop.xlane.xlu1 %1742 }
 0xf44   :  { %4019 = vrsqrt.f32 %v1749_v29  ;;  %v1750_v31 = vadd.f32 1e-12, %v1746_v26  ;;  %v1747_v33 = vmul.f32 0.03125, %v1743_v63 }
 0xf46   :  { %4021 = vrsqrt.f32 %v1750_v31  ;;  %v1751_v52 = vadd.f32 1e-12, %v1747_v33 }
 0xf48   :  { %4023 = vrsqrt.f32 %v1751_v52 }
 0xf4c   :  { %v4018_v56 = vpop.eup %4017 }
 0xf4d   :  { %v1756_v51 = vmul.f32 %v4018_v56, %v1724_v5 }
 0xf4e   :  { %v4020_v57 = vpop.eup %4019 }
 0xf4f   :  { %v1757_v49 = vmul.f32 %v4020_v57, %v1725_v12  ;;  %v1764_v53 = vmul.f32 %v1763_v15, %v1756_v51  ;;  %v1788_v12 = vrot.slane %v4640_v7, %v209_v40 }
 0xf50   :  { %v4022_v59 = vpop.eup %4021 }
 0xf51   :  { %v1758_v61 = vmul.f32 %v4022_v59, %v1726_v20  ;;  %v1765_v62 = vmul.f32 %v1763_v15, %v1757_v49  ;;  %v1772_v3 = vadd.f32 %v1771_v54, %v1764_v53 }
 0xf52   :  { %v4024_v0 = vpop.eup %4023 }
 0xf53   :  { %v1766_v1 = vmul.f32 %v1763_v15, %v1758_v61  ;;  %v1759_v2 = vmul.f32 %v4024_v0, %v1727_v27  ;;  %v1773_v9 = vadd.f32 %v1771_v54, %v1765_v62 }
 0xf55   :  { %v1767_v11 = vmul.f32 %v1763_v15, %v1759_v2  ;;  %v1781_v16 = vpack.c.bf16 %v1773_v9, %v1772_v3  ;;  %v1774_v17 = vadd.f32 %v1771_v54, %v1766_v1 }
 0xf57   :  { %3737 = vmatprep.mubr.msk.bf16.mxu1 %vm129_vm1, %v1781_v16  ;;  %v1775_v5 = vadd.f32 %v1771_v54, %v1767_v11 }
 0xf59   :  { %v1782_v19 = vpack.c.bf16 %v1775_v5, %v1774_v17 }
 0xf5b   :  { %3738 = vmatmul.mubr.msk.bf16.vlgmr.msra.gmra.mrb[40].mxu1 %vm129_vm1, %v1782_v19 }
 0xf5c   :  { %3743 = vmatprep.mubr.msk.bf16.mxu1 %vm4140_vm2, %v4139_v42 }
0x102e   :  { %v3739_v20 = vpop.f32.mrb[40].mxu1 }
0x102f   :  { %v1829_v21 = vpop.f32.mrb[41].mxu1  ;;  %v1838_v25 = vadd.f32 %v3739_v20, %v1788_v12 }
0x1030   :  { %v3740_v24 = vpop.f32.mrb[42].mxu1  ;;  %v1830_v30 = vadd.f32 %v1829_v21, %v1788_v12 }
0x1031   :  { %v1841_v27 = vadd.f32 %v3740_v24, %v1788_v12  ;;  %v1832_v28 = vpop.f32.mrb[43].mxu1 }
0x1032   :  { %v1833_v34 = vadd.f32 %v1832_v28, %v1788_v12 }
0x1033   :  { %v4653_v35 = vpack.c.bf16 %v1841_v27, %v1838_v25 }
0x1034   :  { %v4655_v37 = vpack.c.bf16 %v1833_v34, %v1830_v30 }
0x1035   :  { %1897 = vrot.lane.b32.xlu0 %v4653_v35, %s4141_s29 }
0x1036   :  { %1847 = vrot.lane.b32.xlu1 %v4655_v37, %s4141_s29 }
0x10a7   :  { %v1898_v38 = vpop.permute.xlu0 %1897 }
0x10a8   :  { %v1903_v40 = vsel %vm271_vm3, %v1898_v38, 0  ;;  %v1848_v39 = vpop.permute.xlu1 %1847 }
0x10a9   :  { %v1853_v41 = vsel %vm271_vm3, %v1848_v39, 0  ;;  %3748 = vmatpush3.bf16.xpose.msra.mxu0 %v1903_v40 }
0x10aa   :  { %3742 = vmatpush3.bf16.xpose.msra.mxu1 %v1853_v41  ;;  %3759 = vmatprep.subr.bf16.mxu0 %v4139_v42 }
0x10ab   :  { %3753 = vmatprep.subr.bf16.mxu1 %v4139_v42 }
0x10b0   :  { %3750 = vmatmul.mubr.msk.bf16.vlgmr.msra.gmra.mrb[44].mxu0 %vm271_vm3, %v4653_v35 }
0x10b1   :  { %3744 = vmatmul.mubr.msk.bf16.vlgmr.msra.gmra.mrb[44].mxu1 %vm271_vm3, %v4655_v37  ;;  %3761 = vmatprep.mubr.msk.bf16.mxu0 %vm4140_vm2, %v4139_v42 }
0x10b2   :  { %3755 = vmatprep.mubr.msk.bf16.mxu1 %vm4140_vm2, %v4139_v42 }
0x1183   :  { %v1939_v45 = vpop.f32.mrb[44].mxu0 }
0x1184   :  { %v1948_v46 = vmul.f32 0.35355338, %v1939_v45  ;;  %v1889_v47 = vpop.f32.mrb[44].mxu1  ;;  %v3751_v48 = vpop.f32.mrb[45].mxu0 }
0x1185   :  { %v3745_v50 = vpop.f32.mrb[45].mxu1  ;;  %v1942_v14 = vpop.f32.mrb[46].mxu0  ;;  %v1946_v51 = vmul.f32 0.35355338, %v1889_v47 }
0x1186   :  { %v1954_v55 = vmul.f32 1.442695, %v1948_v46  ;;  %v1949_v4 = vmul.f32 0.35355338, %v1942_v14  ;;  %v1892_v6 = vpop.f32.mrb[46].mxu1  ;;  %v3752_v29 = vpop.f32.mrb[47].mxu0 }
0x1187   :  { %v3746_v26 = vpop.f32.mrb[47].mxu1  ;;  %v1947_v56 = vmul.f32 0.35355338, %v1892_v6  ;;  %v1950_v49 = vmul.f32 1.442695, %v1946_v51 }
0x1188   :  { %4025 = vpow2.f32 %v1954_v55  ;;  %v1956_v63 = vmul.f32 1.442695, %v1949_v4 }
0x1189   :  { %v1952_v57 = vmul.f32 1.442695, %v1947_v56 }
0x118a   :  { %4027 = vpow2.f32 %v1956_v63 }
0x118b   :  { %4029 = vpow2.f32 %v1952_v57 }
0x118c   :  { %4031 = vpow2.f32 %v1950_v49 }
0x1192   :  { %v4026_v31 = vpop.eup %4025 }
0x1193   :  { %v1964_v33 = vsel %vm381_vm4, %v4026_v31, 0.0 }
0x1194   :  { %v4028_v52 = vpop.eup %4027  ;;  %1965 = vadd.xlane.f32.xlu1 %v1964_v33 }
0x1195   :  { %v1967_v15 = vsel %vm381_vm4, %v4028_v52, 0.0  ;;  %v4030_v53 = vpop.eup %4029 }
0x1196   :  { %1968 = vadd.xlane.f32.xlu0 %v1967_v15  ;;  %v4032_v54 = vpop.eup %4031  ;;  %v1961_v59 = vsel %vm381_vm4, %v4030_v53, 0.0 }
0x1197   :  { %v1958_v61 = vsel %vm381_vm4, %v4032_v54, 0.0 }
0x11a5   :  { %2130 = vrot.lane.b32.xlu1 %v4653_v35, %s4142_s30 }
0x11a9   :  { %2128 = vrot.lane.b32.xlu1 %v4653_v35, %s4143_s11 }
0x11ac   :  { %2027 = vrot.lane.b32.xlu0 %v4653_v35, %s4144_s12 }
0x11cb   :  { %1962 = vadd.xlane.f32.xlu0 %v1961_v59 }
0x11cd   :  { %1959 = vadd.xlane.f32.xlu1 %v1958_v61 }
0x11de   :  { %2079 = vrot.lane.b32.xlu1 %v4655_v37, %s4142_s30 }
0x11e1   :  { %1980 = vrot.lane.b32.xlu0 %v4655_v37, %s4144_s12 }
0x11e2   :  { %2077 = vrot.lane.b32.xlu1 %v4655_v37, %s4143_s11 }
0x1221   :  { %v1966_v62 = vpop.xlane.xlu1 %1965 }
0x1222   :  { %4033 = vrcp.f32 %v1966_v62 }
0x1223   :  { %v1969_v0 = vpop.xlane.xlu0 %1968 }
0x1224   :  { %4035 = vrcp.f32 %v1969_v0 }
0x1225   :  { %v2131_v16 = vpop.permute.xlu1 %2130 }
0x1226   :  { %v2136_v5 = vsel %vm271_vm3, %v2131_v16, 0 }
0x1227   :  { %v2028_v1 = vpop.permute.xlu0 %2027 }
0x1228   :  { %3760 = vmatpush3.bf16.msra.mxu0 %v2028_v1 }
0x1229   :  { %3771 = vmatprep.subr.bf16.mxu0 %v4139_v42  ;;  %v2129_v19 = vpop.permute.xlu1 %2128 }
0x122c   :  { %v4034_v2 = vpop.eup %4033 }
0x122d   :  { %v1976_v9 = vmul.f32 %v4034_v2, %v4026_v31 }
0x122e   :  { %v4036_v3 = vpop.eup %4035 }
0x122f   :  { %v1977_v11 = vmul.f32 %v4036_v3, %v4028_v52 }
0x1231   :  { %v1979_v17 = vpack.c.bf16 %v1977_v11, %v1976_v9 }
0x1233   :  { %3762 = vmatmul.mubr.msk.bf16.vlgmr.msra.gmra.mrb[48].mxu0 %vm381_vm4, %v1979_v17 }
0x1234   :  { %3772 = vmatpush3.bf16.xpose.msra.mxu0 %v2136_v5  ;;  %3773 = vmatprep.mubr.msk.bf16.mxu0 %vm4140_vm2, %v4139_v42 }
0x1235   :  { %3783 = vmatprep.subr.bf16.mxu0 %v4139_v42 }
0x123b   :  { %3774 = vmatmul.mubr.msk.bf16.vlgmr.msra.gmra.mrb[52].mxu0 %vm271_vm3, %v2129_v19 }
0x123c   :  { %3785 = vmatprep.mubr.msk.bf16.mxu0 %vm4140_vm2, %v4139_v42 }
0x1258   :  { %v1963_v12 = vpop.xlane.xlu0 %1962 }
0x1259   :  { %4037 = vrcp.f32 %v1963_v12 }
0x125a   :  { %v1960_v20 = vpop.xlane.xlu1 %1959 }
0x125b   :  { %4039 = vrcp.f32 %v1960_v20 }
0x125c   :  { %v1981_v21 = vpop.permute.xlu0 %1980 }
0x125d   :  { %3754 = vmatpush3.bf16.msra.mxu1 %v1981_v21 }
0x125e   :  { %3765 = vmatprep.subr.bf16.mxu1 %v4139_v42  ;;  %v2080_v30 = vpop.permute.xlu1 %2079 }
0x125f   :  { %v2085_v38 = vsel %vm271_vm3, %v2080_v30, 0 }
0x1262   :  { %v2078_v40 = vpop.permute.xlu1 %2077 }
0x1263   :  { %v4038_v24 = vpop.eup %4037 }
0x1264   :  { %v1975_v27 = vmul.f32 %v4038_v24, %v4030_v53 }
0x1265   :  { %v4040_v25 = vpop.eup %4039 }
0x1266   :  { %v1974_v28 = vmul.f32 %v4040_v25, %v4032_v54 }
0x1268   :  { %v1978_v34 = vpack.c.bf16 %v1975_v27, %v1974_v28 }
0x126a   :  { %3756 = vmatmul.mubr.msk.bf16.vlgmr.msra.gmra.mrb[48].mxu1 %vm381_vm4, %v1978_v34 }
0x126b   :  { %3766 = vmatpush3.bf16.xpose.msra.mxu1 %v2085_v38  ;;  %3767 = vmatprep.mubr.msk.bf16.mxu1 %vm4140_vm2, %v4139_v42 }
0x126c   :  { %3777 = vmatprep.subr.bf16.mxu1 %v4139_v42 }
0x1272   :  { %3768 = vmatmul.mubr.msk.bf16.vlgmr.msra.gmra.mrb[52].mxu1 %vm271_vm3, %v2078_v40 }
0x1273   :  { %3779 = vmatprep.mubr.msk.bf16.mxu1 %vm4140_vm2, %v4139_v42 }
0x1306   :  { %v4707_v39 = vpop.f32.mrb[48].mxu0 }
0x1307   :  { %v3763_v41 = vpop.f32.mrb[49].mxu0 }
0x1308   :  { %v4709_v45 = vpop.f32.mrb[50].mxu0 }
0x1309   :  { %v2075_v46 = vpack.c.bf16 %v4709_v45, %v4707_v39  ;;  %v3764_v47 = vpop.f32.mrb[51].mxu0 }
0x130e   :  { %v2172_v48 = vpop.f32.mrb[52].mxu0 }
0x130f   :  { %v2181_v50 = vmul.f32 0.35355338, %v2172_v48  ;;  %v3775_v14 = vpop.f32.mrb[53].mxu0 }
0x1310   :  { %v2175_v55 = vpop.f32.mrb[54].mxu0 }
0x1311   :  { %v2187_v4 = vmul.f32 1.442695, %v2181_v50  ;;  %v2182_v6 = vmul.f32 0.35355338, %v2175_v55  ;;  %v3776_v29 = vpop.f32.mrb[55].mxu0 }
0x1313   :  { %4041 = vpow2.f32 %v2187_v4  ;;  %v2189_v26 = vmul.f32 1.442695, %v2182_v6 }
0x1315   :  { %4043 = vpow2.f32 %v2189_v26  ;;  %v3402_v26 = vld [vmem:[%s4952_s5 + $0x28] sm:$0xff] }
0x131d   :  { %v4042_v63 = vpop.eup %4041 }
0x131e   :  { %v2197_v31 = vsel %vm381_vm4, %v4042_v63, 0.0 }
0x131f   :  { %v4044_v33 = vpop.eup %4043  ;;  %2198 = vadd.xlane.f32.xlu0 %v2197_v31 }
0x1320   :  { %v2200_v52 = vsel %vm381_vm4, %v4044_v33, 0.0 }
0x1321   :  { %2201 = vadd.xlane.f32.xlu1 %v2200_v52 }
0x1332   :  { %2428 = vrot.lane.b32.xlu1 %v4655_v37, %s4145_s13 }
0x1335   :  { %2260 = vrot.lane.b32.xlu0 %v4653_v35, %s4146_s14 }
0x1336   :  { %2479 = vrot.lane.b32.xlu1 %v4653_v35, %s4145_s13 }
0x1339   :  { %2426 = vrot.lane.b32.xlu0 %v4655_v37, %s4147_s15 }
0x133d   :  { %2477 = vrot.lane.b32.xlu0 %v4653_v35, %s4147_s15  ;;  %v4725_v15 = vpop.f32.mrb[48].mxu1 }
0x133e   :  { %v3757_v56 = vpop.f32.mrb[49].mxu1 }
0x133f   :  { %v4727_v51 = vpop.f32.mrb[50].mxu1 }
0x1340   :  { %v2074_v57 = vpack.c.bf16 %v4727_v51, %v4725_v15  ;;  %v3758_v49 = vpop.f32.mrb[51].mxu1 }
0x1345   :  { %v2121_v53 = vpop.f32.mrb[52].mxu1 }
0x1346   :  { %v2179_v54 = vmul.f32 0.35355338, %v2121_v53  ;;  %v3769_v59 = vpop.f32.mrb[53].mxu1 }
0x1347   :  { %v2124_v61 = vpop.f32.mrb[54].mxu1 }
0x1348   :  { %v2183_v62 = vmul.f32 1.442695, %v2179_v54  ;;  %v2180_v0 = vmul.f32 0.35355338, %v2124_v61  ;;  %v3770_v1 = vpop.f32.mrb[55].mxu1 }
0x134a   :  { %v2185_v2 = vmul.f32 1.442695, %v2180_v0  ;;  %4045 = vpow2.f32 %v2183_v62 }
0x134c   :  { %4047 = vpow2.f32 %v2185_v2 }
0x1354   :  { %v4046_v3 = vpop.eup %4045 }
0x1355   :  { %v2191_v11 = vsel %vm381_vm4, %v4046_v3, 0.0 }
0x1356   :  { %v4048_v9 = vpop.eup %4047 }
0x1357   :  { %v2194_v16 = vsel %vm381_vm4, %v4048_v9, 0.0 }
0x135a   :  { %2192 = vadd.xlane.f32.xlu1 %v2191_v11 }
0x135c   :  { %2195 = vadd.xlane.f32.xlu0 %v2194_v16 }
0x1372   :  { %2213 = vrot.lane.b32.xlu0 %v4655_v37, %s4146_s14 }
0x1376   :  { %2609 = vrot.lane.b32.xlu0 %v4653_v35, %s4148_s16 }
0x137a   :  { %2723 = vrot.lane.b32.xlu0 %v4655_v37, %s4149_s1 }
0x137e   :  { %2774 = vrot.lane.b32.xlu0 %v4653_v35, %s4149_s1 }
0x1382   :  { %2721 = vrot.lane.b32.xlu0 %v4655_v37, %s4150_s17 }
0x13ac   :  { %v2199_v17 = vpop.xlane.xlu0 %2198 }
0x13ad   :  { %4049 = vrcp.f32 %v2199_v17 }
0x13ae   :  { %v2202_v5 = vpop.xlane.xlu1 %2201 }
0x13af   :  { %4051 = vrcp.f32 %v2202_v5 }
0x13b0   :  { %v2261_v19 = vpop.permute.xlu0 %2260 }
0x13b1   :  { %3784 = vmatpush3.bf16.msra.mxu0 %v2261_v19 }
0x13b2   :  { %3801 = vmatprep.subr.bf16.mxu0 %v4139_v42  ;;  %v2429_v25 = vpop.permute.xlu1 %2428 }
0x13b3   :  { %v2434_v28 = vsel %vm271_vm3, %v2429_v25, 0 }
0x13b4   :  { %v2427_v34 = vpop.permute.xlu0 %2426 }
0x13b6   :  { %v2480_v30 = vpop.permute.xlu1 %2479 }
0x13b7   :  { %v4050_v12 = vpop.eup %4049  ;;  %v2485_v38 = vsel %vm271_vm3, %v2480_v30, 0 }
0x13b8   :  { %v2209_v21 = vmul.f32 %v4050_v12, %v4042_v63  ;;  %v2478_v40 = vpop.permute.xlu0 %2477  ;;  %v2309_v63 = vpack.c.bf16 %v3402_v26, %v3402_v26 }
0x13b9   :  { %v4052_v20 = vpop.eup %4051 }
0x13ba   :  { %v2210_v24 = vmul.f32 %v4052_v20, %v4044_v33  ;;  %v2317_v31 = vsel %vm740_vm5, %v2309_v63, 0  ;;  %v3401_v33 = vld [vmem:[%s4952_s5 + $0x20] sm:$0xff] }
0x13bb   :  { %v2076_v52 = vpack.c.bf16 %v3401_v33, %v3401_v33 }
0x13bc   :  { %v2212_v27 = vpack.c.bf16 %v2210_v24, %v2209_v21 }
0x13be   :  { %3786 = vmatmul.mubr.msk.bf16.vlgmr.msra.gmra.mrb[56].mxu0 %vm381_vm4, %v2212_v27 }
0x13bf   :  { %3802 = vmatpush3.bf16.xpose.msra.mxu0 %v2434_v28  ;;  %3803 = vmatprep.mubr.msk.bf16.mxu0 %vm4140_vm2, %v4139_v42 }
0x13c0   :  { %3807 = vmatprep.subr.bf16.mxu0 %v4139_v42 }
0x13c6   :  { %3804 = vmatmul.mubr.msk.bf16.vlgmr.msra.gmra.mrb[60].mxu0 %vm271_vm3, %v2427_v34 }
0x13c7   :  { %3808 = vmatpush3.bf16.xpose.msra.mxu0 %v2485_v38  ;;  %3809 = vmatprep.mubr.msk.bf16.mxu0 %vm4140_vm2, %v4139_v42 }
0x13c8   :  { %3819 = vmatprep.subr.bf16.mxu0 %v4139_v42 }
0x13ce   :  { %3810 = vmatmul.mubr.msk.bf16.vlgmr.msra.gmra.mrb[64].mxu0 %vm271_vm3, %v2478_v40 }
0x13cf   :  { %3821 = vmatprep.mubr.msk.bf16.mxu0 %vm4140_vm2, %v4139_v42 }
0x13e7   :  { %v2193_v41 = vpop.xlane.xlu1 %2192 }
0x13e8   :  { %4053 = vrcp.f32 %v2193_v41 }
0x13e9   :  { %v2196_v47 = vpop.xlane.xlu0 %2195 }
0x13ea   :  { %4055 = vrcp.f32 %v2196_v47 }
0x13ed   :  { %v2214_v48 = vpop.permute.xlu0 %2213 }
0x13ee   :  { %3778 = vmatpush3.bf16.msra.mxu1 %v2214_v48 }
0x13ef   :  { %3909 = vmatprep.subr.msk.bf16.mxu1 %vm740_vm5, %v2309_v63 }
0x13f1   :  { %v2610_v50 = vpop.permute.xlu0 %2609 }
0x13f2   :  { %v4054_v14 = vpop.eup %4053  ;;  %3820 = vmatpush3.bf16.msra.mxu0 %v2610_v50 }
0x13f3   :  { %3831 = vmatprep.subr.bf16.mxu0 %v4139_v42  ;;  %v2207_v4 = vmul.f32 %v4054_v14, %v4046_v3 }
0x13f4   :  { %v4056_v55 = vpop.eup %4055 }
0x13f5   :  { %v2208_v6 = vmul.f32 %v4056_v55, %v4048_v9 }
0x13f7   :  { %v2211_v29 = vpack.c.bf16 %v2208_v6, %v2207_v4  ;;  %v2375_v4 = vsel %vm740_vm5, %v2076_v52, 0 }
0x13f9   :  { %3780 = vmatmul.mubr.msk.bf16.vlgmr.msra.gmra.mrb[56].mxu1 %vm381_vm4, %v2211_v29 }
0x13fa   :  { %3790 = vmatpush3.bf16.msra.mxu1 %v2317_v31 }
0x13fb   :  { %3910 = vmatprep.subr.msk.bf16.mxu1 %vm740_vm5, %v2076_v52  ;;  %v2724_v52 = vpop.permute.xlu0 %2723 }
0x1491   :  { %v2300_v56 = vpop.f32.mrb[56].mxu0 }
0x1492   :  { %v3787_v49 = vpop.f32.mrb[57].mxu0 }
0x1493   :  { %v2303_v53 = vpop.f32.mrb[58].mxu0 }
0x1494   :  { %v2308_v54 = vpack.c.bf16 %v2303_v53, %v2300_v56  ;;  %v3788_v59 = vpop.f32.mrb[59].mxu0 }
0x1495   :  { %v2775_v59 = vpop.permute.xlu0 %2774 }
0x1499   :  { %v2470_v61 = vpop.f32.mrb[60].mxu0 }
0x149a   :  { %v2528_v62 = vmul.f32 0.35355338, %v2470_v61  ;;  %v3805_v0 = vpop.f32.mrb[61].mxu0  ;;  %v2722_v61 = vpop.permute.xlu0 %2721 }
0x149b   :  { %v2473_v1 = vpop.f32.mrb[62].mxu0 }
0x149c   :  { %v2532_v2 = vmul.f32 1.442695, %v2528_v62  ;;  %v2529_v3 = vmul.f32 0.35355338, %v2473_v1  ;;  %v3806_v9 = vpop.f32.mrb[63].mxu0  ;;  %v3403_v62 = vld [vmem:[%s4952_s5 + $0x30] sm:$0xff] }
0x149d   :  { %v2658_v0 = vpack.c.bf16 %v3403_v62, %v3403_v62 }
0x149e   :  { %4057 = vpow2.f32 %v2532_v2  ;;  %v2534_v11 = vmul.f32 1.442695, %v2529_v3 }
0x149f   :  { %v2666_v1 = vsel %vm740_vm5, %v2658_v0, 0 }
0x14a0   :  { %4059 = vpow2.f32 %v2534_v11 }
0x14a1   :  { %v2521_v16 = vpop.f32.mrb[64].mxu0 }
0x14a2   :  { %v2530_v17 = vmul.f32 0.35355338, %v2521_v16  ;;  %v3811_v5 = vpop.f32.mrb[65].mxu0 }
0x14a3   :  { %v2524_v19 = vpop.f32.mrb[66].mxu0 }
0x14a4   :  { %v2536_v12 = vmul.f32 1.442695, %v2530_v17  ;;  %v2531_v20 = vmul.f32 0.35355338, %v2524_v19  ;;  %v3812_v21 = vpop.f32.mrb[67].mxu0 }
0x14a5   :  { %v2780_v21 = vsel %vm271_vm3, %v2775_v59, 0 }
0x14a6   :  { %4061 = vpow2.f32 %v2536_v12  ;;  %v2538_v24 = vmul.f32 1.442695, %v2531_v20 }
0x14a8   :  { %v4058_v25 = vpop.eup %4057  ;;  %4063 = vpow2.f32 %v2538_v24 }
0x14a9   :  { %v2540_v27 = vsel %vm381_vm4, %v4058_v25, 0.0 }
0x14aa   :  { %v4060_v28 = vpop.eup %4059  ;;  %2541 = vadd.xlane.f32.xlu1 %v2540_v27 }
0x14ab   :  { %v2543_v30 = vsel %vm381_vm4, %v4060_v28, 0.0 }
0x14ae   :  { %2544 = vadd.xlane.f32.xlu1 %v2543_v30 }
0x14b0   :  { %v4062_v34 = vpop.eup %4061 }
0x14b1   :  { %v2546_v38 = vsel %vm381_vm4, %v4062_v34, 0.0 }
0x14b2   :  { %v4064_v40 = vpop.eup %4063  ;;  %2547 = vadd.xlane.f32.xlu1 %v2546_v38 }
0x14b3   :  { %v2549_v41 = vsel %vm381_vm4, %v4064_v40, 0.0 }
0x14b6   :  { %2550 = vadd.xlane.f32.xlu1 %v2549_v41 }
0x14c7   :  { %2562 = vrot.lane.b32.xlu1 %v4655_v37, %s4148_s16 }
0x14cb   :  { %2772 = vrot.lane.b32.xlu1 %v4653_v35, %s4150_s17 }
0x14cc   :  { %v2253_v47 = vpop.f32.mrb[56].mxu1 }
0x14cd   :  { %v3781_v48 = vpop.f32.mrb[57].mxu1 }
0x14ce   :  { %v2256_v50 = vpop.f32.mrb[58].mxu1 }
0x14cf   :  { %v2307_v14 = vpack.c.bf16 %v2256_v50, %v2253_v47  ;;  %v3782_v55 = vpop.f32.mrb[59].mxu1 }
0x14d1   :  { %3791 = vmatprep.mubr.msk.bf16.mxu1 %vm271_vm3, %v2307_v14 }
0x14d2   :  { %3792 = vmatmul.mubr.msk.bf16.vlgmr.msra.gmra.mrb[60].mxu1 %vm271_vm3, %v2308_v54  ;;  %v2729_v54 = vsel %vm271_vm3, %v2724_v52, 0 }
0x14d3   :  { %3797 = vmatprep.mubr.msk.bf16.mxu1 %vm271_vm3, %v2074_v57  ;;  %3796 = vmatpush3.bf16.msra.mxu1 %v2375_v4 }
0x14d4   :  { %3813 = vmatprep.subr.bf16.mxu1 %v4139_v42 }
0x14de   :  { %3798 = vmatmul.mubr.msk.bf16.vlgmr.msra.gmra.mrb[60].mxu1 %vm271_vm3, %v2075_v46 }
0x14df   :  { %3815 = vmatprep.mubr.msk.bf16.mxu1 %vm4140_vm2, %v4139_v42 }
0x1537   :  { %v2542_v6 = vpop.xlane.xlu1 %2541 }
0x1538   :  { %4065 = vrcp.f32 %v2542_v6 }
0x153b   :  { %v2545_v29 = vpop.xlane.xlu1 %2544 }
0x153c   :  { %4067 = vrcp.f32 %v2545_v29 }
0x153f   :  { %v2548_v26 = vpop.xlane.xlu1 %2547 }
0x1540   :  { %4069 = vrcp.f32 %v2548_v26 }
0x1542   :  { %v4066_v51 = vpop.eup %4065 }
0x1543   :  { %v2551_v15 = vpop.xlane.xlu1 %2550  ;;  %v2556_v63 = vmul.f32 %v4066_v51, %v4058_v25 }
0x1544   :  { %4071 = vrcp.f32 %v2551_v15 }
0x1546   :  { %v4068_v57 = vpop.eup %4067 }
0x1547   :  { %v2557_v31 = vmul.f32 %v4068_v57, %v4060_v28  ;;  %v2563_v33 = vpop.permute.xlu1 %2562 }
0x1548   :  { %3814 = vmatpush3.bf16.msra.mxu1 %v2563_v33 }
0x1549   :  { %v2560_v39 = vpack.c.bf16 %v2557_v31, %v2556_v63  ;;  %3911 = vmatprep.subr.msk.bf16.mxu1 %vm740_vm5, %v2658_v0 }
0x154a   :  { %v4070_v45 = vpop.eup %4069 }
0x154b   :  { %3816 = vmatmul.mubr.msk.bf16.vlgmr.msra.gmra.mrb[64].mxu1 %vm381_vm4, %v2560_v39  ;;  %v2558_v56 = vmul.f32 %v4070_v45, %v4062_v34 }
0x154c   :  { %3826 = vmatpush3.bf16.msra.mxu1 %v2666_v1 }
0x154d   :  { %3837 = vmatprep.subr.bf16.mxu1 %v4139_v42 }
0x154e   :  { %v4072_v46 = vpop.eup %4071 }
0x154f   :  { %v2559_v49 = vmul.f32 %v4072_v46, %v4064_v40  ;;  %v2773_v40 = vpop.permute.xlu1 %2772 }
0x1551   :  { %v2561_v53 = vpack.c.bf16 %v2559_v49, %v2558_v56 }
0x1553   :  { %3822 = vmatmul.mubr.msk.bf16.vlgmr.msra.gmra.mrb[68].mxu0 %vm381_vm4, %v2561_v53 }
0x1554   :  { %3832 = vmatpush3.bf16.xpose.msra.mxu0 %v2729_v54  ;;  %3833 = vmatprep.mubr.msk.bf16.mxu0 %vm4140_vm2, %v4139_v42 }
0x1555   :  { %3843 = vmatprep.subr.bf16.mxu0 %v4139_v42 }
0x155b   :  { %3834 = vmatmul.mubr.msk.bf16.vlgmr.msra.gmra.mrb[72].mxu0 %vm271_vm3, %v2722_v61 }
0x155c   :  { %3845 = vmatprep.mubr.msk.bf16.mxu0 %vm4140_vm2, %v4139_v42 }
0x161e   :  { %v2602_v2 = vpop.f32.mrb[64].mxu1 }
0x161f   :  { %v3817_v3 = vpop.f32.mrb[65].mxu1 }
0x1620   :  { %v2605_v9 = vpop.f32.mrb[66].mxu1  ;;  %v3404_v3 = vld [vmem:[%s4952_s5 + $0x38] sm:$0xff] }
0x1621   :  { %v2656_v11 = vpack.c.bf16 %v2605_v9, %v2602_v2  ;;  %v3818_v16 = vpop.f32.mrb[67].mxu1  ;;  %v2953_v9 = vpack.c.bf16 %v3404_v3, %v3404_v3 }
0x1623   :  { %3827 = vmatprep.mubr.msk.bf16.mxu1 %vm271_vm3, %v2656_v11  ;;  %v2961_v11 = vsel %vm740_vm5, %v2953_v9, 0 }
0x1626   :  { %v2649_v17 = vpop.f32.mrb[68].mxu0 }
0x1627   :  { %v3823_v5 = vpop.f32.mrb[69].mxu0 }
0x1628   :  { %v2652_v19 = vpop.f32.mrb[70].mxu0 }
0x1629   :  { %v2657_v12 = vpack.c.bf16 %v2652_v19, %v2649_v17  ;;  %v3824_v20 = vpop.f32.mrb[71].mxu0 }
0x162b   :  { %3828 = vmatmul.mubr.msk.bf16.vlgmr.msra.gmra.mrb[60].mxu1 %vm271_vm3, %v2657_v12 }
0x162c   :  { %3838 = vmatpush3.bf16.xpose.msra.mxu1 %v2780_v21  ;;  %3839 = vmatprep.mubr.msk.bf16.mxu1 %vm4140_vm2, %v4139_v42 }
0x162d   :  { %3849 = vmatprep.subr.bf16.mxu1 %v4139_v42 }
0x162e   :  { %v2765_v24 = vpop.f32.mrb[72].mxu0 }
0x162f   :  { %v2823_v25 = vmul.f32 0.35355338, %v2765_v24  ;;  %v3835_v27 = vpop.f32.mrb[73].mxu0 }
0x1630   :  { %v2768_v28 = vpop.f32.mrb[74].mxu0 }
0x1631   :  { %v2827_v30 = vmul.f32 1.442695, %v2823_v25  ;;  %v2824_v34 = vmul.f32 0.35355338, %v2768_v28  ;;  %v3836_v38 = vpop.f32.mrb[75].mxu0  ;;  %v3435_v28 = vld [vmem:[%s4953_s6 + $0x20] sm:$0xff] }
0x1632   :  { %v3437_v38 = vld [vmem:[%s4953_s6 + $0x30] sm:$0xff] }
0x1633   :  { %4073 = vpow2.f32 %v2827_v30  ;;  %v2829_v41 = vmul.f32 1.442695, %v2824_v34  ;;  %3840 = vmatmul.mubr.msk.bf16.vlgmr.msra.gmra.mrb[68].mxu1 %vm271_vm3, %v2773_v40  ;;  %v3436_v30 = vld [vmem:[%s4953_s6 + $0x28] sm:$0xff]  ;;  %v3438_v40 = vld [vmem:[%s4953_s6 + $0x38] sm:$0xff] }
0x1634   :  { %3851 = vmatprep.mubr.msk.bf16.mxu1 %vm4140_vm2, %v4139_v42  ;;  %v3103_v34 = vpack.c.bf16 %v3436_v30, %v3435_v28  ;;  %v3108_v30 = vrot.slane %v4640_v7, %v1531_v22 }
0x1635   :  { %4075 = vpow2.f32 %v2829_v41  ;;  %v3104_v41 = vpack.c.bf16 %v3438_v40, %v3437_v38 }
0x163d   :  { %v4074_v47 = vpop.eup %4073 }
0x163e   :  { %v2835_v48 = vsel %vm381_vm4, %v4074_v47, 0.0 }
0x163f   :  { %v4076_v50 = vpop.eup %4075  ;;  %2836 = vadd.xlane.f32.xlu0 %v2835_v48 }
0x1640   :  { %v2838_v14 = vsel %vm381_vm4, %v4076_v50, 0.0 }
0x1641   :  { %2839 = vadd.xlane.f32.xlu1 %v2838_v14 }
0x1652   :  { %2904 = vrot.lane.b32.xlu1 %v4653_v35, %s4151_s21 }
0x16cc   :  { %v2837_v45 = vpop.xlane.xlu0 %2836 }
0x16ce   :  { %v2840_v55 = vpop.xlane.xlu1 %2839 }
0x16d2   :  { %v2905_v4 = vpop.permute.xlu1 %2904 }
0x16d3   :  { %3850 = vmatpush3.bf16.msra.mxu1 %v2905_v4 }
0x16d4   :  { %3912 = vmatprep.subr.msk.bf16.mxu1 %vm740_vm5, %v2953_v9 }
0x1706   :  { %v2816_v6 = vpop.f32.mrb[68].mxu1 }
0x1707   :  { %v2825_v29 = vmul.f32 0.35355338, %v2816_v6  ;;  %v3841_v26 = vpop.f32.mrb[69].mxu1 }
0x1708   :  { %v2819_v15 = vpop.f32.mrb[70].mxu1 }
0x1709   :  { %v2831_v42 = vmul.f32 1.442695, %v2825_v29  ;;  %v2826_v51 = vmul.f32 0.35355338, %v2819_v15  ;;  %v3842_v57 = vpop.f32.mrb[71].mxu1 }
0x170b   :  { %4077 = vpow2.f32 %v2831_v42  ;;  %v2833_v63 = vmul.f32 1.442695, %v2826_v51 }
0x170d   :  { %4079 = vpow2.f32 %v2833_v63 }
0x170e   :  { %4081 = vrcp.f32 %v2840_v55 }
0x170f   :  { %4083 = vrcp.f32 %v2837_v45  ;;  %v3444_v45 = vld [vmem:[%s4954_s7 + $0x58] sm:$0xff] }
0x1715   :  { %v4078_v31 = vpop.eup %4077 }
0x1716   :  { %v2841_v33 = vsel %vm381_vm4, %v4078_v31, 0.0 }
0x1717   :  { %v4080_v39 = vpop.eup %4079  ;;  %2842 = vadd.xlane.f32.xlu0 %v2841_v33 }
0x1718   :  { %v2844_v35 = vsel %vm381_vm4, %v4080_v39, 0.0  ;;  %v4082_v52 = vpop.eup %4081 }
0x1719   :  { %v4084_v49 = vpop.eup %4083  ;;  %v2852_v53 = vmul.f32 %v4082_v52, %v4076_v50  ;;  %v3445_v52 = vld [vmem:[%s4954_s7 + $0x60] sm:$0xff] }
0x171a   :  { %v2851_v54 = vmul.f32 %v4084_v49, %v4074_v47  ;;  %v3019_v47 = vrot.slane %v4640_v7, %v1443_v32 }
0x171b   :  { %2845 = vadd.xlane.f32.xlu0 %v2844_v35  ;;  %v3443_v35 = vld [vmem:[%s4954_s7 + $0x50] sm:$0xff] }
0x171c   :  { %v2855_v61 = vpack.c.bf16 %v2852_v53, %v2851_v54  ;;  %v3447_v53 = vld [vmem:[%s4954_s7 + $0x70] sm:$0xff]  ;;  %v3448_v54 = vld [vmem:[%s4954_s7 + $0x78] sm:$0xff] }
0x1731   :  { %2857 = vrot.lane.b32.xlu0 %v4655_v37, %s4151_s21 }
0x17a4   :  { %v2843_v46 = vpop.xlane.xlu0 %2842 }
0x17a5   :  { %4085 = vrcp.f32 %v2843_v46  ;;  %v3212_v46 = vpack.c.bf16 %v3444_v45, %v3443_v35 }
0x17a8   :  { %v2846_v56 = vpop.xlane.xlu0 %2845 }
0x17a9   :  { %4087 = vrcp.f32 %v2846_v56  ;;  %v3446_v56 = vld [vmem:[%s4954_s7 + $0x68] sm:$0xff] }
0x17aa   :  { %v3213_v49 = vpack.c.bf16 %v3446_v56, %v3445_v52 }
0x17ac   :  { %v2858_v59 = vpop.permute.xlu0 %2857 }
0x17ad   :  { %3844 = vmatpush3.bf16.msra.mxu0 %v2858_v59  ;;  %v3214_v59 = vpack.c.bf16 %v3448_v54, %v3447_v53 }
0x17ae   :  { %3861 = vmatprep.subr.bf16.mxu0 %v3103_v34 }
0x17af   :  { %v4086_v62 = vpop.eup %4085 }
0x17b0   :  { %3846 = vmatmul.mubr.msk.bf16.vlgmr.msra.gmra.mrb[76].mxu0 %vm381_vm4, %v2855_v61  ;;  %v2853_v1 = vmul.f32 %v4086_v62, %v4078_v31 }
0x17b1   :  { %3862 = vmatpush3.bf16.msra.mxu0 %v3103_v34 }
0x17b2   :  { %3863 = vmatprep.subr.bf16.mxu0 %v3104_v41 }
0x17b3   :  { %v4088_v0 = vpop.eup %4087 }
0x17b4   :  { %v2854_v37 = vmul.f32 %v4088_v0, %v4080_v39 }
0x17b5   :  { %3864 = vmatpush3.bf16.msra.mxu0 %v3104_v41 }
0x17b6   :  { %v2856_v2 = vpack.c.bf16 %v2854_v37, %v2853_v1 }
0x17b8   :  { %3852 = vmatmul.mubr.msk.bf16.vlgmr.msra.gmra.mrb[72].mxu1 %vm381_vm4, %v2856_v2 }
0x17b9   :  { %3856 = vmatpush3.bf16.msra.mxu1 %v2961_v11 }
0x1883   :  { %v2897_v16 = vpop.f32.mrb[76].mxu0 }
0x1884   :  { %v3847_v17 = vpop.f32.mrb[77].mxu0 }
0x1885   :  { %v2900_v5 = vpop.f32.mrb[78].mxu0 }
0x1886   :  { %v2951_v19 = vpack.c.bf16 %v2900_v5, %v2897_v16  ;;  %v3848_v12 = vpop.f32.mrb[79].mxu0 }
0x1888   :  { %3857 = vmatprep.mubr.msk.bf16.mxu1 %vm271_vm3, %v2951_v19 }
0x188b   :  { %v2944_v20 = vpop.f32.mrb[72].mxu1 }
0x188c   :  { %v3853_v21 = vpop.f32.mrb[73].mxu1 }
0x188d   :  { %v2947_v24 = vpop.f32.mrb[74].mxu1 }
0x188e   :  { %v2952_v25 = vpack.c.bf16 %v2947_v24, %v2944_v20  ;;  %v3854_v27 = vpop.f32.mrb[75].mxu1 }
0x1890   :  { %3858 = vmatmul.mubr.msk.bf16.vlgmr.msra.gmra.mrb[60].mxu1 %vm271_vm3, %v2952_v25 }
0x1963   :  { %v3859_v48 = vpop.f32.mrb[60].mxu1 }
0x1964   :  { %v2997_v50 = vpop.f32.mrb[61].mxu1  ;;  %v3022_v4 = vadd.f32 %v3859_v48, %v3019_v47 }
0x1965   :  { %v3020_v14 = vadd.f32 %v3019_v47, %v2997_v50  ;;  %v3860_v55 = vpop.f32.mrb[62].mxu1 }
0x1966   :  { %v3023_v6 = vadd.f32 %v3860_v55, %v3019_v47  ;;  %v3000_v29 = vpop.f32.mrb[63].mxu1  ;;  %v3026_v63 = vadd.f32 %v3022_v4, %v4602_v23  ;;  %v3441_v23 = vld [vmem:[%s4954_s7 + $0x40] sm:$0xff] }
0x1967   :  { %v3024_v26 = vadd.f32 %v3020_v14, %v4600_v58  ;;  %v3021_v15 = vadd.f32 %v3019_v47, %v3000_v29 }
0x1968   :  { %v3027_v42 = vadd.f32 %v3023_v6, %v4608_v60  ;;  %v3034_v58 = vsel %vm129_vm1, %v3026_v63, 0.0 }
0x1969   :  { %v3025_v51 = vadd.f32 %v3021_v15, %v4604_v8  ;;  %v3028_v57 = vsel %vm129_vm1, %v3024_v26, 0.0  ;;  %v3442_v8 = vld [vmem:[%s4954_s7 + $0x48] sm:$0xff] }
0x196a   :  { %3029 = vadd.xlane.f32.xlu1 %v3028_v57  ;;  %v3102_v33 = vpack.c.bf16 %v3027_v42, %v3026_v63  ;;  %v3037_v39 = vsel %vm129_vm1, %v3027_v42, 0.0  ;;  %v3211_v60 = vpack.c.bf16 %v3442_v8, %v3441_v23 }
0x196b   :  { %v3101_v32 = vpack.c.bf16 %v3025_v51, %v3024_v26  ;;  %v3031_v31 = vsel %vm129_vm1, %v3025_v51, 0.0 }
0x196c   :  { %3032 = vadd.xlane.f32.xlu0 %v3031_v31  ;;  %3869 = vmatprep.subr.bf16.mxu0 %v3211_v60 }
0x196d   :  { %3865 = vmatprep.mubr.msk.bf16.mxu0 %vm129_vm1, %v3101_v32 }
0x196e   :  { %3038 = vadd.xlane.f32.xlu1 %v3037_v39  ;;  %3866 = vmatmul.mubr.msk.bf16.vlgmr.msra.gmra.mrb[80].mxu0 %vm129_vm1, %v3102_v33 }
0x196f   :  { %3870 = vmatpush3.bf16.msra.mxu0 %v3211_v60 }
0x1970   :  { %3035 = vadd.xlane.f32.xlu0 %v3034_v58  ;;  %3871 = vmatprep.subr.bf16.mxu0 %v3212_v46 }
0x1973   :  { %3872 = vmatpush3.bf16.msra.mxu0 %v3212_v46 }
0x1974   :  { %3873 = vmatprep.subr.bf16.mxu0 %v3213_v49 }
0x1977   :  { %3874 = vmatpush3.bf16.msra.mxu0 %v3213_v49 }
0x1978   :  { %3875 = vmatprep.subr.bf16.mxu0 %v3214_v59 }
0x197b   :  { %3876 = vmatpush3.bf16.msra.mxu0 %v3214_v59 }
0x19f7   :  { %v3030_v61 = vpop.xlane.xlu1 %3029 }
0x19f8   :  { %v3040_v62 = vmul.f32 0.03125, %v3030_v61 }
0x19f9   :  { %v3033_v0 = vpop.xlane.xlu0 %3032 }
0x19fa   :  { %v4880_v1 = vsub.f32 %v3024_v26, %v3040_v62  ;;  %v3041_v37 = vmul.f32 0.03125, %v3033_v0 }
0x19fb   :  { %v3039_v2 = vpop.xlane.xlu1 %3038 }
0x19fc   :  { %v4882_v3 = vsub.f32 %v3025_v51, %v3041_v37  ;;  %v3043_v9 = vmul.f32 0.03125, %v3039_v2  ;;  %v3048_v11 = vmul.f32 %v4880_v1, %v4880_v1 }
0x19fd   :  { %v3036_v16 = vpop.xlane.xlu0 %3035 }
0x19fe   :  { %v4886_v17 = vsub.f32 %v3027_v42, %v3043_v9  ;;  %v3042_v5 = vmul.f32 0.03125, %v3036_v16  ;;  %v3052_v19 = vsel %vm129_vm1, %v3048_v11, 0.0  ;;  %v3049_v12 = vmul.f32 %v4882_v3, %v4882_v3 }
0x19ff   :  { %3053 = vadd.xlane.f32.xlu0 %v3052_v19 }
0x1a00   :  { %v4891_v20 = vsub.f32 %v3026_v63, %v3042_v5  ;;  %v3055_v21 = vsel %vm129_vm1, %v3049_v12, 0.0  ;;  %v3051_v24 = vmul.f32 %v4886_v17, %v4886_v17 }
0x1a01   :  { %3056 = vadd.xlane.f32.xlu1 %v3055_v21 }
0x1a02   :  { %v3050_v25 = vmul.f32 %v4891_v20, %v4891_v20  ;;  %v3061_v27 = vsel %vm129_vm1, %v3051_v24, 0.0 }
0x1a04   :  { %v3058_v28 = vsel %vm129_vm1, %v3050_v25, 0.0 }
0x1a05   :  { %3062 = vadd.xlane.f32.xlu1 %v3061_v27  ;;  %3059 = vadd.xlane.f32.xlu0 %v3058_v28 }
0x1a41   :  { %v3867_v34 = vpop.f32.mrb[80].mxu0 }
0x1a42   :  { %v3158_v38 = vadd.f32 %v3867_v34, %v3108_v30  ;;  %v3149_v40 = vpop.f32.mrb[81].mxu0 }
0x1a43   :  { %v3150_v41 = vadd.f32 %v3149_v40, %v3108_v30  ;;  %v3868_v47 = vpop.f32.mrb[82].mxu0 }
0x1a44   :  { %v3170_v48 = vmul.f32 %v3158_v38, %v3158_v38  ;;  %v3161_v50 = vadd.f32 %v3868_v47, %v3108_v30  ;;  %v3152_v14 = vpop.f32.mrb[83].mxu0  ;;  %v3166_v53 = vmul.f32 0.5, %v3158_v38 }
0x1a45   :  { %v3168_v55 = vmul.f32 %v3150_v41, %v3150_v41  ;;  %v3153_v4 = vadd.f32 %v3152_v14, %v3108_v30  ;;  %v3164_v61 = vmul.f32 0.5, %v3150_v41  ;;  %v4114_v14 = vld [vmem:[%s4955_s8 + $0x8] sm:$0xff] }
0x1a46   :  { %v3174_v6 = vmul.f32 %v3170_v48, %v3158_v38  ;;  %v3171_v29 = vmul.f32 %v3161_v50, %v3161_v50  ;;  %v3167_v54 = vmul.f32 0.5, %v3161_v50 }
0x1a47   :  { %v3172_v26 = vmul.f32 %v3168_v55, %v3150_v41  ;;  %v3169_v15 = vmul.f32 %v3153_v4, %v3153_v4  ;;  %v3165_v62 = vmul.f32 0.5, %v3153_v4  ;;  %v3083_v55 = vrot.slane %v4114_v14, %v1507_v36 }
0x1a48   :  { %v3178_v42 = vmul.f32 0.044715, %v3174_v6  ;;  %v3175_v51 = vmul.f32 %v3171_v29, %v3161_v50 }
0x1a49   :  { %v3176_v57 = vmul.f32 0.044715, %v3172_v26  ;;  %v3173_v63 = vmul.f32 %v3169_v15, %v3153_v4  ;;  %v3091_v15 = vrot.slane %v4114_v14, %v1515_v43 }
0x1a4a   :  { %v3182_v32 = vadd.f32 %v3178_v42, %v3158_v38  ;;  %v3179_v22 = vmul.f32 0.044715, %v3175_v51  ;;  %v3218_v42 = vrot.slane %v4114_v14, %v1640_v44 }
0x1a4b   :  { %v3180_v7 = vadd.f32 %v3176_v57, %v3150_v41  ;;  %v3177_v31 = vmul.f32 0.044715, %v3173_v63 }
0x1a4c   :  { %v3186_v33 = vmul.f32 0.7978846, %v3182_v32  ;;  %v3183_v39 = vadd.f32 %v3179_v22, %v3161_v50 }
0x1a4d   :  { %v3184_v58 = vmul.f32 0.7978846, %v3180_v7  ;;  %v3181_v23 = vadd.f32 %v3177_v31, %v3153_v4 }
0x1a4e   :  { %4089 = vtanh.f32 %v3186_v33  ;;  %v3187_v8 = vmul.f32 0.7978846, %v3183_v39 }
0x1a4f   :  { %4091 = vtanh.f32 %v3184_v58  ;;  %v3185_v60 = vmul.f32 0.7978846, %v3181_v23 }
0x1a50   :  { %4093 = vtanh.f32 %v3187_v8 }
0x1a51   :  { %4095 = vtanh.f32 %v3185_v60 }
0x1a58   :  { %v4090_v35 = vpop.eup %4089 }
0x1a59   :  { %v4092_v45 = vpop.eup %4091  ;;  %v3194_v46 = vadd.f32 1.0, %v4090_v35 }
0x1a5a   :  { %v4094_v52 = vpop.eup %4093  ;;  %v3192_v56 = vadd.f32 1.0, %v4092_v45 }
0x1a5b   :  { %v4096_v49 = vpop.eup %4095  ;;  %v3195_v59 = vadd.f32 1.0, %v4094_v52  ;;  %v3198_v37 = vmul.f32 %v3194_v46, %v3166_v53 }
0x1a5c   :  { %v3193_v0 = vadd.f32 1.0, %v4096_v49  ;;  %v3196_v9 = vmul.f32 %v3192_v56, %v3164_v61 }
0x1a5d   :  { %v3199_v2 = vmul.f32 %v3195_v59, %v3167_v54 }
0x1a5e   :  { %v3197_v11 = vmul.f32 %v3193_v0, %v3165_v62 }
0x1a5f   :  { %v3210_v16 = vpack.c.bf16 %v3199_v2, %v3198_v37 }
0x1a60   :  { %v3209_v5 = vpack.c.bf16 %v3197_v11, %v3196_v9 }
0x1a62   :  { %3877 = vmatprep.mubr.msk.bf16.mxu0 %vm62_vm0, %v3209_v5 }
0x1a63   :  { %3878 = vmatmul.mubr.msk.bf16.vlgmr.msra.gmra.mrb[84].mxu0 %vm62_vm0, %v3210_v16 }
0x1a8c   :  { %v3054_v19 = vpop.xlane.xlu0 %3053 }
0x1a8d   :  { %v3064_v24 = vmul.f32 0.03125, %v3054_v19 }
0x1a8e   :  { %v3057_v12 = vpop.xlane.xlu1 %3056 }
0x1a8f   :  { %v3065_v25 = vmul.f32 0.03125, %v3057_v12  ;;  %v3068_v30 = vadd.f32 1e-12, %v3064_v24 }
0x1a91   :  { %v3069_v38 = vadd.f32 1e-12, %v3065_v25  ;;  %4097 = vrsqrt.f32 %v3068_v30 }
0x1a92   :  { %v3060_v21 = vpop.xlane.xlu0 %3059  ;;  %v3063_v27 = vpop.xlane.xlu1 %3062 }
0x1a93   :  { %v3066_v28 = vmul.f32 0.03125, %v3060_v21  ;;  %v3067_v34 = vmul.f32 0.03125, %v3063_v27  ;;  %4099 = vrsqrt.f32 %v3069_v38 }
0x1a95   :  { %v3070_v40 = vadd.f32 1e-12, %v3066_v28  ;;  %v3071_v41 = vadd.f32 1e-12, %v3067_v34 }
0x1a97   :  { %4101 = vrsqrt.f32 %v3070_v40 }
0x1a98   :  { %4103 = vrsqrt.f32 %v3071_v41 }
0x1a9b   :  { %v4098_v47 = vpop.eup %4097 }
0x1a9c   :  { %v3076_v4 = vmul.f32 %v4098_v47, %v4880_v1 }
0x1a9d   :  { %v4100_v48 = vpop.eup %4099 }
0x1a9e   :  { %v3077_v29 = vmul.f32 %v4100_v48, %v4882_v3  ;;  %v3084_v51 = vmul.f32 %v3083_v55, %v3076_v4 }
0x1aa0   :  { %v3085_v63 = vmul.f32 %v3083_v55, %v3077_v29  ;;  %v3092_v1 = vadd.f32 %v3091_v15, %v3084_v51 }
0x1aa1   :  { %v4102_v50 = vpop.eup %4101 }
0x1aa2   :  { %v4104_v6 = vpop.eup %4103  ;;  %v3078_v26 = vmul.f32 %v4102_v50, %v4891_v20  ;;  %v3093_v39 = vadd.f32 %v3091_v15, %v3085_v63 }
0x1aa3   :  { %v3079_v57 = vmul.f32 %v4104_v6, %v4886_v17  ;;  %v3278_v6 = vld [vmem:[%s4956_s9] sm:$0x3]  ;;  %s4152_s9 = smov [#allocation2]  }
0x1aa4   :  { %v3086_v32 = vmul.f32 %v3083_v55, %v3078_v26  ;;  %v3334_v29 = vrot.slane %v3278_v6, %v4296_v13  ;;  %s3356_s16 = sshll.u32 %s4152_s9, 4  ;;  %s3357_s16 = int_to_ptr.vmem [resolvable:$true] %s3356_s16 }
0x1aa5   :  { %v3087_v33 = vmul.f32 %v3083_v55, %v3079_v57  ;;  %s4115_s5 = scalar_lea.vmem %s3357_s16, 512  ;;  %p4120_p1 = scmp.lt.s32.totalorder %s3357_s16, %s3357_s16 }
0x1aa6   :  { %v3094_v58 = vadd.f32 %v3091_v15, %v3086_v32  ;;  %p4116_p0 = scmp.ne.s32.totalorder %s3357_s16, %s4115_s5  ;;  %p4121_p2 = scmp.lt.s32.totalorder %s4115_s5, %s4115_s5 }
0x1aa7   :  { %v3095_v44 = vadd.f32 %v3091_v15, %v3087_v33  ;;  %v3342_v15 = vrot.slane %v3278_v6, %v4306_v18 }
0x1aa8   :  { %p4122_p3 = por %p4121_p2, %p4120_p1 }
0x1aaa   :  { %p4123_p4 = pnand %p4122_p3, %p4116_p0 }
0x1b36   :  { %v3879_v22 = vpop.f32.mrb[84].mxu0 }
0x1b37   :  { %v3259_v36 = vpop.f32.mrb[85].mxu0  ;;  %v3268_v7 = vadd.f32 %v3879_v22, %v3218_v42 }
0x1b38   :  { %v3260_v31 = vadd.f32 %v3259_v36, %v3218_v42  ;;  %v3880_v3 = vpop.f32.mrb[86].mxu0 }
0x1b39   :  { %v3262_v20 = vpop.f32.mrb[87].mxu0  ;;  %v3271_v43 = vadd.f32 %v3880_v3, %v3218_v42  ;;  %v3276_v10 = vadd.f32 %v3268_v7, %v3094_v58 }
0x1b3a   :  { %v3274_v23 = vadd.f32 %v3260_v31, %v3092_v1  ;;  %v3263_v8 = vadd.f32 %v3262_v20, %v3218_v42 }
0x1b3b   :  { %v3277_v35 = vadd.f32 %v3271_v43, %v3095_v44  ;;  %v3285_v46 = vsel %vm129_vm1, %v3276_v10, 0.0 }
0x1b3c   :  { %v3275_v60 = vadd.f32 %v3263_v8, %v3093_v39  ;;  %v3279_v17 = vsel %vm129_vm1, %v3274_v23, 0.0 }
0x1b3d   :  { %3280 = vadd.xlane.f32.xlu0 %v3279_v17  ;;  %v3288_v52 = vsel %vm129_vm1, %v3277_v35, 0.0 }
0x1b3e   :  { %v3282_v45 = vsel %vm129_vm1, %v3275_v60, 0.0 }
0x1b3f   :  { %3283 = vadd.xlane.f32.xlu1 %v3282_v45 }
0x1b41   :  { %3286 = vadd.xlane.f32.xlu0 %v3285_v46 }
0x1b43   :  { %3289 = vadd.xlane.f32.xlu1 %v3288_v52 }
0x1bca   :  { %v3281_v56 = vpop.xlane.xlu0 %3280 }
0x1bcb   :  { %v3291_v49 = vmul.f32 0.03125, %v3281_v56 }
0x1bcc   :  { %v3284_v53 = vpop.xlane.xlu1 %3283 }
0x1bcd   :  { %v3295_v54 = vsub.f32 %v3274_v23, %v3291_v49  ;;  %v3292_v59 = vmul.f32 0.03125, %v3284_v53 }
0x1bce   :  { %v3287_v61 = vpop.xlane.xlu0 %3286 }
0x1bcf   :  { %v3296_v62 = vsub.f32 %v3275_v60, %v3292_v59  ;;  %v3293_v0 = vmul.f32 0.03125, %v3287_v61  ;;  %v3299_v37 = vmul.f32 %v3295_v54, %v3295_v54 }
0x1bd0   :  { %v3290_v2 = vpop.xlane.xlu1 %3289 }
0x1bd1   :  { %v3297_v9 = vsub.f32 %v3276_v10, %v3293_v0  ;;  %v3294_v11 = vmul.f32 0.03125, %v3290_v2  ;;  %v3303_v16 = vsel %vm129_vm1, %v3299_v37, 0.0  ;;  %v3300_v5 = vmul.f32 %v3296_v62, %v3296_v62 }
0x1bd2   :  { %3304 = vadd.xlane.f32.xlu0 %v3303_v16 }
0x1bd3   :  { %v3298_v19 = vsub.f32 %v3277_v35, %v3294_v11  ;;  %v3306_v12 = vsel %vm129_vm1, %v3300_v5, 0.0  ;;  %v3301_v21 = vmul.f32 %v3297_v9, %v3297_v9 }
0x1bd4   :  { %3307 = vadd.xlane.f32.xlu1 %v3306_v12 }
0x1bd5   :  { %v3309_v24 = vsel %vm129_vm1, %v3301_v21, 0.0  ;;  %v3302_v25 = vmul.f32 %v3298_v19, %v3298_v19 }
0x1bd6   :  { %3310 = vadd.xlane.f32.xlu0 %v3309_v24 }
0x1bd7   :  { %v3312_v27 = vsel %vm129_vm1, %v3302_v25, 0.0 }
0x1bd8   :  { %3313 = vadd.xlane.f32.xlu1 %v3312_v27 }
0x1c5f   :  { %v3305_v28 = vpop.xlane.xlu0 %3304 }
0x1c60   :  { %v3315_v30 = vmul.f32 0.03125, %v3305_v28 }
0x1c61   :  { %v3308_v34 = vpop.xlane.xlu1 %3307 }
0x1c62   :  { %v3319_v38 = vadd.f32 1e-12, %v3315_v30  ;;  %v3316_v40 = vmul.f32 0.03125, %v3308_v34 }
0x1c63   :  { %v3311_v41 = vpop.xlane.xlu0 %3310 }
0x1c64   :  { %4105 = vrsqrt.f32 %v3319_v38  ;;  %v3320_v47 = vadd.f32 1e-12, %v3316_v40  ;;  %v3317_v48 = vmul.f32 0.03125, %v3311_v41 }
0x1c65   :  { %v3314_v50 = vpop.xlane.xlu1 %3313 }
0x1c66   :  { %4107 = vrsqrt.f32 %v3320_v47  ;;  %v3321_v14 = vadd.f32 1e-12, %v3317_v48  ;;  %v3318_v55 = vmul.f32 0.03125, %v3314_v50 }
0x1c68   :  { %4109 = vrsqrt.f32 %v3321_v14  ;;  %v3322_v4 = vadd.f32 1e-12, %v3318_v55 }
0x1c6a   :  { %4111 = vrsqrt.f32 %v3322_v4 }
0x1c6e   :  { %v4106_v26 = vpop.eup %4105 }
0x1c6f   :  { %v3327_v42 = vmul.f32 %v4106_v26, %v3295_v54 }
0x1c70   :  { %v4108_v51 = vpop.eup %4107 }
0x1c71   :  { %v3335_v57 = vmul.f32 %v3334_v29, %v3327_v42  ;;  %v3328_v63 = vmul.f32 %v4108_v51, %v3296_v62 }
0x1c72   :  { %v4110_v32 = vpop.eup %4109 }
0x1c73   :  { %v3343_v22 = vadd.f32 %v3342_v15, %v3335_v57  ;;  %v3336_v36 = vmul.f32 %v3334_v29, %v3328_v63  ;;  %v3329_v7 = vmul.f32 %v4110_v32, %v3297_v9 }
0x1c74   :  { %v4112_v1 = vpop.eup %4111 }
0x1c75   :  { %3347 = vst.msk [vmem:[#allocation2] sm:$0xff] %vm129_vm1, %v3343_v22  ;;  %v3344_v31 = vadd.f32 %v3342_v15, %v3336_v36  ;;  %v3337_v33 = vmul.f32 %v3334_v29, %v3329_v7  ;;  %v3330_v3 = vmul.f32 %v4112_v1, %v3298_v19 }
0x1c77   :  { %3348 = vst.msk [vmem:[#allocation2 + $0x8] sm:$0xff] %vm129_vm1, %v3344_v31  ;;  %v3345_v13 = vadd.f32 %v3342_v15, %v3337_v33  ;;  %v3338_v18 = vmul.f32 %v3334_v29, %v3330_v3 }
0x1c79   :  { %3349 = vst.msk [vmem:[#allocation2 + $0x10] sm:$0xff] %vm129_vm1, %v3345_v13  ;;  %v3346_v39 = vadd.f32 %v3342_v15, %v3338_v18 }
0x1c7b   :  { %3350 = vst.msk [vmem:[#allocation2 + $0x18] sm:$0xff] %vm129_vm1, %v3346_v39 }
0x1c7c   :  { %4126 = shalt.err (!%p4123_p4)
}
0x1c7d   :  { %s4127_s21 = scalar_lea.hbm %s4957_s10, 512 }
0x1c7e   :  { %p4128_p5 = scmp.ne.s32.totalorder %s4957_s10, %s4127_s21  ;;  %p4131_p6 = scmp.lt.u32.totalorder %s4127_s21, %s4957_s10 }
0x1c80   :  { %p4133_p7 = pnand %p4131_p6, %p4128_p5 }
0x1c82   :  { %4136 = shalt.err (!%p4133_p7)
}
0x1c83   :  { %s4153_s6 = smov 128   ;;  %s4154_s24 = smov 8  }
0x1c84   :  { %3362 = dma.vmem_to_hbm [thread:$0]  %s3357_s16, 512, %s4957_s10, [#allocation3], %s4153_s6, %s4153_s6, %s4154_s24  }
0x1c85   :  { %4137 = dma.done.wait [#allocation3], 512  }
0x1c86   :  { %4138 = vsyncadd [#allocation3], 4294966784 }
0x1c87   :  { %3366 = vsyncpa [#allocation3], 1 }

</bundles_post_ra>
